<compile_context>
chip_gen: v7x
topology: tpu7x:2x2x1
jax: 0.10.0
libtpu: 0.0.40
codegen_flags: <defaults>
</compile_context>

<pallas_src>
import functools

import jax
import jax.numpy as jnp
import numpy as np
from jax.experimental import pallas as pl
from jax.experimental.pallas import tpu as pltpu


def _round_up(x, m):
    return ((x + m - 1) // m) * m


# -----------------------------------------------------------------------------
# Pallas kernel 1: fused KxK conv + bias + optional ReLU.
# Tap windows are concatenated along channels in VMEM and contracted with a
# single (Ho*Wo, kh*kw*Cin) x (kh*kw*Cin, Co) MXU dot (bf16 operands, f32 acc).
# Strided convs use a stride-phase decomposition built once in the wrapper so
# only static, stride-free slices are needed inside the kernel.
# -----------------------------------------------------------------------------
def _conv_kernel(x_ref, w_ref, b_ref, o_ref, *, kh, kw, stride, dil,
                 Ho, Wo, relu, concat_taps):
    cin = x_ref.shape[-1]
    taps = []
    for i in range(kh):
        qi, ri = divmod(i * dil, stride)
        for j in range(kw):
            qj, rj = divmod(j * dil, stride)
            p = ri * stride + rj
            taps.append(x_ref[p, qi:qi + Ho, qj:qj + Wo, :])      # (Ho, Wo, Cin)

    if concat_taps:
        t = jnp.concatenate(taps, axis=-1) if len(taps) > 1 else taps[0]
        t = t.reshape(Ho * Wo, kh * kw * cin).astype(jnp.bfloat16)
        acc = jnp.dot(t, w_ref[...], preferred_element_type=jnp.float32)
    else:
        # Tiny-Cin fallback (first RGB conv): memory-bound, per-tap dots.
        co = o_ref.shape[-1]
        acc = jnp.zeros((Ho * Wo, co), jnp.float32)
        for idx, tap in enumerate(taps):
            t2 = tap.reshape(Ho * Wo, cin).astype(jnp.bfloat16)
            acc = acc + jnp.dot(t2, w_ref[idx * cin:(idx + 1) * cin, :],
                                preferred_element_type=jnp.float32)

    acc = acc + b_ref[...]
    if relu:
        acc = jnp.maximum(acc, 0.0)
    o_ref[0] = acc.astype(o_ref.dtype)


def conv2d(x, w, b, *, stride=1, dilation=1, padding=0, relu=False,
           out_dtype=jnp.float32):
    """x: (N,H,W,Cin) NHWC, w: (Co,Cin,kh,kw) PyTorch layout, b: (Co,)."""
    N, H, W, Cin = x.shape
    Co, Cin2, kh, kw = w.shape
    assert Cin == Cin2
    s, d, p = stride, dilation, padding

    if p > 0:
        x = jnp.pad(x, ((0, 0), (p, p), (p, p), (0, 0)))
    Hp, Wp = H + 2 * p, W + 2 * p
    Ho = (Hp - d * (kh - 1) - 1) // s + 1
    Wo = (Wp - d * (kw - 1) - 1) // s + 1
    Hq = (Hp + s - 1) // s
    Wq = (Wp + s - 1) // s
    P = s * s

    if s == 1:
        xph = x                                                 # (N, Hp, Wp, Cin)
    else:
        # TODO(synk): at real scale do the phase selection in-kernel (strided
        # DMA / pl.ds stride) instead of this extra HBM copy.
        phases = []
        for ri in range(s):
            for rj in range(s):
                ph = x[:, ri::s, rj::s, :]
                ph = jnp.pad(ph, ((0, 0), (0, Hq - ph.shape[1]),
                                  (0, Wq - ph.shape[2]), (0, 0)))
                phases.append(ph)
        xph = jnp.stack(phases, axis=1).reshape(N * P, Hq, Wq, Cin)

    w_flat = jnp.transpose(w, (2, 3, 1, 0)).reshape(kh * kw * Cin, Co)
    w_flat = w_flat.astype(jnp.bfloat16)

    kern = functools.partial(_conv_kernel, kh=kh, kw=kw, stride=s, dil=d,
                             Ho=Ho, Wo=Wo, relu=relu,
                             concat_taps=(Cin >= 8 or kh * kw == 1))
    out = pl.pallas_call(
        kern,
        out_shape=jax.ShapeDtypeStruct((N, Ho * Wo, Co), out_dtype),
        grid=(N,),
        in_specs=[
            pl.BlockSpec((P, Hq, Wq, Cin), lambda n: (n, 0, 0, 0)),
            pl.BlockSpec((kh * kw * Cin, Co), lambda n: (0, 0)),
            pl.BlockSpec((1, Co), lambda n: (0, 0)),
        ],
        out_specs=pl.BlockSpec((1, Ho * Wo, Co), lambda n: (n, 0, 0)),
        compiler_params=pltpu.CompilerParams(dimension_semantics=("parallel",)),
    )(xph, w_flat, b.reshape(1, Co).astype(jnp.float32))
    return out.reshape(N, Ho, Wo, Co)


# -----------------------------------------------------------------------------
# Pallas kernel 2: fused SceneUnderstandingModule (everything after the
# backbone) for one image.  All ASPP branches, the channel concat, concat-conv1
# and concat-conv2 stay in VMEM; the only HBM output is the K-channel logit
# difference, stored (K, HW) so pixels are on the lane axis.
# -----------------------------------------------------------------------------
def _sum_kernel(fp_ref, a1wa_ref, a1ba_ref, a1wb_ref, a1bb_ref,
                wa3_ref, ba3_ref, wb3_ref, bb3_ref,
                c1w_ref, c1b_ref, dw_ref, db_ref, o_ref,
                *, Hf, Wf, pad, dils):
    HW = Hf * Wf

    def dense(x_bf16, w, b, relu=True):
        acc = jnp.dot(x_bf16, w, preferred_element_type=jnp.float32) + b
        if relu:
            acc = jnp.maximum(acc, 0.0)
        return acc

    # ASPP branch 1: 1x1 -> 1x1 on the un-padded center window.
    center = fp_ref[0, pad:pad + Hf, pad:pad + Wf, :]
    center = center.reshape(HW, center.shape[-1]).astype(jnp.bfloat16)
    a1 = dense(center, a1wa_ref[...], a1ba_ref[...])
    a1 = dense(a1.astype(jnp.bfloat16), a1wb_ref[...], a1bb_ref[...])
    branches = [a1]

    # ASPP dilated 3x3 -> 1x1 branches: the 9 tap windows are concatenated
    # along channels in VMEM -> one K = 9*Cb MXU dot per 3x3 conv.
    for k, dil in enumerate(dils):
        taps = []
        for i in range(3):
            oi = pad - dil + i * dil
            for j in range(3):
                oj = pad - dil + j * dil
                taps.append(fp_ref[0, oi:oi + Hf, oj:oj + Wf, :])
        t = jnp.concatenate(taps, axis=-1)
        t = t.reshape(HW, t.shape[-1]).astype(jnp.bfloat16)
        a = dense(t, wa3_ref[k], ba3_ref[k])
        a = dense(a.astype(jnp.bfloat16), wb3_ref[k], bb3_ref[k])
        branches.append(a)

    # Channel concat (VMEM only), concat-conv1 (encoder folded into the
    # per-image bias), concat-conv2 reduced to the per-bin logit difference.
    cat = jnp.concatenate(branches, axis=-1).astype(jnp.bfloat16)   # (HW, 4E)
    h = dense(cat, c1w_ref[...], c1b_ref[0])                        # (HW, cmid)
    d = jnp.dot(h.astype(jnp.bfloat16), dw_ref[...],
                preferred_element_type=jnp.float32) + db_ref[...]   # (HW, K)
    o_ref[0] = d.T                                    # (K, HW): lane-dense store


def scene_understanding_pallas(params, f, c1_bias, w_c1_br, w_d, b_d,
                               pyramid, K):
    """f: (N,Hf,Wf,Cb) f32 backbone features -> d = logit1 - logit0 (N,K,Hf*Wf)."""
    N, Hf, Wf, Cb = f.shape
    E = params["aspp1_a"]["w"].shape[0]
    cmid = w_c1_br.shape[1]
    pad = max(pyramid)
    fp = jnp.pad(f, ((0, 0), (pad, pad), (pad, pad), (0, 0)))
    Hp, Wp = Hf + 2 * pad, Wf + 2 * pad
    HW = Hf * Wf

    def flat_w(p):     # (Co,Cin,kh,kw) -> (kh*kw*Cin, Co) bf16
        co, ci, kh, kw = p["w"].shape
        return (jnp.transpose(p["w"], (2, 3, 1, 0))
                .reshape(kh * kw * ci, co).astype(jnp.bfloat16))

    a1wa = flat_w(params["aspp1_a"])
    a1ba = params["aspp1_a"]["b"].reshape(1, E)
    a1wb = flat_w(params["aspp1_b"])
    a1bb = params["aspp1_b"]["b"].reshape(1, E)
    wa3 = jnp.stack([flat_w(params["aspp2_a"]), flat_w(params["aspp3_a"]),
                     flat_w(params["aspp4_a"])])                    # (3, 9Cb, E)
    ba3 = jnp.stack([params["aspp2_a"]["b"], params["aspp3_a"]["b"],
                     params["aspp4_a"]["b"]]).reshape(3, 1, E)
    wb3 = jnp.stack([flat_w(params["aspp2_b"]), flat_w(params["aspp3_b"]),
                     flat_w(params["aspp4_b"])])                    # (3, E, E)
    bb3 = jnp.stack([params["aspp2_b"]["b"], params["aspp3_b"]["b"],
                     params["aspp4_b"]["b"]]).reshape(3, 1, E)

    kern = functools.partial(_sum_kernel, Hf=Hf, Wf=Wf, pad=pad,
                             dils=tuple(pyramid))
    return pl.pallas_call(
        kern,
        out_shape=jax.ShapeDtypeStruct((N, K, HW), jnp.float32),
        grid=(N,),
        in_specs=[
            pl.BlockSpec((1, Hp, Wp, Cb), lambda n: (n, 0, 0, 0)),
            pl.BlockSpec((Cb, E), lambda n: (0, 0)),
            pl.BlockSpec((1, E), lambda n: (0, 0)),
            pl.BlockSpec((E, E), lambda n: (0, 0)),
            pl.BlockSpec((1, E), lambda n: (0, 0)),
            pl.BlockSpec((3, 9 * Cb, E), lambda n: (0, 0, 0)),
            pl.BlockSpec((3, 1, E), lambda n: (0, 0, 0)),
            pl.BlockSpec((3, E, E), lambda n: (0, 0, 0)),
            pl.BlockSpec((3, 1, E), lambda n: (0, 0, 0)),
            pl.BlockSpec((4 * E, cmid), lambda n: (0, 0)),
            pl.BlockSpec((1, 1, cmid), lambda n: (n, 0, 0)),
            pl.BlockSpec((cmid, K), lambda n: (0, 0)),
            pl.BlockSpec((1, K), lambda n: (0, 0)),
        ],
        out_specs=pl.BlockSpec((1, K, HW), lambda n: (n, 0, 0)),
        compiler_params=pltpu.CompilerParams(dimension_semantics=("parallel",)),
    )(fp, a1wa, a1ba, a1wb, a1bb, wa3, ba3, wb3, bb3,
      w_c1_br, c1_bias.reshape(N, 1, cmid), w_d, b_d)


# -----------------------------------------------------------------------------
# Pallas kernel 3: OrdinalRegressionModule on the per-bin logit difference.
# prob = sigmoid(d) == P(class 1) of the 2-class softmax; labels = sum_k[d>0].
# Pixels stay on the lane axis for both outputs (lane-dense stores).
# -----------------------------------------------------------------------------
def _ordinal_kernel(d_ref, prob_ref, label_ref):
    d = d_ref[0]                                   # (K, tp) f32
    e = jnp.exp(-jnp.abs(d))                       # single EUP transcendental
    r = 1.0 / (1.0 + e)
    p1 = jnp.where(d >= 0.0, r, 1.0 - r)           # stable sigmoid(d)
    prob_ref[0] = p1
    label_ref[0] = jnp.sum((d > 0.0).astype(jnp.int32), axis=0, keepdims=True)


def pallas_ordinal_regression(d_nkp, *, tp=4096):
    """d_nkp: (N, K, P) -> labels (N, 1, P) int32, prob (N, K, P) f32."""
    N, K, P = d_nkp.shape
    tp_eff = min(tp, _round_up(P, 128))
    grid = (N, pl.cdiv(P, tp_eff))
    prob, label = pl.pallas_call(
        _ordinal_kernel,
        out_shape=(
            jax.ShapeDtypeStruct((N, K, P), jnp.float32),
            jax.ShapeDtypeStruct((N, 1, P), jnp.int32),
        ),
        grid=grid,
        in_specs=[pl.BlockSpec((1, K, tp_eff), lambda n, t: (n, 0, t))],
        out_specs=(
            pl.BlockSpec((1, K, tp_eff), lambda n, t: (n, 0, t)),
            pl.BlockSpec((1, 1, tp_eff), lambda n, t: (n, 0, t)),
        ),
        compiler_params=pltpu.CompilerParams(
            dimension_semantics=("parallel", "parallel")),
    )(d_nkp)
    return label, prob


# -----------------------------------------------------------------------------
# Parameter initialization (deterministic, synthetic).
# -----------------------------------------------------------------------------
def _conv_init(key, cout, cin, kh, kw):
    k1, k2 = jax.random.split(key)
    fan_in = cin * kh * kw
    w = jax.random.normal(k1, (cout, cin, kh, kw), jnp.float32) / np.sqrt(fan_in)
    b = 0.01 * jax.random.normal(k2, (cout,), jnp.float32)
    return {"w": w, "b": b}


def init_dorn_params(key, K, pyramid, cin=3, c1=16, c2=32, cb=64, e=32, cmid=64):
    keys = jax.random.split(key, 16)
    params = {
        # backbone (simplified, output stride 8)
        "bb_conv1": _conv_init(keys[0], c1, cin, 3, 3),
        "bb_conv2": _conv_init(keys[1], c2, c1, 3, 3),
        "bb_conv3": _conv_init(keys[2], cb, c2, 3, 3),
        # full-image encoder (global pool -> fc -> 1x1)
        "enc_fc": _conv_init(keys[3], e, cb, 1, 1),
        "enc_conv": _conv_init(keys[4], e, e, 1, 1),
        # ASPP branch 1 (1x1)
        "aspp1_a": _conv_init(keys[5], e, cb, 1, 1),
        "aspp1_b": _conv_init(keys[6], e, e, 1, 1),
        # ASPP dilated branches
        "aspp2_a": _conv_init(keys[7], e, cb, 3, 3),
        "aspp2_b": _conv_init(keys[8], e, e, 1, 1),
        "aspp3_a": _conv_init(keys[9], e, cb, 3, 3),
        "aspp3_b": _conv_init(keys[10], e, e, 1, 1),
        "aspp4_a": _conv_init(keys[11], e, cb, 3, 3),
        "aspp4_b": _conv_init(keys[12], e, e, 1, 1),
        # concat processing
        "cat_conv1": _conv_init(keys[13], cmid, 5 * e, 1, 1),
        "cat_conv2": _conv_init(keys[14], 2 * K, cmid, 1, 1),
    }
    meta = {"K": K, "pyramid": pyramid, "e": e}
    return params, meta


# -----------------------------------------------------------------------------
# Forward pass.
# -----------------------------------------------------------------------------
def dorn_forward(params, meta, x_nchw):
    K = meta["K"]
    pyramid = meta["pyramid"]
    N, Cin, H, W = x_nchw.shape
    x = jnp.transpose(x_nchw, (0, 2, 3, 1)).astype(jnp.float32)     # NHWC

    # --- backbone (output stride 8) ---
    f = conv2d(x, **params["bb_conv1"], stride=2, padding=1, relu=True)
    f = conv2d(f, **params["bb_conv2"], stride=2, padding=1, relu=True)
    f = conv2d(f, **params["bb_conv3"], stride=2, padding=1, relu=True)
    Hf, Wf = f.shape[1], f.shape[2]

    # --- scene understanding module ---
    # Full-image encoder: batch-sized matmuls -> plain jnp (far too small to
    # tile on the MXU).  Dropout is identity (eval mode).
    pooled = jnp.mean(f, axis=(1, 2))                                # (N, Cb)
    w_fc = params["enc_fc"]["w"].reshape(params["enc_fc"]["w"].shape[0], -1)
    enc = jnp.maximum(pooled @ w_fc.T + params["enc_fc"]["b"], 0.0)
    w_ec = params["enc_conv"]["w"].reshape(params["enc_conv"]["w"].shape[0], -1)
    enc = jnp.maximum(enc @ w_ec.T + params["enc_conv"]["b"], 0.0)   # (N, E)

    # Fold the (spatially constant) encoder map into concat-conv1's per-image
    # bias, and the 2-class logit difference into concat-conv2 (both exact).
    E = enc.shape[-1]
    cmid = params["cat_conv1"]["w"].shape[0]
    w_c1 = params["cat_conv1"]["w"].reshape(cmid, 5 * E).T           # (5E, cmid)
    c1_bias = enc @ w_c1[:E] + params["cat_conv1"]["b"]              # (N, cmid)
    w_c1_br = w_c1[E:].astype(jnp.bfloat16)                          # (4E, cmid)
    w_c2 = params["cat_conv2"]["w"].reshape(2 * K, cmid).T           # (cmid, 2K)
    w_d = (w_c2[:, K:] - w_c2[:, :K]).astype(jnp.bfloat16)           # (cmid, K)
    b_d = (params["cat_conv2"]["b"][K:]
           - params["cat_conv2"]["b"][:K]).reshape(1, K)

    d = scene_understanding_pallas(params, f, c1_bias, w_c1_br, w_d, b_d,
                                   pyramid, K)                       # (N,K,Hf*Wf)

    # --- ordinal regression head ---
    # Upsample only the K-channel logit difference (resize is linear -> exact).
    d = d.reshape(N, K, Hf, Wf)
    d = jax.image.resize(d, (N, K, H, W), method="bilinear")
    # TODO(synk): PyTorch DORN uses align_corners=True bilinear upsampling.
    labels, prob = pallas_ordinal_regression(d.reshape(N, K, H * W))
    labels = labels.reshape(N, 1, H, W)                              # int32
    prob = prob.reshape(N, K, H, W)                                  # f32
    return labels, prob


# -----------------------------------------------------------------------------
if __name__ == "__main__":
    key = jax.random.PRNGKey(0)
    kp, kx = jax.random.split(key)

    # Small synthetic config: K=8 ordinal bins, input 32x32, pyramid scaled
    # down to the small feature map (original default: K=80, 385x513,
    # pyramid=[8,12,16]).
    K = 8
    N, Cin, H, W = 2, 3, 32, 32
    pyramid = [1, 2, 3]

    params, meta = init_dorn_params(kp, K, pyramid, cin=Cin)
    x = jax.random.normal(kx, (N, Cin, H, W), jnp.float32)

    fwd = jax.jit(lambda p, xx: dorn_forward(p, meta, xx))
    labels, prob = fwd(params, x)
    jax.block_until_ready(labels)
    jax.block_until_ready(prob)

    assert labels.shape == (N, 1, H, W) and labels.dtype == jnp.int32
    assert prob.shape == (N, K, H, W) and prob.dtype == jnp.float32
    assert bool(jnp.all((prob >= 0.0) & (prob <= 1.0)))
    assert bool(jnp.all((labels >= 0) & (labels <= K)))

    print("KERNEL_OK")
</pallas_src>

<mosaic_0001>
module attributes {stable_mosaic.version = 11 : i64} {
  func.func @_conv_kernel(%arg0: i32, %arg1: memref<4x17x17x3xf32, #tpu.memory_space<vmem>>, %arg2: memref<27x16xbf16, #tpu.memory_space<vmem>>, %arg3: memref<1x16xf32, #tpu.memory_space<vmem>>, %arg4: memref<1x256x16xf32, #tpu.memory_space<vmem>>) attributes {dimension_semantics = [#tpu.dimension_semantics<parallel>], iteration_bounds = array<i64: 2>, scalar_prefetch = 0 : i64, scratch_operands = 0 : i64, tpu.core_type = #tpu.core_type<tc>, window_params = [{transform_indices = @transform_0, window_bounds = array<i64: 4, 17, 17, 3>}, {pipeline_mode = #tpu.pipeline_mode<synchronous>, transform_indices = @transform_1, window_bounds = array<i64: 27, 16>}, {pipeline_mode = #tpu.pipeline_mode<synchronous>, transform_indices = @transform_2, window_bounds = array<i64: 1, 16>}, {transform_indices = @transform_3, window_bounds = array<i64: 1, 256, 16>}]} {
    %c0 = arith.constant 0 : index
    %c0_0 = arith.constant 0 : index
    %c0_1 = arith.constant 0 : index
    %c0_2 = arith.constant 0 : index
    %0 = vector.load %arg1[%c0, %c0_0, %c0_1, %c0_2] : memref<4x17x17x3xf32, #tpu.memory_space<vmem>>, vector<1x16x16x3xf32>
    %1 = vector.shape_cast %0 : vector<1x16x16x3xf32> to vector<16x16x3xf32>
    %c1 = arith.constant 1 : index
    %c0_3 = arith.constant 0 : index
    %c0_4 = arith.constant 0 : index
    %c0_5 = arith.constant 0 : index
    %2 = vector.load %arg1[%c1, %c0_3, %c0_4, %c0_5] : memref<4x17x17x3xf32, #tpu.memory_space<vmem>>, vector<1x16x16x3xf32>
    %3 = vector.shape_cast %2 : vector<1x16x16x3xf32> to vector<16x16x3xf32>
    %c0_6 = arith.constant 0 : index
    %c0_7 = arith.constant 0 : index
    %c1_8 = arith.constant 1 : index
    %c0_9 = arith.constant 0 : index
    %4 = vector.load %arg1[%c0_6, %c0_7, %c1_8, %c0_9] : memref<4x17x17x3xf32, #tpu.memory_space<vmem>>, vector<1x16x16x3xf32>
    %5 = vector.shape_cast %4 : vector<1x16x16x3xf32> to vector<16x16x3xf32>
    %c2 = arith.constant 2 : index
    %c0_10 = arith.constant 0 : index
    %c0_11 = arith.constant 0 : index
    %c0_12 = arith.constant 0 : index
    %6 = vector.load %arg1[%c2, %c0_10, %c0_11, %c0_12] : memref<4x17x17x3xf32, #tpu.memory_space<vmem>>, vector<1x16x16x3xf32>
    %7 = vector.shape_cast %6 : vector<1x16x16x3xf32> to vector<16x16x3xf32>
    %c3 = arith.constant 3 : index
    %c0_13 = arith.constant 0 : index
    %c0_14 = arith.constant 0 : index
    %c0_15 = arith.constant 0 : index
    %8 = vector.load %arg1[%c3, %c0_13, %c0_14, %c0_15] : memref<4x17x17x3xf32, #tpu.memory_space<vmem>>, vector<1x16x16x3xf32>
    %9 = vector.shape_cast %8 : vector<1x16x16x3xf32> to vector<16x16x3xf32>
    %c2_16 = arith.constant 2 : index
    %c0_17 = arith.constant 0 : index
    %c1_18 = arith.constant 1 : index
    %c0_19 = arith.constant 0 : index
    %10 = vector.load %arg1[%c2_16, %c0_17, %c1_18, %c0_19] : memref<4x17x17x3xf32, #tpu.memory_space<vmem>>, vector<1x16x16x3xf32>
    %11 = vector.shape_cast %10 : vector<1x16x16x3xf32> to vector<16x16x3xf32>
    %c0_20 = arith.constant 0 : index
    %c1_21 = arith.constant 1 : index
    %c0_22 = arith.constant 0 : index
    %c0_23 = arith.constant 0 : index
    %12 = vector.load %arg1[%c0_20, %c1_21, %c0_22, %c0_23] : memref<4x17x17x3xf32, #tpu.memory_space<vmem>>, vector<1x16x16x3xf32>
    %13 = vector.shape_cast %12 : vector<1x16x16x3xf32> to vector<16x16x3xf32>
    %c1_24 = arith.constant 1 : index
    %c1_25 = arith.constant 1 : index
    %c0_26 = arith.constant 0 : index
    %c0_27 = arith.constant 0 : index
    %14 = vector.load %arg1[%c1_24, %c1_25, %c0_26, %c0_27] : memref<4x17x17x3xf32, #tpu.memory_space<vmem>>, vector<1x16x16x3xf32>
    %15 = vector.shape_cast %14 : vector<1x16x16x3xf32> to vector<16x16x3xf32>
    %c0_28 = arith.constant 0 : index
    %c1_29 = arith.constant 1 : index
    %c1_30 = arith.constant 1 : index
    %c0_31 = arith.constant 0 : index
    %16 = vector.load %arg1[%c0_28, %c1_29, %c1_30, %c0_31] : memref<4x17x17x3xf32, #tpu.memory_space<vmem>>, vector<1x16x16x3xf32>
    %17 = vector.shape_cast %16 : vector<1x16x16x3xf32> to vector<16x16x3xf32>
    %cst = arith.constant 0.000000e+00 : f32
    %18 = vector.broadcast %cst : f32 to vector<256x16xf32>
    %19 = vector.shape_cast %1 : vector<16x16x3xf32> to vector<256x3xf32>
    %20 = arith.truncf %19 : vector<256x3xf32> to vector<256x3xbf16>
    %c0_32 = arith.constant 0 : index
    %c0_33 = arith.constant 0 : index
    %21 = vector.load %arg2[%c0_32, %c0_33] : memref<27x16xbf16, #tpu.memory_space<vmem>>, vector<3x16xbf16>
    %cst_34 = arith.constant dense<0.000000e+00> : vector<256x16xf32>
    %22 = tpu.matmul %20, %21, %cst_34 {dimension_numbers = #tpu.dot_dimension_numbers<[1], [0], [0], [1], [0, 0, 1, 1], [], []>} : vector<256x3xbf16>, vector<3x16xbf16>, vector<256x16xf32> -> vector<256x16xf32>
    %23 = arith.addf %18, %22 : vector<256x16xf32>
    %24 = vector.shape_cast %3 : vector<16x16x3xf32> to vector<256x3xf32>
    %25 = arith.truncf %24 : vector<256x3xf32> to vector<256x3xbf16>
    %c3_35 = arith.constant 3 : index
    %c0_36 = arith.constant 0 : index
    %26 = vector.load %arg2[%c3_35, %c0_36] : memref<27x16xbf16, #tpu.memory_space<vmem>>, vector<3x16xbf16>
    %cst_37 = arith.constant dense<0.000000e+00> : vector<256x16xf32>
    %27 = tpu.matmul %25, %26, %cst_37 {dimension_numbers = #tpu.dot_dimension_numbers<[1], [0], [0], [1], [0, 0, 1, 1], [], []>} : vector<256x3xbf16>, vector<3x16xbf16>, vector<256x16xf32> -> vector<256x16xf32>
    %28 = arith.addf %23, %27 : vector<256x16xf32>
    %29 = vector.shape_cast %5 : vector<16x16x3xf32> to vector<256x3xf32>
    %30 = arith.truncf %29 : vector<256x3xf32> to vector<256x3xbf16>
    %c6 = arith.constant 6 : index
    %c0_38 = arith.constant 0 : index
    %31 = vector.load %arg2[%c6, %c0_38] : memref<27x16xbf16, #tpu.memory_space<vmem>>, vector<3x16xbf16>
    %cst_39 = arith.constant dense<0.000000e+00> : vector<256x16xf32>
    %32 = tpu.matmul %30, %31, %cst_39 {dimension_numbers = #tpu.dot_dimension_numbers<[1], [0], [0], [1], [0, 0, 1, 1], [], []>} : vector<256x3xbf16>, vector<3x16xbf16>, vector<256x16xf32> -> vector<256x16xf32>
    %33 = arith.addf %28, %32 : vector<256x16xf32>
    %34 = vector.shape_cast %7 : vector<16x16x3xf32> to vector<256x3xf32>
    %35 = arith.truncf %34 : vector<256x3xf32> to vector<256x3xbf16>
    %c9 = arith.constant 9 : index
    %c0_40 = arith.constant 0 : index
    %36 = vector.load %arg2[%c9, %c0_40] : memref<27x16xbf16, #tpu.memory_space<vmem>>, vector<3x16xbf16>
    %cst_41 = arith.constant dense<0.000000e+00> : vector<256x16xf32>
    %37 = tpu.matmul %35, %36, %cst_41 {dimension_numbers = #tpu.dot_dimension_numbers<[1], [0], [0], [1], [0, 0, 1, 1], [], []>} : vector<256x3xbf16>, vector<3x16xbf16>, vector<256x16xf32> -> vector<256x16xf32>
    %38 = arith.addf %33, %37 : vector<256x16xf32>
    %39 = vector.shape_cast %9 : vector<16x16x3xf32> to vector<256x3xf32>
    %40 = arith.truncf %39 : vector<256x3xf32> to vector<256x3xbf16>
    %c12 = arith.constant 12 : index
    %c0_42 = arith.constant 0 : index
    %41 = vector.load %arg2[%c12, %c0_42] : memref<27x16xbf16, #tpu.memory_space<vmem>>, vector<3x16xbf16>
    %cst_43 = arith.constant dense<0.000000e+00> : vector<256x16xf32>
    %42 = tpu.matmul %40, %41, %cst_43 {dimension_numbers = #tpu.dot_dimension_numbers<[1], [0], [0], [1], [0, 0, 1, 1], [], []>} : vector<256x3xbf16>, vector<3x16xbf16>, vector<256x16xf32> -> vector<256x16xf32>
    %43 = arith.addf %38, %42 : vector<256x16xf32>
    %44 = vector.shape_cast %11 : vector<16x16x3xf32> to vector<256x3xf32>
    %45 = arith.truncf %44 : vector<256x3xf32> to vector<256x3xbf16>
    %c15 = arith.constant 15 : index
    %c0_44 = arith.constant 0 : index
    %46 = vector.load %arg2[%c15, %c0_44] : memref<27x16xbf16, #tpu.memory_space<vmem>>, vector<3x16xbf16>
    %cst_45 = arith.constant dense<0.000000e+00> : vector<256x16xf32>
    %47 = tpu.matmul %45, %46, %cst_45 {dimension_numbers = #tpu.dot_dimension_numbers<[1], [0], [0], [1], [0, 0, 1, 1], [], []>} : vector<256x3xbf16>, vector<3x16xbf16>, vector<256x16xf32> -> vector<256x16xf32>
    %48 = arith.addf %43, %47 : vector<256x16xf32>
    %49 = vector.shape_cast %13 : vector<16x16x3xf32> to vector<256x3xf32>
    %50 = arith.truncf %49 : vector<256x3xf32> to vector<256x3xbf16>
    %c18 = arith.constant 18 : index
    %c0_46 = arith.constant 0 : index
    %51 = vector.load %arg2[%c18, %c0_46] : memref<27x16xbf16, #tpu.memory_space<vmem>>, vector<3x16xbf16>
    %cst_47 = arith.constant dense<0.000000e+00> : vector<256x16xf32>
    %52 = tpu.matmul %50, %51, %cst_47 {dimension_numbers = #tpu.dot_dimension_numbers<[1], [0], [0], [1], [0, 0, 1, 1], [], []>} : vector<256x3xbf16>, vector<3x16xbf16>, vector<256x16xf32> -> vector<256x16xf32>
    %53 = arith.addf %48, %52 : vector<256x16xf32>
    %54 = vector.shape_cast %15 : vector<16x16x3xf32> to vector<256x3xf32>
    %55 = arith.truncf %54 : vector<256x3xf32> to vector<256x3xbf16>
    %c21 = arith.constant 21 : index
    %c0_48 = arith.constant 0 : index
    %56 = vector.load %arg2[%c21, %c0_48] : memref<27x16xbf16, #tpu.memory_space<vmem>>, vector<3x16xbf16>
    %cst_49 = arith.constant dense<0.000000e+00> : vector<256x16xf32>
    %57 = tpu.matmul %55, %56, %cst_49 {dimension_numbers = #tpu.dot_dimension_numbers<[1], [0], [0], [1], [0, 0, 1, 1], [], []>} : vector<256x3xbf16>, vector<3x16xbf16>, vector<256x16xf32> -> vector<256x16xf32>
    %58 = arith.addf %53, %57 : vector<256x16xf32>
    %59 = vector.shape_cast %17 : vector<16x16x3xf32> to vector<256x3xf32>
    %60 = arith.truncf %59 : vector<256x3xf32> to vector<256x3xbf16>
    %c24 = arith.constant 24 : index
    %c0_50 = arith.constant 0 : index
    %61 = vector.load %arg2[%c24, %c0_50] : memref<27x16xbf16, #tpu.memory_space<vmem>>, vector<3x16xbf16>
    %cst_51 = arith.constant dense<0.000000e+00> : vector<256x16xf32>
    %62 = tpu.matmul %60, %61, %cst_51 {dimension_numbers = #tpu.dot_dimension_numbers<[1], [0], [0], [1], [0, 0, 1, 1], [], []>} : vector<256x3xbf16>, vector<3x16xbf16>, vector<256x16xf32> -> vector<256x16xf32>
    %63 = arith.addf %58, %62 : vector<256x16xf32>
    %c0_52 = arith.constant 0 : index
    %c0_53 = arith.constant 0 : index
    %64 = vector.load %arg3[%c0_52, %c0_53] : memref<1x16xf32, #tpu.memory_space<vmem>>, vector<1x16xf32>
    %65 = vector.broadcast %64 : vector<1x16xf32> to vector<256x16xf32>
    %66 = arith.addf %63, %65 : vector<256x16xf32>
    %cst_54 = arith.constant 0.000000e+00 : f32
    %67 = vector.broadcast %cst_54 : f32 to vector<256x16xf32>
    %68 = arith.maximumf %66, %67 : vector<256x16xf32>
    %c0_55 = arith.constant 0 : index
    %c0_56 = arith.constant 0 : index
    %c0_57 = arith.constant 0 : index
    %69 = vector.load %arg4[%c0_55, %c0_56, %c0_57] : memref<1x256x16xf32, #tpu.memory_space<vmem>>, vector<1x256x16xf32>
    %70 = vector.shape_cast %69 : vector<1x256x16xf32> to vector<256x16xf32>
    %71 = vector.shape_cast %68 : vector<256x16xf32> to vector<1x256x16xf32>
    tpu.vector_store %arg4[%c0_55, %c0_56, %c0_57], %71 {strides = array<i32>} : memref<1x256x16xf32, #tpu.memory_space<vmem>>, vector<1x256x16xf32>,
    return
  }
  func.func @transform_0(%arg0: i32) -> (i32, i32, i32, i32) {
    %c0_i32 = arith.constant 0 : i32
    %c0_i32_0 = arith.constant 0 : i32
    %c0_i32_1 = arith.constant 0 : i32
    %c0_i32_2 = arith.constant 0 : i32
    return %arg0, %c0_i32, %c0_i32_0, %c0_i32_1 : i32, i32, i32, i32
  }
  func.func @transform_1(%arg0: i32) -> (i32, i32) {
    %c0_i32 = arith.constant 0 : i32
    %c0_i32_0 = arith.constant 0 : i32
    %c0_i32_1 = arith.constant 0 : i32
    return %c0_i32, %c0_i32_0 : i32, i32
  }
  func.func @transform_2(%arg0: i32) -> (i32, i32) {
    %c0_i32 = arith.constant 0 : i32
    %c0_i32_0 = arith.constant 0 : i32
    %c0_i32_1 = arith.constant 0 : i32
    return %c0_i32, %c0_i32_0 : i32, i32
  }
  func.func @transform_3(%arg0: i32) -> (i32, i32, i32) {
    %c0_i32 = arith.constant 0 : i32
    %c0_i32_0 = arith.constant 0 : i32
    %c0_i32_1 = arith.constant 0 : i32
    return %arg0, %c0_i32, %c0_i32_0 : i32, i32, i32
  }
}

module attributes {stable_mosaic.version = 11 : i64} {
  func.func @_conv_kernel(%arg0: i32, %arg1: memref<4x9x9x16xf32, #tpu.memory_space<vmem>>, %arg2: memref<144x32xbf16, #tpu.memory_space<vmem>>, %arg3: memref<1x32xf32, #tpu.memory_space<vmem>>, %arg4: memref<1x64x32xf32, #tpu.memory_space<vmem>>) attributes {dimension_semantics = [#tpu.dimension_semantics<parallel>], iteration_bounds = array<i64: 2>, scalar_prefetch = 0 : i64, scratch_operands = 0 : i64, tpu.core_type = #tpu.core_type<tc>, window_params = [{transform_indices = @transform_0, window_bounds = array<i64: 4, 9, 9, 16>}, {pipeline_mode = #tpu.pipeline_mode<synchronous>, transform_indices = @transform_1, window_bounds = array<i64: 144, 32>}, {pipeline_mode = #tpu.pipeline_mode<synchronous>, transform_indices = @transform_2, window_bounds = array<i64: 1, 32>}, {transform_indices = @transform_3, window_bounds = array<i64: 1, 64, 32>}]} {
    %c0 = arith.constant 0 : index
    %c0_0 = arith.constant 0 : index
    %c0_1 = arith.constant 0 : index
    %c0_2 = arith.constant 0 : index
    %0 = vector.load %arg1[%c0, %c0_0, %c0_1, %c0_2] : memref<4x9x9x16xf32, #tpu.memory_space<vmem>>, vector<1x8x8x16xf32>
    %1 = vector.shape_cast %0 : vector<1x8x8x16xf32> to vector<8x8x16xf32>
    %c1 = arith.constant 1 : index
    %c0_3 = arith.constant 0 : index
    %c0_4 = arith.constant 0 : index
    %c0_5 = arith.constant 0 : index
    %2 = vector.load %arg1[%c1, %c0_3, %c0_4, %c0_5] : memref<4x9x9x16xf32, #tpu.memory_space<vmem>>, vector<1x8x8x16xf32>
    %3 = vector.shape_cast %2 : vector<1x8x8x16xf32> to vector<8x8x16xf32>
    %c0_6 = arith.constant 0 : index
    %c0_7 = arith.constant 0 : index
    %c1_8 = arith.constant 1 : index
    %c0_9 = arith.constant 0 : index
    %4 = vector.load %arg1[%c0_6, %c0_7, %c1_8, %c0_9] : memref<4x9x9x16xf32, #tpu.memory_space<vmem>>, vector<1x8x8x16xf32>
    %5 = vector.shape_cast %4 : vector<1x8x8x16xf32> to vector<8x8x16xf32>
    %c2 = arith.constant 2 : index
    %c0_10 = arith.constant 0 : index
    %c0_11 = arith.constant 0 : index
    %c0_12 = arith.constant 0 : index
    %6 = vector.load %arg1[%c2, %c0_10, %c0_11, %c0_12] : memref<4x9x9x16xf32, #tpu.memory_space<vmem>>, vector<1x8x8x16xf32>
    %7 = vector.shape_cast %6 : vector<1x8x8x16xf32> to vector<8x8x16xf32>
    %c3 = arith.constant 3 : index
    %c0_13 = arith.constant 0 : index
    %c0_14 = arith.constant 0 : index
    %c0_15 = arith.constant 0 : index
    %8 = vector.load %arg1[%c3, %c0_13, %c0_14, %c0_15] : memref<4x9x9x16xf32, #tpu.memory_space<vmem>>, vector<1x8x8x16xf32>
    %9 = vector.shape_cast %8 : vector<1x8x8x16xf32> to vector<8x8x16xf32>
    %c2_16 = arith.constant 2 : index
    %c0_17 = arith.constant 0 : index
    %c1_18 = arith.constant 1 : index
    %c0_19 = arith.constant 0 : index
    %10 = vector.load %arg1[%c2_16, %c0_17, %c1_18, %c0_19] : memref<4x9x9x16xf32, #tpu.memory_space<vmem>>, vector<1x8x8x16xf32>
    %11 = vector.shape_cast %10 : vector<1x8x8x16xf32> to vector<8x8x16xf32>
    %c0_20 = arith.constant 0 : index
    %c1_21 = arith.constant 1 : index
    %c0_22 = arith.constant 0 : index
    %c0_23 = arith.constant 0 : index
    %12 = vector.load %arg1[%c0_20, %c1_21, %c0_22, %c0_23] : memref<4x9x9x16xf32, #tpu.memory_space<vmem>>, vector<1x8x8x16xf32>
    %13 = vector.shape_cast %12 : vector<1x8x8x16xf32> to vector<8x8x16xf32>
    %c1_24 = arith.constant 1 : index
    %c1_25 = arith.constant 1 : index
    %c0_26 = arith.constant 0 : index
    %c0_27 = arith.constant 0 : index
    %14 = vector.load %arg1[%c1_24, %c1_25, %c0_26, %c0_27] : memref<4x9x9x16xf32, #tpu.memory_space<vmem>>, vector<1x8x8x16xf32>
    %15 = vector.shape_cast %14 : vector<1x8x8x16xf32> to vector<8x8x16xf32>
    %c0_28 = arith.constant 0 : index
    %c1_29 = arith.constant 1 : index
    %c1_30 = arith.constant 1 : index
    %c0_31 = arith.constant 0 : index
    %16 = vector.load %arg1[%c0_28, %c1_29, %c1_30, %c0_31] : memref<4x9x9x16xf32, #tpu.memory_space<vmem>>, vector<1x8x8x16xf32>
    %17 = vector.shape_cast %16 : vector<1x8x8x16xf32> to vector<8x8x16xf32>
    %18 = tpu.concatenate %1, %3, %5, %7, %9, %11, %13, %15, %17 in 2 : vector<8x8x16xf32>, vector<8x8x16xf32>, vector<8x8x16xf32>, vector<8x8x16xf32>, vector<8x8x16xf32>, vector<8x8x16xf32>, vector<8x8x16xf32>, vector<8x8x16xf32>, vector<8x8x16xf32> -> vector<8x8x144xf32>
    %19 = vector.shape_cast %18 : vector<8x8x144xf32> to vector<64x144xf32>
    %20 = arith.truncf %19 : vector<64x144xf32> to vector<64x144xbf16>
    %c0_32 = arith.constant 0 : index
    %c0_33 = arith.constant 0 : index
    %21 = vector.load %arg2[%c0_32, %c0_33] : memref<144x32xbf16, #tpu.memory_space<vmem>>, vector<144x32xbf16>
    %cst = arith.constant dense<0.000000e+00> : vector<64x32xf32>
    %22 = tpu.matmul %20, %21, %cst {dimension_numbers = #tpu.dot_dimension_numbers<[1], [0], [0], [1], [0, 0, 1, 1], [], []>} : vector<64x144xbf16>, vector<144x32xbf16>, vector<64x32xf32> -> vector<64x32xf32>
    %c0_34 = arith.constant 0 : index
    %c0_35 = arith.constant 0 : index
    %23 = vector.load %arg3[%c0_34, %c0_35] : memref<1x32xf32, #tpu.memory_space<vmem>>, vector<1x32xf32>
    %24 = vector.broadcast %23 : vector<1x32xf32> to vector<64x32xf32>
    %25 = arith.addf %22, %24 : vector<64x32xf32>
    %cst_36 = arith.constant 0.000000e+00 : f32
    %26 = vector.broadcast %cst_36 : f32 to vector<64x32xf32>
    %27 = arith.maximumf %25, %26 : vector<64x32xf32>
    %c0_37 = arith.constant 0 : index
    %c0_38 = arith.constant 0 : index
    %c0_39 = arith.constant 0 : index
    %28 = vector.load %arg4[%c0_37, %c0_38, %c0_39] : memref<1x64x32xf32, #tpu.memory_space<vmem>>, vector<1x64x32xf32>
    %29 = vector.shape_cast %28 : vector<1x64x32xf32> to vector<64x32xf32>
    %30 = vector.shape_cast %27 : vector<64x32xf32> to vector<1x64x32xf32>
    tpu.vector_store %arg4[%c0_37, %c0_38, %c0_39], %30 {strides = array<i32>} : memref<1x64x32xf32, #tpu.memory_space<vmem>>, vector<1x64x32xf32>,
    return
  }
  func.func @transform_0(%arg0: i32) -> (i32, i32, i32, i32) {
    %c0_i32 = arith.constant 0 : i32
    %c0_i32_0 = arith.constant 0 : i32
    %c0_i32_1 = arith.constant 0 : i32
    %c0_i32_2 = arith.constant 0 : i32
    return %arg0, %c0_i32, %c0_i32_0, %c0_i32_1 : i32, i32, i32, i32
  }
  func.func @transform_1(%arg0: i32) -> (i32, i32) {
    %c0_i32 = arith.constant 0 : i32
    %c0_i32_0 = arith.constant 0 : i32
    %c0_i32_1 = arith.constant 0 : i32
    return %c0_i32, %c0_i32_0 : i32, i32
  }
  func.func @transform_2(%arg0: i32) -> (i32, i32) {
    %c0_i32 = arith.constant 0 : i32
    %c0_i32_0 = arith.constant 0 : i32
    %c0_i32_1 = arith.constant 0 : i32
    return %c0_i32, %c0_i32_0 : i32, i32
  }
  func.func @transform_3(%arg0: i32) -> (i32, i32, i32) {
    %c0_i32 = arith.constant 0 : i32
    %c0_i32_0 = arith.constant 0 : i32
    %c0_i32_1 = arith.constant 0 : i32
    return %arg0, %c0_i32, %c0_i32_0 : i32, i32, i32
  }
}

module attributes {stable_mosaic.version = 11 : i64} {
  func.func @_conv_kernel(%arg0: i32, %arg1: memref<4x5x5x32xf32, #tpu.memory_space<vmem>>, %arg2: memref<288x64xbf16, #tpu.memory_space<vmem>>, %arg3: memref<1x64xf32, #tpu.memory_space<vmem>>, %arg4: memref<1x16x64xf32, #tpu.memory_space<vmem>>) attributes {dimension_semantics = [#tpu.dimension_semantics<parallel>], iteration_bounds = array<i64: 2>, scalar_prefetch = 0 : i64, scratch_operands = 0 : i64, tpu.core_type = #tpu.core_type<tc>, window_params = [{transform_indices = @transform_0, window_bounds = array<i64: 4, 5, 5, 32>}, {pipeline_mode = #tpu.pipeline_mode<synchronous>, transform_indices = @transform_1, window_bounds = array<i64: 288, 64>}, {pipeline_mode = #tpu.pipeline_mode<synchronous>, transform_indices = @transform_2, window_bounds = array<i64: 1, 64>}, {transform_indices = @transform_3, window_bounds = array<i64: 1, 16, 64>}]} {
    %c0 = arith.constant 0 : index
    %c0_0 = arith.constant 0 : index
    %c0_1 = arith.constant 0 : index
    %c0_2 = arith.constant 0 : index
    %0 = vector.load %arg1[%c0, %c0_0, %c0_1, %c0_2] : memref<4x5x5x32xf32, #tpu.memory_space<vmem>>, vector<1x4x4x32xf32>
    %1 = vector.shape_cast %0 : vector<1x4x4x32xf32> to vector<4x4x32xf32>
    %c1 = arith.constant 1 : index
    %c0_3 = arith.constant 0 : index
    %c0_4 = arith.constant 0 : index
    %c0_5 = arith.constant 0 : index
    %2 = vector.load %arg1[%c1, %c0_3, %c0_4, %c0_5] : memref<4x5x5x32xf32, #tpu.memory_space<vmem>>, vector<1x4x4x32xf32>
    %3 = vector.shape_cast %2 : vector<1x4x4x32xf32> to vector<4x4x32xf32>
    %c0_6 = arith.constant 0 : index
    %c0_7 = arith.constant 0 : index
    %c1_8 = arith.constant 1 : index
    %c0_9 = arith.constant 0 : index
    %4 = vector.load %arg1[%c0_6, %c0_7, %c1_8, %c0_9] : memref<4x5x5x32xf32, #tpu.memory_space<vmem>>, vector<1x4x4x32xf32>
    %5 = vector.shape_cast %4 : vector<1x4x4x32xf32> to vector<4x4x32xf32>
    %c2 = arith.constant 2 : index
    %c0_10 = arith.constant 0 : index
    %c0_11 = arith.constant 0 : index
    %c0_12 = arith.constant 0 : index
    %6 = vector.load %arg1[%c2, %c0_10, %c0_11, %c0_12] : memref<4x5x5x32xf32, #tpu.memory_space<vmem>>, vector<1x4x4x32xf32>
    %7 = vector.shape_cast %6 : vector<1x4x4x32xf32> to vector<4x4x32xf32>
    %c3 = arith.constant 3 : index
    %c0_13 = arith.constant 0 : index
    %c0_14 = arith.constant 0 : index
    %c0_15 = arith.constant 0 : index
    %8 = vector.load %arg1[%c3, %c0_13, %c0_14, %c0_15] : memref<4x5x5x32xf32, #tpu.memory_space<vmem>>, vector<1x4x4x32xf32>
    %9 = vector.shape_cast %8 : vector<1x4x4x32xf32> to vector<4x4x32xf32>
    %c2_16 = arith.constant 2 : index
    %c0_17 = arith.constant 0 : index
    %c1_18 = arith.constant 1 : index
    %c0_19 = arith.constant 0 : index
    %10 = vector.load %arg1[%c2_16, %c0_17, %c1_18, %c0_19] : memref<4x5x5x32xf32, #tpu.memory_space<vmem>>, vector<1x4x4x32xf32>
    %11 = vector.shape_cast %10 : vector<1x4x4x32xf32> to vector<4x4x32xf32>
    %c0_20 = arith.constant 0 : index
    %c1_21 = arith.constant 1 : index
    %c0_22 = arith.constant 0 : index
    %c0_23 = arith.constant 0 : index
    %12 = vector.load %arg1[%c0_20, %c1_21, %c0_22, %c0_23] : memref<4x5x5x32xf32, #tpu.memory_space<vmem>>, vector<1x4x4x32xf32>
    %13 = vector.shape_cast %12 : vector<1x4x4x32xf32> to vector<4x4x32xf32>
    %c1_24 = arith.constant 1 : index
    %c1_25 = arith.constant 1 : index
    %c0_26 = arith.constant 0 : index
    %c0_27 = arith.constant 0 : index
    %14 = vector.load %arg1[%c1_24, %c1_25, %c0_26, %c0_27] : memref<4x5x5x32xf32, #tpu.memory_space<vmem>>, vector<1x4x4x32xf32>
    %15 = vector.shape_cast %14 : vector<1x4x4x32xf32> to vector<4x4x32xf32>
    %c0_28 = arith.constant 0 : index
    %c1_29 = arith.constant 1 : index
    %c1_30 = arith.constant 1 : index
    %c0_31 = arith.constant 0 : index
    %16 = vector.load %arg1[%c0_28, %c1_29, %c1_30, %c0_31] : memref<4x5x5x32xf32, #tpu.memory_space<vmem>>, vector<1x4x4x32xf32>
    %17 = vector.shape_cast %16 : vector<1x4x4x32xf32> to vector<4x4x32xf32>
    %18 = tpu.concatenate %1, %3, %5, %7, %9, %11, %13, %15, %17 in 2 : vector<4x4x32xf32>, vector<4x4x32xf32>, vector<4x4x32xf32>, vector<4x4x32xf32>, vector<4x4x32xf32>, vector<4x4x32xf32>, vector<4x4x32xf32>, vector<4x4x32xf32>, vector<4x4x32xf32> -> vector<4x4x288xf32>
    %19 = vector.shape_cast %18 : vector<4x4x288xf32> to vector<16x288xf32>
    %20 = arith.truncf %19 : vector<16x288xf32> to vector<16x288xbf16>
    %c0_32 = arith.constant 0 : index
    %c0_33 = arith.constant 0 : index
    %21 = vector.load %arg2[%c0_32, %c0_33] : memref<288x64xbf16, #tpu.memory_space<vmem>>, vector<288x64xbf16>
    %cst = arith.constant dense<0.000000e+00> : vector<16x64xf32>
    %22 = tpu.matmul %20, %21, %cst {dimension_numbers = #tpu.dot_dimension_numbers<[1], [0], [0], [1], [0, 0, 1, 1], [], []>} : vector<16x288xbf16>, vector<288x64xbf16>, vector<16x64xf32> -> vector<16x64xf32>
    %c0_34 = arith.constant 0 : index
    %c0_35 = arith.constant 0 : index
    %23 = vector.load %arg3[%c0_34, %c0_35] : memref<1x64xf32, #tpu.memory_space<vmem>>, vector<1x64xf32>
    %24 = vector.broadcast %23 : vector<1x64xf32> to vector<16x64xf32>
    %25 = arith.addf %22, %24 : vector<16x64xf32>
    %cst_36 = arith.constant 0.000000e+00 : f32
    %26 = vector.broadcast %cst_36 : f32 to vector<16x64xf32>
    %27 = arith.maximumf %25, %26 : vector<16x64xf32>
    %c0_37 = arith.constant 0 : index
    %c0_38 = arith.constant 0 : index
    %c0_39 = arith.constant 0 : index
    %28 = vector.load %arg4[%c0_37, %c0_38, %c0_39] : memref<1x16x64xf32, #tpu.memory_space<vmem>>, vector<1x16x64xf32>
    %29 = vector.shape_cast %28 : vector<1x16x64xf32> to vector<16x64xf32>
    %30 = vector.shape_cast %27 : vector<16x64xf32> to vector<1x16x64xf32>
    tpu.vector_store %arg4[%c0_37, %c0_38, %c0_39], %30 {strides = array<i32>} : memref<1x16x64xf32, #tpu.memory_space<vmem>>, vector<1x16x64xf32>,
    return
  }
  func.func @transform_0(%arg0: i32) -> (i32, i32, i32, i32) {
    %c0_i32 = arith.constant 0 : i32
    %c0_i32_0 = arith.constant 0 : i32
    %c0_i32_1 = arith.constant 0 : i32
    %c0_i32_2 = arith.constant 0 : i32
    return %arg0, %c0_i32, %c0_i32_0, %c0_i32_1 : i32, i32, i32, i32
  }
  func.func @transform_1(%arg0: i32) -> (i32, i32) {
    %c0_i32 = arith.constant 0 : i32
    %c0_i32_0 = arith.constant 0 : i32
    %c0_i32_1 = arith.constant 0 : i32
    return %c0_i32, %c0_i32_0 : i32, i32
  }
  func.func @transform_2(%arg0: i32) -> (i32, i32) {
    %c0_i32 = arith.constant 0 : i32
    %c0_i32_0 = arith.constant 0 : i32
    %c0_i32_1 = arith.constant 0 : i32
    return %c0_i32, %c0_i32_0 : i32, i32
  }
  func.func @transform_3(%arg0: i32) -> (i32, i32, i32) {
    %c0_i32 = arith.constant 0 : i32
    %c0_i32_0 = arith.constant 0 : i32
    %c0_i32_1 = arith.constant 0 : i32
    return %arg0, %c0_i32, %c0_i32_0 : i32, i32, i32
  }
}

module attributes {stable_mosaic.version = 11 : i64} {
  func.func @_sum_kernel(%arg0: i32, %arg1: memref<1x10x10x64xf32, #tpu.memory_space<vmem>>, %arg2: memref<64x32xbf16, #tpu.memory_space<vmem>>, %arg3: memref<1x32xf32, #tpu.memory_space<vmem>>, %arg4: memref<32x32xbf16, #tpu.memory_space<vmem>>, %arg5: memref<1x32xf32, #tpu.memory_space<vmem>>, %arg6: memref<3x576x32xbf16, #tpu.memory_space<vmem>>, %arg7: memref<3x1x32xf32, #tpu.memory_space<vmem>>, %arg8: memref<3x32x32xbf16, #tpu.memory_space<vmem>>, %arg9: memref<3x1x32xf32, #tpu.memory_space<vmem>>, %arg10: memref<128x64xbf16, #tpu.memory_space<vmem>>, %arg11: memref<1x1x64xf32, #tpu.memory_space<vmem>>, %arg12: memref<64x8xbf16, #tpu.memory_space<vmem>>, %arg13: memref<1x8xf32, #tpu.memory_space<vmem>>, %arg14: memref<1x8x16xf32, #tpu.memory_space<vmem>>) attributes {dimension_semantics = [#tpu.dimension_semantics<parallel>], iteration_bounds = array<i64: 2>, scalar_prefetch = 0 : i64, scratch_operands = 0 : i64, tpu.core_type = #tpu.core_type<tc>, window_params = [{transform_indices = @transform_0, window_bounds = array<i64: 1, 10, 10, 64>}, {pipeline_mode = #tpu.pipeline_mode<synchronous>, transform_indices = @transform_1, window_bounds = array<i64: 64, 32>}, {pipeline_mode = #tpu.pipeline_mode<synchronous>, transform_indices = @transform_2, window_bounds = array<i64: 1, 32>}, {pipeline_mode = #tpu.pipeline_mode<synchronous>, transform_indices = @transform_3, window_bounds = array<i64: 32, 32>}, {pipeline_mode = #tpu.pipeline_mode<synchronous>, transform_indices = @transform_4, window_bounds = array<i64: 1, 32>}, {pipeline_mode = #tpu.pipeline_mode<synchronous>, transform_indices = @transform_5, window_bounds = array<i64: 3, 576, 32>}, {pipeline_mode = #tpu.pipeline_mode<synchronous>, transform_indices = @transform_6, window_bounds = array<i64: 3, 1, 32>}, {pipeline_mode = #tpu.pipeline_mode<synchronous>, transform_indices = @transform_7, window_bounds = array<i64: 3, 32, 32>}, {pipeline_mode = #tpu.pipeline_mode<synchronous>, transform_indices = @transform_8, window_bounds = array<i64: 3, 1, 32>}, {pipeline_mode = #tpu.pipeline_mode<synchronous>, transform_indices = @transform_9, window_bounds = array<i64: 128, 64>}, {transform_indices = @transform_10, window_bounds = array<i64: 1, 1, 64>}, {pipeline_mode = #tpu.pipeline_mode<synchronous>, transform_indices = @transform_11, window_bounds = array<i64: 64, 8>}, {pipeline_mode = #tpu.pipeline_mode<synchronous>, transform_indices = @transform_12, window_bounds = array<i64: 1, 8>}, {transform_indices = @transform_13, window_bounds = array<i64: 1, 8, 16>}]} {
    %c0 = arith.constant 0 : index
    %c3 = arith.constant 3 : index
    %c3_0 = arith.constant 3 : index
    %c0_1 = arith.constant 0 : index
    %0 = vector.load %arg1[%c0, %c3, %c3_0, %c0_1] : memref<1x10x10x64xf32, #tpu.memory_space<vmem>>, vector<1x4x4x64xf32>
    %1 = vector.shape_cast %0 : vector<1x4x4x64xf32> to vector<4x4x64xf32>
    %2 = vector.shape_cast %1 : vector<4x4x64xf32> to vector<16x64xf32>
    %3 = arith.truncf %2 : vector<16x64xf32> to vector<16x64xbf16>
    %c0_2 = arith.constant 0 : index
    %c0_3 = arith.constant 0 : index
    %4 = vector.load %arg2[%c0_2, %c0_3] : memref<64x32xbf16, #tpu.memory_space<vmem>>, vector<64x32xbf16>
    %c0_4 = arith.constant 0 : index
    %c0_5 = arith.constant 0 : index
    %5 = vector.load %arg3[%c0_4, %c0_5] : memref<1x32xf32, #tpu.memory_space<vmem>>, vector<1x32xf32>
    %cst = arith.constant dense<0.000000e+00> : vector<16x32xf32>
    %6 = tpu.matmul %3, %4, %cst {dimension_numbers = #tpu.dot_dimension_numbers<[1], [0], [0], [1], [0, 0, 1, 1], [], []>} : vector<16x64xbf16>, vector<64x32xbf16>, vector<16x32xf32> -> vector<16x32xf32>
    %7 = vector.broadcast %5 : vector<1x32xf32> to vector<16x32xf32>
    %8 = arith.addf %6, %7 : vector<16x32xf32>
    %cst_6 = arith.constant 0.000000e+00 : f32
    %9 = vector.broadcast %cst_6 : f32 to vector<16x32xf32>
    %10 = arith.maximumf %8, %9 : vector<16x32xf32>
    %11 = arith.truncf %10 : vector<16x32xf32> to vector<16x32xbf16>
    %c0_7 = arith.constant 0 : index
    %c0_8 = arith.constant 0 : index
    %12 = vector.load %arg4[%c0_7, %c0_8] : memref<32x32xbf16, #tpu.memory_space<vmem>>, vector<32x32xbf16>
    %c0_9 = arith.constant 0 : index
    %c0_10 = arith.constant 0 : index
    %13 = vector.load %arg5[%c0_9, %c0_10] : memref<1x32xf32, #tpu.memory_space<vmem>>, vector<1x32xf32>
    %cst_11 = arith.constant dense<0.000000e+00> : vector<16x32xf32>
    %14 = tpu.matmul %11, %12, %cst_11 {dimension_numbers = #tpu.dot_dimension_numbers<[1], [0], [0], [1], [0, 0, 1, 1], [], []>} : vector<16x32xbf16>, vector<32x32xbf16>, vector<16x32xf32> -> vector<16x32xf32>
    %15 = vector.broadcast %13 : vector<1x32xf32> to vector<16x32xf32>
    %16 = arith.addf %14, %15 : vector<16x32xf32>
    %cst_12 = arith.constant 0.000000e+00 : f32
    %17 = vector.broadcast %cst_12 : f32 to vector<16x32xf32>
    %18 = arith.maximumf %16, %17 : vector<16x32xf32>
    %c0_13 = arith.constant 0 : index
    %c2 = arith.constant 2 : index
    %c2_14 = arith.constant 2 : index
    %c0_15 = arith.constant 0 : index
    %19 = vector.load %arg1[%c0_13, %c2, %c2_14, %c0_15] : memref<1x10x10x64xf32, #tpu.memory_space<vmem>>, vector<1x4x4x64xf32>
    %20 = vector.shape_cast %19 : vector<1x4x4x64xf32> to vector<4x4x64xf32>
    %c0_16 = arith.constant 0 : index
    %c2_17 = arith.constant 2 : index
    %c3_18 = arith.constant 3 : index
    %c0_19 = arith.constant 0 : index
    %21 = vector.load %arg1[%c0_16, %c2_17, %c3_18, %c0_19] : memref<1x10x10x64xf32, #tpu.memory_space<vmem>>, vector<1x4x4x64xf32>
    %22 = vector.shape_cast %21 : vector<1x4x4x64xf32> to vector<4x4x64xf32>
    %c0_20 = arith.constant 0 : index
    %c2_21 = arith.constant 2 : index
    %c4 = arith.constant 4 : index
    %c0_22 = arith.constant 0 : index
    %23 = vector.load %arg1[%c0_20, %c2_21, %c4, %c0_22] : memref<1x10x10x64xf32, #tpu.memory_space<vmem>>, vector<1x4x4x64xf32>
    %24 = vector.shape_cast %23 : vector<1x4x4x64xf32> to vector<4x4x64xf32>
    %c0_23 = arith.constant 0 : index
    %c3_24 = arith.constant 3 : index
    %c2_25 = arith.constant 2 : index
    %c0_26 = arith.constant 0 : index
    %25 = vector.load %arg1[%c0_23, %c3_24, %c2_25, %c0_26] : memref<1x10x10x64xf32, #tpu.memory_space<vmem>>, vector<1x4x4x64xf32>
    %26 = vector.shape_cast %25 : vector<1x4x4x64xf32> to vector<4x4x64xf32>
    %c0_27 = arith.constant 0 : index
    %c3_28 = arith.constant 3 : index
    %c3_29 = arith.constant 3 : index
    %c0_30 = arith.constant 0 : index
    %27 = vector.load %arg1[%c0_27, %c3_28, %c3_29, %c0_30] : memref<1x10x10x64xf32, #tpu.memory_space<vmem>>, vector<1x4x4x64xf32>
    %28 = vector.shape_cast %27 : vector<1x4x4x64xf32> to vector<4x4x64xf32>
    %c0_31 = arith.constant 0 : index
    %c3_32 = arith.constant 3 : index
    %c4_33 = arith.constant 4 : index
    %c0_34 = arith.constant 0 : index
    %29 = vector.load %arg1[%c0_31, %c3_32, %c4_33, %c0_34] : memref<1x10x10x64xf32, #tpu.memory_space<vmem>>, vector<1x4x4x64xf32>
    %30 = vector.shape_cast %29 : vector<1x4x4x64xf32> to vector<4x4x64xf32>
    %c0_35 = arith.constant 0 : index
    %c4_36 = arith.constant 4 : index
    %c2_37 = arith.constant 2 : index
    %c0_38 = arith.constant 0 : index
    %31 = vector.load %arg1[%c0_35, %c4_36, %c2_37, %c0_38] : memref<1x10x10x64xf32, #tpu.memory_space<vmem>>, vector<1x4x4x64xf32>
    %32 = vector.shape_cast %31 : vector<1x4x4x64xf32> to vector<4x4x64xf32>
    %c0_39 = arith.constant 0 : index
    %c4_40 = arith.constant 4 : index
    %c3_41 = arith.constant 3 : index
    %c0_42 = arith.constant 0 : index
    %33 = vector.load %arg1[%c0_39, %c4_40, %c3_41, %c0_42] : memref<1x10x10x64xf32, #tpu.memory_space<vmem>>, vector<1x4x4x64xf32>
    %34 = vector.shape_cast %33 : vector<1x4x4x64xf32> to vector<4x4x64xf32>
    %c0_43 = arith.constant 0 : index
    %c4_44 = arith.constant 4 : index
    %c4_45 = arith.constant 4 : index
    %c0_46 = arith.constant 0 : index
    %35 = vector.load %arg1[%c0_43, %c4_44, %c4_45, %c0_46] : memref<1x10x10x64xf32, #tpu.memory_space<vmem>>, vector<1x4x4x64xf32>
    %36 = vector.shape_cast %35 : vector<1x4x4x64xf32> to vector<4x4x64xf32>
    %37 = tpu.concatenate %20, %22, %24, %26, %28, %30, %32, %34, %36 in 2 : vector<4x4x64xf32>, vector<4x4x64xf32>, vector<4x4x64xf32>, vector<4x4x64xf32>, vector<4x4x64xf32>, vector<4x4x64xf32>, vector<4x4x64xf32>, vector<4x4x64xf32>, vector<4x4x64xf32> -> vector<4x4x576xf32>
    %38 = vector.shape_cast %37 : vector<4x4x576xf32> to vector<16x576xf32>
    %39 = arith.truncf %38 : vector<16x576xf32> to vector<16x576xbf16>
    %c0_47 = arith.constant 0 : index
    %c0_48 = arith.constant 0 : index
    %c0_49 = arith.constant 0 : index
    %40 = vector.load %arg6[%c0_47, %c0_48, %c0_49] : memref<3x576x32xbf16, #tpu.memory_space<vmem>>, vector<1x576x32xbf16>
    %41 = vector.shape_cast %40 : vector<1x576x32xbf16> to vector<576x32xbf16>
    %c0_50 = arith.constant 0 : index
    %c0_51 = arith.constant 0 : index
    %c0_52 = arith.constant 0 : index
    %42 = vector.load %arg7[%c0_50, %c0_51, %c0_52] : memref<3x1x32xf32, #tpu.memory_space<vmem>>, vector<1x1x32xf32>
    %43 = vector.shape_cast %42 : vector<1x1x32xf32> to vector<1x32xf32>
    %cst_53 = arith.constant dense<0.000000e+00> : vector<16x32xf32>
    %44 = tpu.matmul %39, %41, %cst_53 {dimension_numbers = #tpu.dot_dimension_numbers<[1], [0], [0], [1], [0, 0, 1, 1], [], []>} : vector<16x576xbf16>, vector<576x32xbf16>, vector<16x32xf32> -> vector<16x32xf32>
    %45 = vector.broadcast %43 : vector<1x32xf32> to vector<16x32xf32>
    %46 = arith.addf %44, %45 : vector<16x32xf32>
    %cst_54 = arith.constant 0.000000e+00 : f32
    %47 = vector.broadcast %cst_54 : f32 to vector<16x32xf32>
    %48 = arith.maximumf %46, %47 : vector<16x32xf32>
    %49 = arith.truncf %48 : vector<16x32xf32> to vector<16x32xbf16>
    %c0_55 = arith.constant 0 : index
    %c0_56 = arith.constant 0 : index
    %c0_57 = arith.constant 0 : index
    %50 = vector.load %arg8[%c0_55, %c0_56, %c0_57] : memref<3x32x32xbf16, #tpu.memory_space<vmem>>, vector<1x32x32xbf16>
    %51 = vector.shape_cast %50 : vector<1x32x32xbf16> to vector<32x32xbf16>
    %c0_58 = arith.constant 0 : index
    %c0_59 = arith.constant 0 : index
    %c0_60 = arith.constant 0 : index
    %52 = vector.load %arg9[%c0_58, %c0_59, %c0_60] : memref<3x1x32xf32, #tpu.memory_space<vmem>>, vector<1x1x32xf32>
    %53 = vector.shape_cast %52 : vector<1x1x32xf32> to vector<1x32xf32>
    %cst_61 = arith.constant dense<0.000000e+00> : vector<16x32xf32>
    %54 = tpu.matmul %49, %51, %cst_61 {dimension_numbers = #tpu.dot_dimension_numbers<[1], [0], [0], [1], [0, 0, 1, 1], [], []>} : vector<16x32xbf16>, vector<32x32xbf16>, vector<16x32xf32> -> vector<16x32xf32>
    %55 = vector.broadcast %53 : vector<1x32xf32> to vector<16x32xf32>
    %56 = arith.addf %54, %55 : vector<16x32xf32>
    %cst_62 = arith.constant 0.000000e+00 : f32
    %57 = vector.broadcast %cst_62 : f32 to vector<16x32xf32>
    %58 = arith.maximumf %56, %57 : vector<16x32xf32>
    %c0_63 = arith.constant 0 : index
    %c1 = arith.constant 1 : index
    %c1_64 = arith.constant 1 : index
    %c0_65 = arith.constant 0 : index
    %59 = vector.load %arg1[%c0_63, %c1, %c1_64, %c0_65] : memref<1x10x10x64xf32, #tpu.memory_space<vmem>>, vector<1x4x4x64xf32>
    %60 = vector.shape_cast %59 : vector<1x4x4x64xf32> to vector<4x4x64xf32>
    %c0_66 = arith.constant 0 : index
    %c1_67 = arith.constant 1 : index
    %c3_68 = arith.constant 3 : index
    %c0_69 = arith.constant 0 : index
    %61 = vector.load %arg1[%c0_66, %c1_67, %c3_68, %c0_69] : memref<1x10x10x64xf32, #tpu.memory_space<vmem>>, vector<1x4x4x64xf32>
    %62 = vector.shape_cast %61 : vector<1x4x4x64xf32> to vector<4x4x64xf32>
    %c0_70 = arith.constant 0 : index
    %c1_71 = arith.constant 1 : index
    %c5 = arith.constant 5 : index
    %c0_72 = arith.constant 0 : index
    %63 = vector.load %arg1[%c0_70, %c1_71, %c5, %c0_72] : memref<1x10x10x64xf32, #tpu.memory_space<vmem>>, vector<1x4x4x64xf32>
    %64 = vector.shape_cast %63 : vector<1x4x4x64xf32> to vector<4x4x64xf32>
    %c0_73 = arith.constant 0 : index
    %c3_74 = arith.constant 3 : index
    %c1_75 = arith.constant 1 : index
    %c0_76 = arith.constant 0 : index
    %65 = vector.load %arg1[%c0_73, %c3_74, %c1_75, %c0_76] : memref<1x10x10x64xf32, #tpu.memory_space<vmem>>, vector<1x4x4x64xf32>
    %66 = vector.shape_cast %65 : vector<1x4x4x64xf32> to vector<4x4x64xf32>
    %c0_77 = arith.constant 0 : index
    %c3_78 = arith.constant 3 : index
    %c3_79 = arith.constant 3 : index
    %c0_80 = arith.constant 0 : index
    %67 = vector.load %arg1[%c0_77, %c3_78, %c3_79, %c0_80] : memref<1x10x10x64xf32, #tpu.memory_space<vmem>>, vector<1x4x4x64xf32>
    %68 = vector.shape_cast %67 : vector<1x4x4x64xf32> to vector<4x4x64xf32>
    %c0_81 = arith.constant 0 : index
    %c3_82 = arith.constant 3 : index
    %c5_83 = arith.constant 5 : index
    %c0_84 = arith.constant 0 : index
    %69 = vector.load %arg1[%c0_81, %c3_82, %c5_83, %c0_84] : memref<1x10x10x64xf32, #tpu.memory_space<vmem>>, vector<1x4x4x64xf32>
    %70 = vector.shape_cast %69 : vector<1x4x4x64xf32> to vector<4x4x64xf32>
    %c0_85 = arith.constant 0 : index
    %c5_86 = arith.constant 5 : index
    %c1_87 = arith.constant 1 : index
    %c0_88 = arith.constant 0 : index
    %71 = vector.load %arg1[%c0_85, %c5_86, %c1_87, %c0_88] : memref<1x10x10x64xf32, #tpu.memory_space<vmem>>, vector<1x4x4x64xf32>
    %72 = vector.shape_cast %71 : vector<1x4x4x64xf32> to vector<4x4x64xf32>
    %c0_89 = arith.constant 0 : index
    %c5_90 = arith.constant 5 : index
    %c3_91 = arith.constant 3 : index
    %c0_92 = arith.constant 0 : index
    %73 = vector.load %arg1[%c0_89, %c5_90, %c3_91, %c0_92] : memref<1x10x10x64xf32, #tpu.memory_space<vmem>>, vector<1x4x4x64xf32>
    %74 = vector.shape_cast %73 : vector<1x4x4x64xf32> to vector<4x4x64xf32>
    %c0_93 = arith.constant 0 : index
    %c5_94 = arith.constant 5 : index
    %c5_95 = arith.constant 5 : index
    %c0_96 = arith.constant 0 : index
    %75 = vector.load %arg1[%c0_93, %c5_94, %c5_95, %c0_96] : memref<1x10x10x64xf32, #tpu.memory_space<vmem>>, vector<1x4x4x64xf32>
    %76 = vector.shape_cast %75 : vector<1x4x4x64xf32> to vector<4x4x64xf32>
    %77 = tpu.concatenate %60, %62, %64, %66, %68, %70, %72, %74, %76 in 2 : vector<4x4x64xf32>, vector<4x4x64xf32>, vector<4x4x64xf32>, vector<4x4x64xf32>, vector<4x4x64xf32>, vector<4x4x64xf32>, vector<4x4x64xf32>, vector<4x4x64xf32>, vector<4x4x64xf32> -> vector<4x4x576xf32>
    %78 = vector.shape_cast %77 : vector<4x4x576xf32> to vector<16x576xf32>
    %79 = arith.truncf %78 : vector<16x576xf32> to vector<16x576xbf16>
    %c1_97 = arith.constant 1 : index
    %c0_98 = arith.constant 0 : index
    %c0_99 = arith.constant 0 : index
    %80 = vector.load %arg6[%c1_97, %c0_98, %c0_99] : memref<3x576x32xbf16, #tpu.memory_space<vmem>>, vector<1x576x32xbf16>
    %81 = vector.shape_cast %80 : vector<1x576x32xbf16> to vector<576x32xbf16>
    %c1_100 = arith.constant 1 : index
    %c0_101 = arith.constant 0 : index
    %c0_102 = arith.constant 0 : index
    %82 = vector.load %arg7[%c1_100, %c0_101, %c0_102] : memref<3x1x32xf32, #tpu.memory_space<vmem>>, vector<1x1x32xf32>
    %83 = vector.shape_cast %82 : vector<1x1x32xf32> to vector<1x32xf32>
    %cst_103 = arith.constant dense<0.000000e+00> : vector<16x32xf32>
    %84 = tpu.matmul %79, %81, %cst_103 {dimension_numbers = #tpu.dot_dimension_numbers<[1], [0], [0], [1], [0, 0, 1, 1], [], []>} : vector<16x576xbf16>, vector<576x32xbf16>, vector<16x32xf32> -> vector<16x32xf32>
    %85 = vector.broadcast %83 : vector<1x32xf32> to vector<16x32xf32>
    %86 = arith.addf %84, %85 : vector<16x32xf32>
    %cst_104 = arith.constant 0.000000e+00 : f32
    %87 = vector.broadcast %cst_104 : f32 to vector<16x32xf32>
    %88 = arith.maximumf %86, %87 : vector<16x32xf32>
    %89 = arith.truncf %88 : vector<16x32xf32> to vector<16x32xbf16>
    %c1_105 = arith.constant 1 : index
    %c0_106 = arith.constant 0 : index
    %c0_107 = arith.constant 0 : index
    %90 = vector.load %arg8[%c1_105, %c0_106, %c0_107] : memref<3x32x32xbf16, #tpu.memory_space<vmem>>, vector<1x32x32xbf16>
    %91 = vector.shape_cast %90 : vector<1x32x32xbf16> to vector<32x32xbf16>
    %c1_108 = arith.constant 1 : index
    %c0_109 = arith.constant 0 : index
    %c0_110 = arith.constant 0 : index
    %92 = vector.load %arg9[%c1_108, %c0_109, %c0_110] : memref<3x1x32xf32, #tpu.memory_space<vmem>>, vector<1x1x32xf32>
    %93 = vector.shape_cast %92 : vector<1x1x32xf32> to vector<1x32xf32>
    %cst_111 = arith.constant dense<0.000000e+00> : vector<16x32xf32>
    %94 = tpu.matmul %89, %91, %cst_111 {dimension_numbers = #tpu.dot_dimension_numbers<[1], [0], [0], [1], [0, 0, 1, 1], [], []>} : vector<16x32xbf16>, vector<32x32xbf16>, vector<16x32xf32> -> vector<16x32xf32>
    %95 = vector.broadcast %93 : vector<1x32xf32> to vector<16x32xf32>
    %96 = arith.addf %94, %95 : vector<16x32xf32>
    %cst_112 = arith.constant 0.000000e+00 : f32
    %97 = vector.broadcast %cst_112 : f32 to vector<16x32xf32>
    %98 = arith.maximumf %96, %97 : vector<16x32xf32>
    %c0_113 = arith.constant 0 : index
    %c0_114 = arith.constant 0 : index
    %c0_115 = arith.constant 0 : index
    %c0_116 = arith.constant 0 : index
    %99 = vector.load %arg1[%c0_113, %c0_114, %c0_115, %c0_116] : memref<1x10x10x64xf32, #tpu.memory_space<vmem>>, vector<1x4x4x64xf32>
    %100 = vector.shape_cast %99 : vector<1x4x4x64xf32> to vector<4x4x64xf32>
    %c0_117 = arith.constant 0 : index
    %c0_118 = arith.constant 0 : index
    %c3_119 = arith.constant 3 : index
    %c0_120 = arith.constant 0 : index
    %101 = vector.load %arg1[%c0_117, %c0_118, %c3_119, %c0_120] : memref<1x10x10x64xf32, #tpu.memory_space<vmem>>, vector<1x4x4x64xf32>
    %102 = vector.shape_cast %101 : vector<1x4x4x64xf32> to vector<4x4x64xf32>
    %c0_121 = arith.constant 0 : index
    %c0_122 = arith.constant 0 : index
    %c6 = arith.constant 6 : index
    %c0_123 = arith.constant 0 : index
    %103 = vector.load %arg1[%c0_121, %c0_122, %c6, %c0_123] : memref<1x10x10x64xf32, #tpu.memory_space<vmem>>, vector<1x4x4x64xf32>
    %104 = vector.shape_cast %103 : vector<1x4x4x64xf32> to vector<4x4x64xf32>
    %c0_124 = arith.constant 0 : index
    %c3_125 = arith.constant 3 : index
    %c0_126 = arith.constant 0 : index
    %c0_127 = arith.constant 0 : index
    %105 = vector.load %arg1[%c0_124, %c3_125, %c0_126, %c0_127] : memref<1x10x10x64xf32, #tpu.memory_space<vmem>>, vector<1x4x4x64xf32>
    %106 = vector.shape_cast %105 : vector<1x4x4x64xf32> to vector<4x4x64xf32>
    %c0_128 = arith.constant 0 : index
    %c3_129 = arith.constant 3 : index
    %c3_130 = arith.constant 3 : index
    %c0_131 = arith.constant 0 : index
    %107 = vector.load %arg1[%c0_128, %c3_129, %c3_130, %c0_131] : memref<1x10x10x64xf32, #tpu.memory_space<vmem>>, vector<1x4x4x64xf32>
    %108 = vector.shape_cast %107 : vector<1x4x4x64xf32> to vector<4x4x64xf32>
    %c0_132 = arith.constant 0 : index
    %c3_133 = arith.constant 3 : index
    %c6_134 = arith.constant 6 : index
    %c0_135 = arith.constant 0 : index
    %109 = vector.load %arg1[%c0_132, %c3_133, %c6_134, %c0_135] : memref<1x10x10x64xf32, #tpu.memory_space<vmem>>, vector<1x4x4x64xf32>
    %110 = vector.shape_cast %109 : vector<1x4x4x64xf32> to vector<4x4x64xf32>
    %c0_136 = arith.constant 0 : index
    %c6_137 = arith.constant 6 : index
    %c0_138 = arith.constant 0 : index
    %c0_139 = arith.constant 0 : index
    %111 = vector.load %arg1[%c0_136, %c6_137, %c0_138, %c0_139] : memref<1x10x10x64xf32, #tpu.memory_space<vmem>>, vector<1x4x4x64xf32>
    %112 = vector.shape_cast %111 : vector<1x4x4x64xf32> to vector<4x4x64xf32>
    %c0_140 = arith.constant 0 : index
    %c6_141 = arith.constant 6 : index
    %c3_142 = arith.constant 3 : index
    %c0_143 = arith.constant 0 : index
    %113 = vector.load %arg1[%c0_140, %c6_141, %c3_142, %c0_143] : memref<1x10x10x64xf32, #tpu.memory_space<vmem>>, vector<1x4x4x64xf32>
    %114 = vector.shape_cast %113 : vector<1x4x4x64xf32> to vector<4x4x64xf32>
    %c0_144 = arith.constant 0 : index
    %c6_145 = arith.constant 6 : index
    %c6_146 = arith.constant 6 : index
    %c0_147 = arith.constant 0 : index
    %115 = vector.load %arg1[%c0_144, %c6_145, %c6_146, %c0_147] : memref<1x10x10x64xf32, #tpu.memory_space<vmem>>, vector<1x4x4x64xf32>
    %116 = vector.shape_cast %115 : vector<1x4x4x64xf32> to vector<4x4x64xf32>
    %117 = tpu.concatenate %100, %102, %104, %106, %108, %110, %112, %114, %116 in 2 : vector<4x4x64xf32>, vector<4x4x64xf32>, vector<4x4x64xf32>, vector<4x4x64xf32>, vector<4x4x64xf32>, vector<4x4x64xf32>, vector<4x4x64xf32>, vector<4x4x64xf32>, vector<4x4x64xf32> -> vector<4x4x576xf32>
    %118 = vector.shape_cast %117 : vector<4x4x576xf32> to vector<16x576xf32>
    %119 = arith.truncf %118 : vector<16x576xf32> to vector<16x576xbf16>
    %c2_148 = arith.constant 2 : index
    %c0_149 = arith.constant 0 : index
    %c0_150 = arith.constant 0 : index
    %120 = vector.load %arg6[%c2_148, %c0_149, %c0_150] : memref<3x576x32xbf16, #tpu.memory_space<vmem>>, vector<1x576x32xbf16>
    %121 = vector.shape_cast %120 : vector<1x576x32xbf16> to vector<576x32xbf16>
    %c2_151 = arith.constant 2 : index
    %c0_152 = arith.constant 0 : index
    %c0_153 = arith.constant 0 : index
    %122 = vector.load %arg7[%c2_151, %c0_152, %c0_153] : memref<3x1x32xf32, #tpu.memory_space<vmem>>, vector<1x1x32xf32>
    %123 = vector.shape_cast %122 : vector<1x1x32xf32> to vector<1x32xf32>
    %cst_154 = arith.constant dense<0.000000e+00> : vector<16x32xf32>
    %124 = tpu.matmul %119, %121, %cst_154 {dimension_numbers = #tpu.dot_dimension_numbers<[1], [0], [0], [1], [0, 0, 1, 1], [], []>} : vector<16x576xbf16>, vector<576x32xbf16>, vector<16x32xf32> -> vector<16x32xf32>
    %125 = vector.broadcast %123 : vector<1x32xf32> to vector<16x32xf32>
    %126 = arith.addf %124, %125 : vector<16x32xf32>
    %cst_155 = arith.constant 0.000000e+00 : f32
    %127 = vector.broadcast %cst_155 : f32 to vector<16x32xf32>
    %128 = arith.maximumf %126, %127 : vector<16x32xf32>
    %129 = arith.truncf %128 : vector<16x32xf32> to vector<16x32xbf16>
    %c2_156 = arith.constant 2 : index
    %c0_157 = arith.constant 0 : index
    %c0_158 = arith.constant 0 : index
    %130 = vector.load %arg8[%c2_156, %c0_157, %c0_158] : memref<3x32x32xbf16, #tpu.memory_space<vmem>>, vector<1x32x32xbf16>
    %131 = vector.shape_cast %130 : vector<1x32x32xbf16> to vector<32x32xbf16>
    %c2_159 = arith.constant 2 : index
    %c0_160 = arith.constant 0 : index
    %c0_161 = arith.constant 0 : index
    %132 = vector.load %arg9[%c2_159, %c0_160, %c0_161] : memref<3x1x32xf32, #tpu.memory_space<vmem>>, vector<1x1x32xf32>
    %133 = vector.shape_cast %132 : vector<1x1x32xf32> to vector<1x32xf32>
    %cst_162 = arith.constant dense<0.000000e+00> : vector<16x32xf32>
    %134 = tpu.matmul %129, %131, %cst_162 {dimension_numbers = #tpu.dot_dimension_numbers<[1], [0], [0], [1], [0, 0, 1, 1], [], []>} : vector<16x32xbf16>, vector<32x32xbf16>, vector<16x32xf32> -> vector<16x32xf32>
    %135 = vector.broadcast %133 : vector<1x32xf32> to vector<16x32xf32>
    %136 = arith.addf %134, %135 : vector<16x32xf32>
    %cst_163 = arith.constant 0.000000e+00 : f32
    %137 = vector.broadcast %cst_163 : f32 to vector<16x32xf32>
    %138 = arith.maximumf %136, %137 : vector<16x32xf32>
    %139 = tpu.concatenate %18, %58, %98, %138 in 1 : vector<16x32xf32>, vector<16x32xf32>, vector<16x32xf32>, vector<16x32xf32> -> vector<16x128xf32>
    %140 = arith.truncf %139 : vector<16x128xf32> to vector<16x128xbf16>
    %c0_164 = arith.constant 0 : index
    %c0_165 = arith.constant 0 : index
    %141 = vector.load %arg10[%c0_164, %c0_165] : memref<128x64xbf16, #tpu.memory_space<vmem>>, vector<128x64xbf16>
    %c0_166 = arith.constant 0 : index
    %c0_167 = arith.constant 0 : index
    %c0_168 = arith.constant 0 : index
    %142 = vector.load %arg11[%c0_166, %c0_167, %c0_168] : memref<1x1x64xf32, #tpu.memory_space<vmem>>, vector<1x1x64xf32>
    %143 = vector.shape_cast %142 : vector<1x1x64xf32> to vector<1x64xf32>
    %cst_169 = arith.constant dense<0.000000e+00> : vector<16x64xf32>
    %144 = tpu.matmul %140, %141, %cst_169 {dimension_numbers = #tpu.dot_dimension_numbers<[1], [0], [0], [1], [0, 0, 1, 1], [], []>} : vector<16x128xbf16>, vector<128x64xbf16>, vector<16x64xf32> -> vector<16x64xf32>
    %145 = vector.broadcast %143 : vector<1x64xf32> to vector<16x64xf32>
    %146 = arith.addf %144, %145 : vector<16x64xf32>
    %cst_170 = arith.constant 0.000000e+00 : f32
    %147 = vector.broadcast %cst_170 : f32 to vector<16x64xf32>
    %148 = arith.maximumf %146, %147 : vector<16x64xf32>
    %149 = arith.truncf %148 : vector<16x64xf32> to vector<16x64xbf16>
    %c0_171 = arith.constant 0 : index
    %c0_172 = arith.constant 0 : index
    %150 = vector.load %arg12[%c0_171, %c0_172] : memref<64x8xbf16, #tpu.memory_space<vmem>>, vector<64x8xbf16>
    %cst_173 = arith.constant dense<0.000000e+00> : vector<16x8xf32>
    %151 = tpu.matmul %149, %150, %cst_173 {dimension_numbers = #tpu.dot_dimension_numbers<[1], [0], [0], [1], [0, 0, 1, 1], [], []>} : vector<16x64xbf16>, vector<64x8xbf16>, vector<16x8xf32> -> vector<16x8xf32>
    %c0_174 = arith.constant 0 : index
    %c0_175 = arith.constant 0 : index
    %152 = vector.load %arg13[%c0_174, %c0_175] : memref<1x8xf32, #tpu.memory_space<vmem>>, vector<1x8xf32>
    %153 = vector.broadcast %152 : vector<1x8xf32> to vector<16x8xf32>
    %154 = arith.addf %151, %153 : vector<16x8xf32>
    %155 = tpu.transpose %154, [1, 0] : vector<16x8xf32> -> vector<8x16xf32>
    %c0_176 = arith.constant 0 : index
    %c0_177 = arith.constant 0 : index
    %c0_178 = arith.constant 0 : index
    %156 = vector.load %arg14[%c0_176, %c0_177, %c0_178] : memref<1x8x16xf32, #tpu.memory_space<vmem>>, vector<1x8x16xf32>
    %157 = vector.shape_cast %156 : vector<1x8x16xf32> to vector<8x16xf32>
    %158 = vector.shape_cast %155 : vector<8x16xf32> to vector<1x8x16xf32>
    tpu.vector_store %arg14[%c0_176, %c0_177, %c0_178], %158 {strides = array<i32>} : memref<1x8x16xf32, #tpu.memory_space<vmem>>, vector<1x8x16xf32>,
    return
  }
  func.func @transform_0(%arg0: i32) -> (i32, i32, i32, i32) {
    %c0_i32 = arith.constant 0 : i32
    %c0_i32_0 = arith.constant 0 : i32
    %c0_i32_1 = arith.constant 0 : i32
    %c0_i32_2 = arith.constant 0 : i32
    return %arg0, %c0_i32, %c0_i32_0, %c0_i32_1 : i32, i32, i32, i32
  }
  func.func @transform_1(%arg0: i32) -> (i32, i32) {
    %c0_i32 = arith.constant 0 : i32
    %c0_i32_0 = arith.constant 0 : i32
    %c0_i32_1 = arith.constant 0 : i32
    return %c0_i32, %c0_i32_0 : i32, i32
  }
  func.func @transform_2(%arg0: i32) -> (i32, i32) {
    %c0_i32 = arith.constant 0 : i32
    %c0_i32_0 = arith.constant 0 : i32
    %c0_i32_1 = arith.constant 0 : i32
    return %c0_i32, %c0_i32_0 : i32, i32
  }
  func.func @transform_3(%arg0: i32) -> (i32, i32) {
    %c0_i32 = arith.constant 0 : i32
    %c0_i32_0 = arith.constant 0 : i32
    %c0_i32_1 = arith.constant 0 : i32
    return %c0_i32, %c0_i32_0 : i32, i32
  }
  func.func @transform_4(%arg0: i32) -> (i32, i32) {
    %c0_i32 = arith.constant 0 : i32
    %c0_i32_0 = arith.constant 0 : i32
    %c0_i32_1 = arith.constant 0 : i32
    return %c0_i32, %c0_i32_0 : i32, i32
  }
  func.func @transform_5(%arg0: i32) -> (i32, i32, i32) {
    %c0_i32 = arith.constant 0 : i32
    %c0_i32_0 = arith.constant 0 : i32
    %c0_i32_1 = arith.constant 0 : i32
    %c0_i32_2 = arith.constant 0 : i32
    return %c0_i32, %c0_i32_0, %c0_i32_1 : i32, i32, i32
  }
  func.func @transform_6(%arg0: i32) -> (i32, i32, i32) {
    %c0_i32 = arith.constant 0 : i32
    %c0_i32_0 = arith.constant 0 : i32
    %c0_i32_1 = arith.constant 0 : i32
    %c0_i32_2 = arith.constant 0 : i32
    return %c0_i32, %c0_i32_0, %c0_i32_1 : i32, i32, i32
  }
  func.func @transform_7(%arg0: i32) -> (i32, i32, i32) {
    %c0_i32 = arith.constant 0 : i32
    %c0_i32_0 = arith.constant 0 : i32
    %c0_i32_1 = arith.constant 0 : i32
    %c0_i32_2 = arith.constant 0 : i32
    return %c0_i32, %c0_i32_0, %c0_i32_1 : i32, i32, i32
  }
  func.func @transform_8(%arg0: i32) -> (i32, i32, i32) {
    %c0_i32 = arith.constant 0 : i32
    %c0_i32_0 = arith.constant 0 : i32
    %c0_i32_1 = arith.constant 0 : i32
    %c0_i32_2 = arith.constant 0 : i32
    return %c0_i32, %c0_i32_0, %c0_i32_1 : i32, i32, i32
  }
  func.func @transform_9(%arg0: i32) -> (i32, i32) {
    %c0_i32 = arith.constant 0 : i32
    %c0_i32_0 = arith.constant 0 : i32
    %c0_i32_1 = arith.constant 0 : i32
    return %c0_i32, %c0_i32_0 : i32, i32
  }
  func.func @transform_10(%arg0: i32) -> (i32, i32, i32) {
    %c0_i32 = arith.constant 0 : i32
    %c0_i32_0 = arith.constant 0 : i32
    %c0_i32_1 = arith.constant 0 : i32
    return %arg0, %c0_i32, %c0_i32_0 : i32, i32, i32
  }
  func.func @transform_11(%arg0: i32) -> (i32, i32) {
    %c0_i32 = arith.constant 0 : i32
    %c0_i32_0 = arith.constant 0 : i32
    %c0_i32_1 = arith.constant 0 : i32
    return %c0_i32, %c0_i32_0 : i32, i32
  }
  func.func @transform_12(%arg0: i32) -> (i32, i32) {
    %c0_i32 = arith.constant 0 : i32
    %c0_i32_0 = arith.constant 0 : i32
    %c0_i32_1 = arith.constant 0 : i32
    return %c0_i32, %c0_i32_0 : i32, i32
  }
  func.func @transform_13(%arg0: i32) -> (i32, i32, i32) {
    %c0_i32 = arith.constant 0 : i32
    %c0_i32_0 = arith.constant 0 : i32
    %c0_i32_1 = arith.constant 0 : i32
    return %arg0, %c0_i32, %c0_i32_0 : i32, i32, i32
  }
}

module attributes {stable_mosaic.version = 11 : i64} {
  func.func @_ordinal_kernel(%arg0: i32, %arg1: i32, %arg2: memref<1x8x1024xf32, #tpu.memory_space<vmem>>, %arg3: memref<1x8x1024xf32, #tpu.memory_space<vmem>>, %arg4: memref<1x1x1024xi32, #tpu.memory_space<vmem>>) attributes {dimension_semantics = [#tpu.dimension_semantics<parallel>, #tpu.dimension_semantics<parallel>], iteration_bounds = array<i64: 2, 1>, scalar_prefetch = 0 : i64, scratch_operands = 0 : i64, tpu.core_type = #tpu.core_type<tc>, window_params = [{transform_indices = @transform_0, window_bounds = array<i64: 1, 8, 1024>}, {transform_indices = @transform_1, window_bounds = array<i64: 1, 8, 1024>}, {transform_indices = @transform_2, window_bounds = array<i64: 1, 1, 1024>}]} {
    %c0 = arith.constant 0 : index
    %c0_0 = arith.constant 0 : index
    %c0_1 = arith.constant 0 : index
    %0 = vector.load %arg2[%c0, %c0_0, %c0_1] : memref<1x8x1024xf32, #tpu.memory_space<vmem>>, vector<1x8x1024xf32>
    %1 = vector.shape_cast %0 : vector<1x8x1024xf32> to vector<8x1024xf32>
    %2 = math.absf %1 : vector<8x1024xf32>
    %cst = arith.constant 0.000000e+00 : f32
    %3 = vector.broadcast %cst : f32 to vector<8x1024xf32>
    %4 = arith.subf %3, %2 : vector<8x1024xf32>
    %5 = math.exp %4 : vector<8x1024xf32>
    %cst_2 = arith.constant 1.000000e+00 : f32
    %6 = vector.broadcast %cst_2 : f32 to vector<8x1024xf32>
    %7 = arith.addf %6, %5 : vector<8x1024xf32>
    %cst_3 = arith.constant 1.000000e+00 : f32
    %8 = vector.broadcast %cst_3 : f32 to vector<8x1024xf32>
    %9 = arith.divf %8, %7 : vector<8x1024xf32>
    %cst_4 = arith.constant 0.000000e+00 : f32
    %10 = vector.broadcast %cst_4 : f32 to vector<8x1024xf32>
    %11 = arith.cmpf oge, %1, %10 : vector<8x1024xf32>
    %cst_5 = arith.constant 1.000000e+00 : f32
    %12 = vector.broadcast %cst_5 : f32 to vector<8x1024xf32>
    %13 = arith.subf %12, %9 : vector<8x1024xf32>
    %14 = arith.select %11, %9, %13 : vector<8x1024xi1>, vector<8x1024xf32>
    %c0_6 = arith.constant 0 : index
    %c0_7 = arith.constant 0 : index
    %c0_8 = arith.constant 0 : index
    %15 = vector.load %arg3[%c0_6, %c0_7, %c0_8] : memref<1x8x1024xf32, #tpu.memory_space<vmem>>, vector<1x8x1024xf32>
    %16 = vector.shape_cast %15 : vector<1x8x1024xf32> to vector<8x1024xf32>
    %17 = vector.shape_cast %14 : vector<8x1024xf32> to vector<1x8x1024xf32>
    tpu.vector_store %arg3[%c0_6, %c0_7, %c0_8], %17 {strides = array<i32>} : memref<1x8x1024xf32, #tpu.memory_space<vmem>>, vector<1x8x1024xf32>,
    %cst_9 = arith.constant 0.000000e+00 : f32
    %18 = vector.broadcast %cst_9 : f32 to vector<8x1024xf32>
    %19 = arith.cmpf ogt, %1, %18 : vector<8x1024xf32>
    %20 = arith.extui %19 : vector<8x1024xi1> to vector<8x1024xi32>
    %cst_10 = arith.constant dense<0> : vector<1024xi32>
    %21 = vector.multi_reduction <add>, %20, %cst_10 [0] : vector<8x1024xi32> to vector<1024xi32>
    %22 = vector.shape_cast %21 : vector<1024xi32> to vector<1x1024xi32>
    %c0_11 = arith.constant 0 : index
    %c0_12 = arith.constant 0 : index
    %c0_13 = arith.constant 0 : index
    %23 = vector.load %arg4[%c0_11, %c0_12, %c0_13] : memref<1x1x1024xi32, #tpu.memory_space<vmem>>, vector<1x1x1024xi32>
    %24 = vector.shape_cast %23 : vector<1x1x1024xi32> to vector<1x1024xi32>
    %25 = vector.shape_cast %22 : vector<1x1024xi32> to vector<1x1x1024xi32>
    tpu.vector_store %arg4[%c0_11, %c0_12, %c0_13], %25 {strides = array<i32>} : memref<1x1x1024xi32, #tpu.memory_space<vmem>>, vector<1x1x1024xi32>,
    return
  }
  func.func @transform_0(%arg0: i32, %arg1: i32) -> (i32, i32, i32) {
    %c0_i32 = arith.constant 0 : i32
    %c0_i32_0 = arith.constant 0 : i32
    return %arg0, %c0_i32, %arg1 : i32, i32, i32
  }
  func.func @transform_1(%arg0: i32, %arg1: i32) -> (i32, i32, i32) {
    %c0_i32 = arith.constant 0 : i32
    %c0_i32_0 = arith.constant 0 : i32
    return %arg0, %c0_i32, %arg1 : i32, i32, i32
  }
  func.func @transform_2(%arg0: i32, %arg1: i32) -> (i32, i32, i32) {
    %c0_i32 = arith.constant 0 : i32
    %c0_i32_0 = arith.constant 0 : i32
    return %arg0, %c0_i32, %arg1 : i32, i32, i32
  }
}

</mosaic_0001>

<bundles_post_ra>
// kernel: _lambda_.6
= control target key start
LH: loop header
LB: loop body
LE: loop exit
PB: predicated region body
PF: predicated region fallthrough
CT: control target
= control target key end

     0   :  { %s1078_s12 = smov 0   ;;  %s1372_s0 = inlined_call_operand.vmem [shape: f32[8,9,9,16], index: 0, kind: input, shape index: {}]   ;;  %s1373_s1 = inlined_call_operand.vmem [shape: bf16[144,32], index: 1, kind: input, shape index: {}]   ;;  %s1374_s2 = inlined_call_operand.vmem [shape: f32[1,32], index: 2, kind: input, shape index: {}]   ;;  %s1375_s3 = inlined_call_operand.vmem [shape: f32[2,64,32], index: 3, kind: output, shape index: {}]  }
   0x1 LB: > { %s1084_s13 = sadd.s32 4294967295, %s1048_s12   ;;  %p780_p0 = scmp.ge.s32.totalorder %s1048_s12, 1  ;;  %s1048_s12 = sphi %s1078_s12, %s13_s12  }
   0x2   : > { %p139_p1 = scmp.lt.s32.totalorder %s1048_s12, 3 }
   0x4   : > { %p140_p2 = pnand %p780_p0, %p139_p1 }
   0x5   : > { %s781_s14 = sshll.u32 (!%p140_p2), %s1084_s13, 2  ;;  %v1033_v0 = vld [vmem:[%s1373_s1] sm:$0xff] (!%p140_p2)   ;;  %v1050_v1 = vmov (!%p140_p2), 0   ;;  %v1034_v2 = vld [vmem:[%s1373_s1 + $0x8] sm:$0xff] (!%p140_p2)   ;;  %v1035_v3 = vld [vmem:[%s1373_s1 + $0x10] sm:$0xff] (!%p140_p2)   ;;  %s1051_s27 = smov (!%p140_p2), 32  }
   0x6   : > { %143 = sbr.rel (%p140_p2) target bundleno = 412 (0x19c), region = 32  ;;  %p165_p3 = scmp.lt.s32.totalorder (!%p140_p2), %s781_s14, 7  ;;  %640 = vmatprep.subr.bf16.mxu0 (!%p140_p2), %v1050_v1  ;;  %858 = vmatprep.subr.bf16.mxu1 (!%p140_p2), %v1050_v1  ;;  %v1036_v14 = vld [vmem:[%s1373_s1 + $0x18] sm:$0xff] (!%p140_p2)   ;;  %v1037_v21 = vld [vmem:[%s1373_s1 + $0x20] sm:$0xff] (!%p140_p2)   ;;  %v1038_v41 = vld [vmem:[%s1373_s1 + $0x28] sm:$0xff] (!%p140_p2)   ;;  %vm478_vm0 = vcmask (!%p140_p2), 130048  }
   0x7   : > { %641 = vmatpush1.bf16.msra.mxu0 (!%p140_p2), %v1033_v0  ;;  %867 = vmatpush1.bf16.msra.mxu1 (!%p140_p2), %v1033_v0  ;;  %s1052_s28 = smov (!%p140_p2), 16   ;;  %s1053_s4 = smov (!%p140_p2), 48   ;;  %v1039_v45 = vld [vmem:[%s1373_s1 + $0x30] sm:$0xff] (!%p140_p2)   ;;  %v1040_v50 = vld [vmem:[%s1373_s1 + $0x38] sm:$0xff] (!%p140_p2)   ;;  %v1041_v55 = vld [vmem:[%s1373_s1 + $0x40] sm:$0xff] (!%p140_p2)   ;;  %vm487_vm1 = vcmask (!%p140_p2), 261120  }
   0x8   : > { %642 = vmatprep.subr.bf16.mxu0 (!%p140_p2), %v1050_v1  ;;  %859 = vmatprep.subr.bf16.mxu1 (!%p140_p2), %v1050_v1  ;;  %s1054_s5 = smov (!%p140_p2), 64   ;;  %s1055_s10 = smov (!%p140_p2), 80   ;;  %vm496_vm2 = vcmask (!%p140_p2), 392192   ;;  %vm505_vm3 = vcmask (!%p140_p2), 523264   ;;  %vm514_vm4 = vcmask (!%p140_p2), 654336   ;;  %vm523_vm5 = vcmask (!%p140_p2), 785408  }
   0x9   : > { %s1056_s15 = smov (!%p140_p2), 96   ;;  %s1057_s18 = smov (!%p140_p2), 112   ;;  %vm532_vm6 = vcmask (!%p140_p2), 916480  }
   0xa   : > { %p171_p4 = scmp.lt.s32.totalorder (!%p140_p2), %s1084_s13, 1 }
   0xb   : > { %643 = vmatpush1.bf16.msra.mxu0 (!%p140_p2), %v1034_v2  ;;  %868 = vmatpush1.bf16.msra.mxu1 (!%p140_p2), %v1034_v2 }
   0xc   : > { %644 = vmatprep.subr.bf16.mxu0 (!%p140_p2), %v1050_v1  ;;  %860 = vmatprep.subr.bf16.mxu1 (!%p140_p2), %v1050_v1 }
   0xd   : > { %s1377_s14 = smov (!%p165_p3, %s781_s14), 7  ;;  %s1379_s13 = smov (!%p171_p4, %s1084_s13), 1 }
   0xe   : > { %s876_s19 = smul.u32 144, %s1377_s14  ;;  %s857_s21 = sshll.u32 %s1379_s13, 6 }
   0xf   : > { %645 = vmatpush1.bf16.msra.mxu0 %v1035_v3  ;;  %869 = vmatpush1.bf16.msra.mxu1 %v1035_v3 }
  0x10   : > { %s1105_s24 = scalar_lea.vmem %s1372_s0, %s876_s19  ;;  %646 = vmatprep.subr.bf16.mxu0 %v1050_v1  ;;  %861 = vmatprep.subr.bf16.mxu1 %v1050_v1 }
  0x11   : > { %v194_v4 = vld [vmem:[%s1105_s24 + $0x1] sm:$0xff]  ;;  %v1111_v5 = vld [vmem:[%s1105_s24 + $0x11] sm:$0xff] }
  0x12   : > { %v785_v6 = vld [vmem:[%s1105_s24 + $0x90] sm:$0xff]  ;;  %v903_v7 = vpack.i.bf16 %v1111_v5, %v194_v4  ;;  %v1116_v8 = vld [vmem:[%s1105_s24 + $0xa0] sm:$0xff] }
  0x13   : > { %v1119_v9 = vld [vmem:[%s1105_s24 + $0x41] sm:$0xff]  ;;  %v1122_v10 = vld [vmem:[%s1105_s24 + $0x51] sm:$0xff]  ;;  %v893_v11 = vpack.i.bf16 %v1116_v8, %v785_v6  ;;  %647 = vmatpush1.bf16.msra.mxu0 %v1036_v14  ;;  %870 = vmatpush1.bf16.msra.mxu1 %v1036_v14 }
  0x14   : > { %v1126_v12 = vld [vmem:[%s1105_s24 + $0xd0] sm:$0xff]  ;;  %v1129_v13 = vld [vmem:[%s1105_s24 + $0xe0] sm:$0xff]  ;;  %904 = vrot.lane.b32.xlu1 %v903_v7, %s1051_s27  ;;  %v908_v15 = vpack.i.bf16 %v1122_v10, %v1119_v9  ;;  %648 = vmatprep.subr.bf16.mxu0 %v1050_v1 }
  0x15   : > { %894 = vrot.lane.b32.xlu0 %v893_v11, %s1052_s28  ;;  %v898_v16 = vpack.i.bf16 %v1129_v13, %v1126_v12  ;;  %v797_v17 = vld [vmem:[%s1105_s24 + $0x160] sm:$0xff]  ;;  %v798_v18 = vld [vmem:[%s1105_s24 + $0x170] sm:$0xff]  ;;  %862 = vmatprep.subr.bf16.mxu1 %v1050_v1 }
  0x16   : > { %v793_v19 = vld [vmem:[%s1105_s24 + $0x120] sm:$0xff]  ;;  %v794_v20 = vld [vmem:[%s1105_s24 + $0x130] sm:$0xff]  ;;  %v918_v22 = vpack.i.bf16 %v798_v18, %v797_v17 }
  0x17   : > { %v913_v23 = vpack.i.bf16 %v794_v20, %v793_v19  ;;  %v805_v24 = vld [vmem:[%s1105_s24 + $0x1f0] sm:$0xff]  ;;  %v806_v25 = vld [vmem:[%s1105_s24 + $0x200] sm:$0xff]  ;;  %649 = vmatpush1.bf16.msra.mxu0 %v1037_v21  ;;  %871 = vmatpush1.bf16.msra.mxu1 %v1037_v21 }
  0x18   : > { %909 = vrot.lane.b32.xlu1 %v908_v15, %s1051_s27  ;;  %v801_v26 = vld [vmem:[%s1105_s24 + $0x1b0] sm:$0xff]  ;;  %v802_v27 = vld [vmem:[%s1105_s24 + $0x1c0] sm:$0xff]  ;;  %v928_v28 = vpack.i.bf16 %v806_v25, %v805_v24  ;;  %650 = vmatprep.subr.bf16.mxu0 %v1050_v1 }
  0x19   : > { %899 = vrot.lane.b32.xlu0 %v898_v16, %s1052_s28  ;;  %v923_v29 = vpack.i.bf16 %v802_v27, %v801_v26  ;;  %v813_v30 = vld [vmem:[%s1105_s24 + $0x161] sm:$0xff]  ;;  %v814_v31 = vld [vmem:[%s1105_s24 + $0x171] sm:$0xff]  ;;  %863 = vmatprep.subr.bf16.mxu1 %v1050_v1 }
  0x1a   : > { %v809_v32 = vld [vmem:[%s1105_s24 + $0x121] sm:$0xff]  ;;  %v810_v33 = vld [vmem:[%s1105_s24 + $0x131] sm:$0xff]  ;;  %v938_v34 = vpack.i.bf16 %v814_v31, %v813_v30 }
  0x1b   : > { %v1167_v35 = vld [vmem:[%s1105_s24 + $0x50] sm:$0xff]  ;;  %v1170_v36 = vld [vmem:[%s1105_s24 + $0x60] sm:$0xff]  ;;  %v933_v38 = vpack.i.bf16 %v810_v33, %v809_v32  ;;  %651 = vmatpush1.bf16.msra.mxu0 %v1038_v41  ;;  %872 = vmatpush1.bf16.msra.mxu1 %v1038_v41 }
  0x1c   : > { %919 = vrot.lane.b32.xlu1 %v918_v22, %s1053_s4  ;;  %v1173_v37 = vld [vmem:[%s1105_s24 + $0x10] sm:$0xff]  ;;  %v200_v39 = vld [vmem:[%s1105_s24 + $0x61] sm:$0xff]  ;;  %v948_v46 = vpack.i.bf16 %v1170_v36, %v1167_v35  ;;  %652 = vmatprep.subr.bf16.mxu0 %v1050_v1 }
  0x1d   : > { %914 = vrot.lane.b32.xlu0 %v913_v23, %s1053_s4  ;;  %v196_v40 = vld [vmem:[%s1105_s24 + $0x21] sm:$0xff]  ;;  %v546_v44 = vpack.c.bf16 %v200_v39, %v1122_v10  ;;  %v830_v48 = vld [vmem:[%s1105_s24 + $0xf0] sm:$0xff]  ;;  %864 = vmatprep.subr.bf16.mxu1 %v1050_v1 }
  0x1e   : > { %v1182_v42 = vld [vmem:[%s1105_s24 + $0x20] sm:$0xff]  ;;  %v542_v43 = vpack.c.bf16 %v196_v40, %v1111_v5  ;;  %v826_v49 = vld [vmem:[%s1105_s24 + $0xb0] sm:$0xff]  ;;  %v958_v51 = vpack.i.bf16 %v830_v48, %v1129_v13 }
  0x1f   : > { %v943_v47 = vpack.i.bf16 %v1182_v42, %v1173_v37  ;;  %853 = vmatprep.mubr.msk.bf16.mxu1 %vm478_vm0, %v546_v44  ;;  %653 = vmatpush1.bf16.msra.mxu0 %v1039_v45  ;;  %v953_v52 = vpack.i.bf16 %v826_v49, %v1116_v8  ;;  %v792_v53 = vld [vmem:[%s1105_s24 + $0x100] sm:$0xff]  ;;  %v1219_v58 = vld [vmem:[%s1105_s24 + $0x71] sm:$0xff] }
  0x20   : > { %929 = vrot.lane.b32.xlu1 %v928_v28, %s1054_s5  ;;  %851 = vmatprep.mubr.msk.bf16.mxu0 %vm478_vm0, %v542_v43  ;;  %v788_v54 = vld [vmem:[%s1105_s24 + $0xc0] sm:$0xff]  ;;  %v968_v56 = vpack.i.bf16 %v792_v53, %v830_v48  ;;  %v1223_v59 = vld [vmem:[%s1105_s24 + $0x31] sm:$0xff]  ;;  %v978_v60 = vpack.i.bf16 %v1219_v58, %v200_v39 }
  0x21   : > { %924 = vrot.lane.b32.xlu0 %v923_v29, %s1054_s5  ;;  %873 = vmatpush1.bf16.msra.mxu1 %v1039_v45  ;;  %v963_v57 = vpack.i.bf16 %v788_v54, %v826_v49  ;;  %v973_v61 = vpack.i.bf16 %v1223_v59, %v196_v40  ;;  %v799_v62 = vld [vmem:[%s1105_s24 + $0x180] sm:$0xff]  ;;  %v800_v63 = vld [vmem:[%s1105_s24 + $0x190] sm:$0xff]  ;;  %v544_v17 = vpack.c.bf16 %v1119_v9, %v1223_v59 }
  0x22   : > { %654 = vmatprep.subr.bf16.mxu0 %v1050_v1  ;;  %865 = vmatprep.subr.bf16.mxu1 %v1050_v1  ;;  %v795_v0 = vld [vmem:[%s1105_s24 + $0x140] sm:$0xff]  ;;  %v988_v2 = vpack.i.bf16 %v800_v63, %v799_v62  ;;  %v807_v4 = vld [vmem:[%s1105_s24 + $0x210] sm:$0xff]  ;;  %v1023_v29 = vpack.i.bf16 %v1126_v12, %v788_v54 }
  0x23   : > { %655 = vmatpush1.bf16.msra.mxu0 %v1040_v50  ;;  %v808_v5 = vld [vmem:[%s1105_s24 + $0x220] sm:$0xff]  ;;  %v803_v6 = vld [vmem:[%s1105_s24 + $0x1d0] sm:$0xff] }
  0x24   : > { %939 = vrot.lane.b32.xlu1 %v938_v34, %s1055_s10  ;;  %656 = vmatprep.subr.bf16.mxu0 %v1050_v1  ;;  %v804_v7 = vld [vmem:[%s1105_s24 + $0x1e0] sm:$0xff]  ;;  %v998_v8 = vpack.i.bf16 %v808_v5, %v807_v4  ;;  %v816_v13 = vld [vmem:[%s1105_s24 + $0x191] sm:$0xff] }
  0x25   : > { %934 = vrot.lane.b32.xlu0 %v933_v38, %s1055_s10  ;;  %874 = vmatpush1.bf16.msra.mxu1 %v1040_v50  ;;  %v993_v10 = vpack.i.bf16 %v804_v7, %v803_v6  ;;  %v815_v11 = vld [vmem:[%s1105_s24 + $0x181] sm:$0xff]  ;;  %v812_v15 = vld [vmem:[%s1105_s24 + $0x151] sm:$0xff] }
  0x26   : > { %866 = vmatprep.subr.bf16.mxu1 %v1050_v1  ;;  %v796_v1 = vld [vmem:[%s1105_s24 + $0x150] sm:$0xff]  ;;  %v811_v14 = vld [vmem:[%s1105_s24 + $0x141] sm:$0xff]  ;;  %v1008_v16 = vpack.i.bf16 %v816_v13, %v815_v11 }
  0x27   : > { %657 = vmatpush1.bf16.msra.mxu0 %v1041_v55  ;;  %v983_v3 = vpack.i.bf16 %v796_v1, %v795_v0  ;;  %v1249_v18 = vld [vmem:[%s1105_s24 + $0x81] sm:$0xff]  ;;  %v1003_v19 = vpack.i.bf16 %v812_v15, %v811_v14  ;;  %v1253_v20 = vld [vmem:[%s1105_s24 + $0x70] sm:$0xff] }
  0x28   : > { %949 = vrot.lane.b32.xlu1 %v948_v46, %s1056_s15  ;;  %v824_v21 = vld [vmem:[%s1105_s24 + $0x80] sm:$0xff]  ;;  %v548_v22 = vpack.c.bf16 %v1249_v18, %v1219_v58  ;;  %v1259_v23 = vld [vmem:[%s1105_s24 + $0x30] sm:$0xff] }
  0x29   : > { %944 = vrot.lane.b32.xlu0 %v943_v47, %s1056_s15  ;;  %875 = vmatpush1.bf16.msra.mxu1 %v1041_v55  ;;  %v820_v24 = vld [vmem:[%s1105_s24 + $0x40] sm:$0xff]  ;;  %v1018_v25 = vpack.i.bf16 %v824_v21, %v1253_v20  ;;  %v832_v27 = vld [vmem:[%s1105_s24 + $0x110] sm:$0xff] }
  0x2a   : > { %v1013_v26 = vpack.i.bf16 %v820_v24, %v1259_v23  ;;  %v1028_v28 = vpack.i.bf16 %v832_v27, %v792_v53  ;;  %v177_v41 = vld [vmem:[%s1105_s24] sm:$0xff]  ;;  %s1351_s24 = scalar_lea.vmem %s1375_s3, %s857_s21 }
  0x2c   : > { %959 = vrot.lane.b32.xlu1 %v958_v51, %s1057_s18 }
  0x2d   : > { %954 = vrot.lane.b32.xlu0 %v953_v52, %s1057_s18 }
  0x30   : > { %969 = vrot.lane.b32.xlu1 %v968_v56, %s1052_s28 }
  0x31   : > { %964 = vrot.lane.b32.xlu0 %v963_v57, %s1052_s28 }
  0x34   : > { %979 = vrot.lane.b32.xlu1 %v978_v60, %s1051_s27 }
  0x35   : > { %974 = vrot.lane.b32.xlu0 %v973_v61, %s1051_s27 }
  0x38   : > { %989 = vrot.lane.b32.xlu1 %v988_v2, %s1053_s4 }
  0x39   : > { %984 = vrot.lane.b32.xlu0 %v983_v3, %s1053_s4 }
  0x3c   : > { %999 = vrot.lane.b32.xlu1 %v998_v8, %s1054_s5 }
  0x3d   : > { %994 = vrot.lane.b32.xlu0 %v993_v10, %s1054_s5 }
  0x40   : > { %1009 = vrot.lane.b32.xlu1 %v1008_v16, %s1055_s10 }
  0x41   : > { %1004 = vrot.lane.b32.xlu0 %v1003_v19, %s1055_s10 }
  0x44   : > { %1019 = vrot.lane.b32.xlu1 %v1018_v25, %s1056_s15 }
  0x45   : > { %1014 = vrot.lane.b32.xlu0 %v1013_v26, %s1056_s15 }
  0x48   : > { %1029 = vrot.lane.b32.xlu1 %v1028_v28, %s1057_s18 }
  0x49   : > { %1024 = vrot.lane.b32.xlu0 %v1023_v29, %s1057_s18 }
  0x86   : > { %v905_v30 = vpop.permute.xlu1 %904 }
  0x87   : > { %v895_v31 = vpop.permute.xlu0 %894  ;;  %v907_v47 = vunpack.i.h.bf16 %v905_v30  ;;  %v906_v48 = vunpack.i.l.bf16 %v905_v30 }
  0x88   : > { %v897_v39 = vunpack.i.h.bf16 %v895_v31  ;;  %v896_v40 = vunpack.i.l.bf16 %v895_v31 }
  0x8a   : > { %v910_v32 = vpop.permute.xlu1 %909  ;;  %v479_v12 = vsel %vm478_vm0, %v177_v41, %v896_v40  ;;  %v480_v49 = vsel %vm478_vm0, %v1173_v37, %v897_v39 }
  0x8b   : > { %v900_v33 = vpop.permute.xlu0 %899  ;;  %v912_v50 = vunpack.i.h.bf16 %v910_v32  ;;  %v911_v51 = vunpack.i.l.bf16 %v910_v32  ;;  %v488_v62 = vsel %vm487_vm1, %v479_v12, %v906_v48  ;;  %v489_v37 = vsel %vm487_vm1, %v480_v49, %v907_v47 }
  0x8c   : > { %v902_v43 = vunpack.i.h.bf16 %v900_v33  ;;  %v901_v44 = vunpack.i.l.bf16 %v900_v33 }
  0x8e   : > { %v920_v34 = vpop.permute.xlu1 %919  ;;  %v483_v52 = vsel %vm478_vm0, %v820_v24, %v901_v44  ;;  %v484_v53 = vsel %vm478_vm0, %v1167_v35, %v902_v43 }
  0x8f   : > { %v915_v38 = vpop.permute.xlu0 %914  ;;  %v922_v55 = vunpack.i.h.bf16 %v920_v34  ;;  %v921_v56 = vunpack.i.l.bf16 %v920_v34  ;;  %v492_v63 = vsel %vm487_vm1, %v483_v52, %v911_v51  ;;  %v493_v0 = vsel %vm487_vm1, %v484_v53, %v912_v50 }
  0x90   : > { %v917_v60 = vunpack.i.h.bf16 %v915_v38  ;;  %v916_v61 = vunpack.i.l.bf16 %v915_v38 }
  0x91   : > { %v501_v7 = vsel %vm496_vm2, %v492_v63, %v921_v56  ;;  %v502_v8 = vsel %vm496_vm2, %v493_v0, %v922_v55 }
  0x92   : > { %v930_v45 = vpop.permute.xlu1 %929  ;;  %v497_v14 = vsel %vm496_vm2, %v488_v62, %v916_v61  ;;  %v498_v15 = vsel %vm496_vm2, %v489_v37, %v917_v60 }
  0x93   : > { %v925_v46 = vpop.permute.xlu0 %924  ;;  %v932_v1 = vunpack.i.h.bf16 %v930_v45  ;;  %v931_v35 = vunpack.i.l.bf16 %v930_v45 }
  0x94   : > { %v927_v2 = vunpack.i.h.bf16 %v925_v46  ;;  %v926_v3 = vunpack.i.l.bf16 %v925_v46 }
  0x95   : > { %v510_v21 = vsel %vm505_vm3, %v501_v7, %v931_v35  ;;  %v511_v24 = vsel %vm505_vm3, %v502_v8, %v932_v1 }
  0x96   : > { %v940_v54 = vpop.permute.xlu1 %939  ;;  %v506_v27 = vsel %vm505_vm3, %v497_v14, %v926_v3  ;;  %v507_v28 = vsel %vm505_vm3, %v498_v15, %v927_v2 }
  0x97   : > { %v935_v57 = vpop.permute.xlu0 %934  ;;  %v942_v4 = vunpack.i.h.bf16 %v940_v54  ;;  %v941_v5 = vunpack.i.l.bf16 %v940_v54 }
  0x98   : > { %v937_v10 = vunpack.i.h.bf16 %v935_v57  ;;  %v936_v11 = vunpack.i.l.bf16 %v935_v57 }
  0x99   : > { %v519_v29 = vsel %vm514_vm4, %v510_v21, %v941_v5  ;;  %v520_v30 = vsel %vm514_vm4, %v511_v24, %v942_v4 }
  0x9a   : > { %v950_v6 = vpop.permute.xlu1 %949  ;;  %v515_v32 = vsel %vm514_vm4, %v506_v27, %v936_v11  ;;  %v516_v33 = vsel %vm514_vm4, %v507_v28, %v937_v10 }
  0x9b   : > { %v945_v13 = vpop.permute.xlu0 %944  ;;  %v952_v16 = vunpack.i.h.bf16 %v950_v6  ;;  %v951_v19 = vunpack.i.l.bf16 %v950_v6 }
  0x9c   : > { %v947_v25 = vunpack.i.h.bf16 %v945_v13  ;;  %v946_v26 = vunpack.i.l.bf16 %v945_v13 }
  0x9d   : > { %v528_v40 = vsel %vm523_vm5, %v519_v29, %v951_v19  ;;  %v529_v41 = vsel %vm523_vm5, %v520_v30, %v952_v16 }
  0x9e   : > { %v960_v31 = vpop.permute.xlu1 %959  ;;  %v524_v45 = vsel %vm523_vm5, %v515_v32, %v946_v26  ;;  %v525_v46 = vsel %vm523_vm5, %v516_v33, %v947_v25 }
  0x9f   : > { %v962_v34 = vunpack.i.h.bf16 %v960_v31  ;;  %v961_v38 = vunpack.i.l.bf16 %v960_v31  ;;  %v955_v39 = vpop.permute.xlu0 %954 }
  0xa0   : > { %v957_v43 = vunpack.i.h.bf16 %v955_v39  ;;  %v956_v44 = vunpack.i.l.bf16 %v955_v39 }
  0xa1   : > { %v537_v47 = vsel %vm532_vm6, %v528_v40, %v961_v38  ;;  %v538_v48 = vsel %vm532_vm6, %v529_v41, %v962_v34 }
  0xa2   : > { %v970_v12 = vpop.permute.xlu1 %969  ;;  %v533_v49 = vsel %vm532_vm6, %v524_v45, %v956_v44  ;;  %v534_v50 = vsel %vm532_vm6, %v525_v46, %v957_v43  ;;  %v545_v51 = vpack.c.bf16 %v538_v48, %v537_v47 }
  0xa3   : > { %v965_v52 = vpop.permute.xlu0 %964  ;;  %v541_v53 = vpack.c.bf16 %v534_v50, %v533_v49  ;;  %v972_v60 = vunpack.i.h.bf16 %v970_v12  ;;  %v971_v61 = vunpack.i.l.bf16 %v970_v12 }
  0xa4   : > { %689 = vmatmul.mubr.bf16.vlgmr.msra.gmra.mrb[0].mxu1 %v545_v51  ;;  %v967_v37 = vunpack.i.h.bf16 %v965_v52  ;;  %v966_v63 = vunpack.i.l.bf16 %v965_v52 }
  0xa5   : > { %673 = vmatmul.mubr.bf16.vlgmr.msra.gmra.mrb[0].mxu0 %v541_v53  ;;  %854 = vmatprep.mubr.msk.bf16.mxu1 %vm478_vm0, %v548_v22  ;;  %v485_v22 = vsel %vm478_vm0, %v1170_v36, %v971_v61  ;;  %v486_v9 = vsel %vm478_vm0, %v1253_v20, %v972_v60 }
  0xa6   : > { %v980_v54 = vpop.permute.xlu1 %979  ;;  %852 = vmatprep.mubr.msk.bf16.mxu0 %vm478_vm0, %v544_v17  ;;  %v481_v17 = vsel %vm478_vm0, %v1182_v42, %v966_v63  ;;  %v482_v2 = vsel %vm478_vm0, %v1259_v23, %v967_v37 }
  0xa7   : > { %v975_v55 = vpop.permute.xlu0 %974  ;;  %v982_v1 = vunpack.i.h.bf16 %v980_v54  ;;  %v981_v35 = vunpack.i.l.bf16 %v980_v54 }
  0xa8   : > { %v977_v58 = vunpack.i.h.bf16 %v975_v55  ;;  %v976_v18 = vunpack.i.l.bf16 %v975_v55 }
  0xa9   : > { %v494_v6 = vsel %vm487_vm1, %v485_v22, %v981_v35  ;;  %v495_v7 = vsel %vm487_vm1, %v486_v9, %v982_v1 }
  0xaa   : > { %v990_v56 = vpop.permute.xlu1 %989  ;;  %v490_v36 = vsel %vm487_vm1, %v481_v17, %v976_v18  ;;  %v491_v20 = vsel %vm487_vm1, %v482_v2, %v977_v58 }
  0xab   : > { %v985_v57 = vpop.permute.xlu0 %984  ;;  %v992_v3 = vunpack.i.h.bf16 %v990_v56  ;;  %v991_v4 = vunpack.i.l.bf16 %v990_v56 }
  0xac   : > { %v987_v8 = vunpack.i.h.bf16 %v985_v57  ;;  %v986_v10 = vunpack.i.l.bf16 %v985_v57 }
  0xad   : > { %v503_v19 = vsel %vm496_vm2, %v494_v6, %v991_v4  ;;  %v504_v21 = vsel %vm496_vm2, %v495_v7, %v992_v3 }
  0xae   : > { %v1000_v62 = vpop.permute.xlu1 %999  ;;  %v499_v27 = vsel %vm496_vm2, %v490_v36, %v986_v10  ;;  %v500_v28 = vsel %vm496_vm2, %v491_v20, %v987_v8 }
  0xaf   : > { %v995_v0 = vpop.permute.xlu0 %994  ;;  %v1002_v11 = vunpack.i.h.bf16 %v1000_v62  ;;  %v1001_v13 = vunpack.i.l.bf16 %v1000_v62  ;;  %v841_v62 = vld [vmem:[%s1374_s2] ss:$0 sm:$0xff] }
  0xb0   : > { %v997_v14 = vunpack.i.h.bf16 %v995_v0  ;;  %v996_v42 = vunpack.i.l.bf16 %v995_v0 }
  0xb1   : > { %v512_v31 = vsel %vm505_vm3, %v503_v19, %v1001_v13  ;;  %v513_v32 = vsel %vm505_vm3, %v504_v21, %v1002_v11 }
  0xb2   : > { %v1010_v59 = vpop.permute.xlu1 %1009  ;;  %v508_v38 = vsel %vm505_vm3, %v499_v27, %v996_v42  ;;  %v509_v39 = vsel %vm505_vm3, %v500_v28, %v997_v14 }
  0xb3   : > { %v1005_v5 = vpop.permute.xlu0 %1004  ;;  %v1012_v15 = vunpack.i.h.bf16 %v1010_v59  ;;  %v1011_v16 = vunpack.i.l.bf16 %v1010_v59 }
  0xb4   : > { %v1007_v24 = vunpack.i.h.bf16 %v1005_v5  ;;  %v1006_v25 = vunpack.i.l.bf16 %v1005_v5 }
  0xb5   : > { %v521_v40 = vsel %vm514_vm4, %v512_v31, %v1011_v16  ;;  %v522_v41 = vsel %vm514_vm4, %v513_v32, %v1012_v15 }
  0xb6   : > { %v1020_v23 = vpop.permute.xlu1 %1019  ;;  %v517_v44 = vsel %vm514_vm4, %v508_v38, %v1006_v25  ;;  %v518_v45 = vsel %vm514_vm4, %v509_v39, %v1007_v24 }
  0xb7   : > { %v1015_v26 = vpop.permute.xlu0 %1014  ;;  %v1022_v29 = vunpack.i.h.bf16 %v1020_v23  ;;  %v1021_v30 = vunpack.i.l.bf16 %v1020_v23 }
  0xb8   : > { %v1017_v33 = vunpack.i.h.bf16 %v1015_v26  ;;  %v1016_v34 = vunpack.i.l.bf16 %v1015_v26 }
  0xb9   : > { %v530_v12 = vsel %vm523_vm5, %v521_v40, %v1021_v30  ;;  %v531_v49 = vsel %vm523_vm5, %v522_v41, %v1022_v29 }
  0xba   : > { %v1030_v43 = vpop.permute.xlu1 %1029  ;;  %v526_v52 = vsel %vm523_vm5, %v517_v44, %v1016_v34  ;;  %v527_v53 = vsel %vm523_vm5, %v518_v45, %v1017_v33 }
  0xbb   : > { %v1032_v46 = vunpack.i.h.bf16 %v1030_v43  ;;  %v1031_v47 = vunpack.i.l.bf16 %v1030_v43  ;;  %v1025_v48 = vpop.permute.xlu0 %1024 }
  0xbc   : > { %v1027_v50 = vunpack.i.h.bf16 %v1025_v48  ;;  %v1026_v51 = vunpack.i.l.bf16 %v1025_v48 }
  0xbd   : > { %v539_v54 = vsel %vm532_vm6, %v530_v12, %v1031_v47  ;;  %v540_v55 = vsel %vm532_vm6, %v531_v49, %v1032_v46 }
  0xbe   : > { %v535_v56 = vsel %vm532_vm6, %v526_v52, %v1026_v51  ;;  %v536_v57 = vsel %vm532_vm6, %v527_v53, %v1027_v50  ;;  %v547_v60 = vpack.c.bf16 %v540_v55, %v539_v54 }
  0xbf   : > { %v543_v61 = vpack.c.bf16 %v536_v57, %v535_v56 }
  0xc0   : > { %697 = vmatmul.mubr.bf16.gmra.mrb[4].mxu1 %v547_v60 }
  0xc1   : > { %681 = vmatmul.mubr.bf16.gmra.mrb[4].mxu0 %v543_v61 }
 0x177   : > { %v690_v37 = vpop.f32.mrb[0].mxu1 }
 0x178   : > { %v674_v63 = vpop.f32.mrb[0].mxu0  ;;  %v691_v0 = vadd.f32 %v841_v62, %v690_v37  ;;  %v692_v1 = vpop.f32.mrb[1].mxu1 }
 0x179   : > { %v675_v35 = vadd.f32 %v841_v62, %v674_v63  ;;  %v676_v58 = vpop.f32.mrb[1].mxu0  ;;  %v693_v18 = vpop.f32.mrb[2].mxu1 }
 0x17a   : > { %v709_v22 = vmax.f32 %v691_v0, 0.0  ;;  %v677_v9 = vpop.f32.mrb[2].mxu0  ;;  %v694_v59 = vadd.f32 %v841_v62, %v693_v18  ;;  %v695_v17 = vpop.f32.mrb[3].mxu1 }
 0x17b   : > { %v705_v2 = vmax.f32 %v675_v35, 0.0  ;;  %v678_v3 = vadd.f32 %v841_v62, %v677_v9  ;;  %v679_v4 = vpop.f32.mrb[3].mxu0 }
 0x17c   : > { %717 = vst.msk [vmem:[%s1351_s24 + $0x20] sm:$0xff] %vm487_vm1, %v709_v22  ;;  %v710_v5 = vmax.f32 %v694_v59, 0.0 }
 0x17d   : > { %713 = vst.msk [vmem:[%s1351_s24] sm:$0xff] %vm487_vm1, %v705_v2  ;;  %v706_v6 = vmax.f32 %v678_v3, 0.0 }
 0x17e   : > { %718 = vst.msk [vmem:[%s1351_s24 + $0x28] sm:$0xff] %vm487_vm1, %v710_v5 }
 0x17f   : > { %714 = vst.msk [vmem:[%s1351_s24 + $0x8] sm:$0xff] %vm487_vm1, %v706_v6 }
 0x193   : > { %v698_v7 = vpop.f32.mrb[4].mxu1 }
 0x194   : > { %v682_v8 = vpop.f32.mrb[4].mxu0  ;;  %v699_v10 = vadd.f32 %v841_v62, %v698_v7  ;;  %v700_v36 = vpop.f32.mrb[5].mxu1 }
 0x195   : > { %v683_v20 = vadd.f32 %v841_v62, %v682_v8  ;;  %v684_v11 = vpop.f32.mrb[5].mxu0  ;;  %v701_v13 = vpop.f32.mrb[6].mxu1 }
 0x196   : > { %v711_v14 = vmax.f32 %v699_v10, 0.0  ;;  %v685_v42 = vpop.f32.mrb[6].mxu0  ;;  %v702_v15 = vadd.f32 %v841_v62, %v701_v13  ;;  %v703_v16 = vpop.f32.mrb[7].mxu1 }
 0x197   : > { %v707_v23 = vmax.f32 %v683_v20, 0.0  ;;  %v686_v19 = vadd.f32 %v841_v62, %v685_v42  ;;  %v687_v21 = vpop.f32.mrb[7].mxu0 }
 0x198   : > { %719 = vst.msk [vmem:[%s1351_s24 + $0x30] sm:$0xff] %vm487_vm1, %v711_v14  ;;  %v712_v24 = vmax.f32 %v702_v15, 0.0 }
 0x199   : > { %715 = vst.msk [vmem:[%s1351_s24 + $0x10] sm:$0xff] %vm487_vm1, %v707_v23  ;;  %v708_v25 = vmax.f32 %v686_v19, 0.0 }
 0x19a   : > { %720 = vst.msk [vmem:[%s1351_s24 + $0x38] sm:$0xff] %vm487_vm1, %v712_v24 }
 0x19b   : > { %716 = vst.msk [vmem:[%s1351_s24 + $0x18] sm:$0xff] %vm487_vm1, %v708_v25 }
 0x19c PF: > { %s13_s12 = sadd.s32 1, %s1048_s12  }
 0x19d   : > { %p10_p5 = scmp.ge.s32.totalorder %s13_s12, 4  }
 0x19f   :  { %12 = sbr.rel (!%p10_p5) target bundleno = 1 (0x1), region = 67 }

// kernel: _lambda_.5
= control target key start
LH: loop header
LB: loop body
LE: loop exit
PB: predicated region body
PF: predicated region fallthrough
CT: control target
= control target key end

     0   :  { %s4131_s12 = smov 0   ;;  %s4796_s0 = inlined_call_operand.vmem [shape: f32[8,17,17,3], index: 0, kind: input, shape index: {}]   ;;  %s4797_s1 = inlined_call_operand.vmem [shape: bf16[27,16], index: 1, kind: input, shape index: {}]   ;;  %s4798_s2 = inlined_call_operand.vmem [shape: f32[1,16], index: 2, kind: input, shape index: {}]   ;;  %s4799_s3 = inlined_call_operand.vmem [shape: f32[2,256,16], index: 3, kind: output, shape index: {}]  }
   0x1 LB: > { %s4137_s13 = sadd.s32 4294967295, %s4108_s12   ;;  %p2984_p0 = scmp.ge.s32.totalorder %s4108_s12, 1  ;;  %s4108_s12 = sphi %s4131_s12, %s13_s12  }
   0x2   : > { %p139_p1 = scmp.lt.s32.totalorder %s4108_s12, 3 }
   0x4   : > { %p140_p2 = pnand %p2984_p0, %p139_p1 }
   0x5   : > { %vm564_vm0 = vcmask (!%p140_p2), 1040384   ;;  %vm565_vm1 = vcmask (!%p140_p2), 1041408   ;;  %s2985_s14 = sshll.u32 (!%p140_p2), %s4137_s13, 2  ;;  %v4110_v0 = vmov (!%p140_p2), 65535   ;;  %v486_v8 = vld [vmem:[%s4797_s1] sm:$0x3] (!%p140_p2) }
   0x6   : > { %143 = sbr.rel (%p140_p2) target bundleno = 525 (0x20d), region = 32  ;;  %v566_v1 = vsel (!%p140_p2), %vm564_vm0, 4294967295, %v4110_v0  ;;  %v4095_v2 = vld [vmem:[%s4797_s1 + $0x4] ss:$0 sps:$4 sm:$0xcc] (!%p140_p2)   ;;  %p165_p3 = scmp.lt.s32.totalorder (!%p140_p2), %s2985_s14, 7 }
   0x7   : > { %v4145_v3 = vsel (!%p140_p2), %vm565_vm1, %v566_v1, 0  ;;  %v4096_v4 = vld [vmem:[%s4797_s1] ss:$0 sps:$4 sm:$0x66] (!%p140_p2)   ;;  %v1503_v5 = vrot.slane (!%p140_p2), %v4095_v2, 2  ;;  %vm515_vm2 = vcmask (!%p140_p2), 23552  }
   0x8   : > { %v508_v6 = vshrl.u32 (!%p140_p2), %v4096_v4, 16  ;;  %v511_v7 = vshll.u32 (!%p140_p2), %v4096_v4, 16  ;;  %v4097_v10 = vld [vmem:[%s4797_s1 + $0x4] sm:$0x18] (!%p140_p2)   ;;  %v4099_v16 = vld [vmem:[%s4797_s1] sm:$0x18] (!%p140_p2)   ;;  %v781_v21 = vand.u32 (!%p140_p2), %v4145_v3, %v486_v8 }
   0x9   : > { %v4154_v9 = vand.u32 (!%p140_p2), %v1503_v5, %v4145_v3  ;;  %v4098_v13 = vld [vmem:[%s4797_s1 + $0x8] ss:$0 sps:$4 sm:$0x66] (!%p140_p2)   ;;  %v1772_v14 = vshrl.u32 (!%p140_p2), %v4097_v10, 16  ;;  %v1775_v15 = vshll.u32 (!%p140_p2), %v4097_v10, 16  ;;  %v967_v30 = vrot.slane (!%p140_p2), %v4099_v16, 3 }
   0xa   : > { %v510_v11 = vrot.slane (!%p140_p2), %v508_v6, 1  ;;  %v513_v12 = vrot.slane (!%p140_p2), %v511_v7, 2  ;;  %v2043_v29 = vrot.slane (!%p140_p2), %v4098_v13, 1  ;;  %v4100_v5 = vld [vmem:[%s4797_s1 + $0x8] ss:$0 sps:$4 sm:$0xcc] (!%p140_p2)  }
   0xb   : > { %3657 = vmatprep.subr.bf16.mxu0 (!%p140_p2), %v4154_v9  ;;  %v1774_v22 = vrot.slane (!%p140_p2), %v1772_v14, 3  ;;  %v1777_v23 = vrot.slane (!%p140_p2), %v1775_v15, 4  ;;  %v4200_v47 = vand.u32 (!%p140_p2), %v967_v30, %v4145_v3  ;;  %v2309_v13 = vshrl.u32 (!%p140_p2), %v4100_v5, 16  ;;  %p171_p4 = scmp.lt.s32.totalorder (!%p140_p2), %s4137_s13, 1 }
   0xc   : > { %3658 = vmatpush3.bf16.msra.mxu0 (!%p140_p2), %v4154_v9  ;;  %v514_v17 = vor.u32 (!%p140_p2), %v513_v12, %v510_v11  ;;  %v4197_v46 = vand.u32 (!%p140_p2), %v2043_v29, %v4145_v3  ;;  %v2312_v14 = vshll.u32 (!%p140_p2), %v4100_v5, 16  ;;  %vm2892_vm3 = vcmask (!%p140_p2), 130048  }
   0xd   : > { %s4801_s14 = smov (!%p165_p3, %s2985_s14), 7  ;;  %v1778_v35 = vor.u32 %v1777_v23, %v1774_v22  ;;  %s4803_s13 = smov (!%p171_p4, %s4137_s13), 1 }
   0xe   : > { %s4085_s23 = smul.u32 408, %s4801_s14  ;;  %v569_v24 = vand.u32 %v4145_v3, %v514_v17  ;;  %v2314_v22 = vrot.slane %v2312_v14, 3  ;;  %s3367_s14 = sshll.u32 %s4803_s13, 8 }
   0xf   : > { %v1828_v39 = vand.u32 %v1778_v35, %v4145_v3  ;;  %s4692_s17 = scalar_lea.vmem %s4799_s3, %s3367_s14 }
  0x10   : > { %s4170_s30 = scalar_lea.vmem %s4796_s0, %s4085_s23  ;;  %3521 = vmatprep.subr.bf16.mxu1 %v569_v24 }
  0x11   : > { %v3053_v18 = vld [vmem:[%s4170_s30 + $0x4c8] sm:$0xff]  ;;  %v3054_v19 = vld [vmem:[%s4170_s30 + $0x4d0] sm:$0xff]  ;;  %v3055_v20 = vld [vmem:[%s4170_s30 + $0x4e0] sm:$0xff]  ;;  %3522 = vmatpush3.bf16.msra.mxu1 %v569_v24  ;;  %3691 = vmatprep.subr.bf16.mxu0 %v1828_v39 }
  0x12   : > { %v1483_v25 = vpack.c.bf16 %v3054_v19, %v3053_v18  ;;  %v3056_v26 = vld [vmem:[%s4170_s30 + $0x4e8] sm:$0xff]  ;;  %v2989_v27 = vld [vmem:[%s4170_s30 + $0x198] sm:$0xff]  ;;  %v2990_v28 = vld [vmem:[%s4170_s30 + $0x1a0] sm:$0xff]  ;;  %3555 = vmatprep.subr.bf16.mxu1 %v781_v21 }
  0x13   : > { %v1484_v31 = vpack.c.bf16 %v3056_v26, %v3055_v20  ;;  %v487_v32 = vpack.c.bf16 %v2990_v28, %v2989_v27  ;;  %v2991_v33 = vld [vmem:[%s4170_s30 + $0x1b0] sm:$0xff]  ;;  %v2992_v34 = vld [vmem:[%s4170_s30 + $0x1b8] sm:$0xff]  ;;  %v3058_v38 = vld [vmem:[%s4170_s30 + $0x500] sm:$0xff] }
  0x14   : > { %v3057_v36 = vld [vmem:[%s4170_s30 + $0x4f8] sm:$0xff]  ;;  %3659 = vmatprep.mubr.msk.bf16.mxu0 %vm515_vm2, %v1483_v25  ;;  %v4184_v37 = vpack.c.bf16 %v2992_v34, %v2991_v33  ;;  %v2993_v41 = vld [vmem:[%s4170_s30 + $0x1c8] sm:$0xff]  ;;  %v2994_v42 = vld [vmem:[%s4170_s30 + $0x1d0] sm:$0xff] }
  0x15   : > { %3660 = vmatmul.mubr.msk.bf16.vlgmr.msra.gmra.mrb[0].mxu0 %vm515_vm2, %v1484_v31  ;;  %v1485_v40 = vpack.c.bf16 %v3058_v38, %v3057_v36  ;;  %3523 = vmatprep.mubr.msk.bf16.mxu1 %vm515_vm2, %v487_v32  ;;  %v3059_v43 = vld [vmem:[%s4170_s30 + $0x510] sm:$0xff]  ;;  %v3060_v44 = vld [vmem:[%s4170_s30 + $0x518] sm:$0xff]  ;;  %v4194_v45 = vpack.c.bf16 %v2994_v42, %v2993_v41  ;;  %v3061_v48 = vld [vmem:[%s4170_s30 + $0x528] sm:$0xff] }
  0x16   : > { %v3062_v49 = vld [vmem:[%s4170_s30 + $0x530] sm:$0xff]  ;;  %3524 = vmatmul.mubr.msk.bf16.vlgmr.msra.gmra.mrb[0].mxu1 %vm515_vm2, %v4184_v37  ;;  %3692 = vmatpush3.bf16.msra.mxu0 %v1828_v39  ;;  %v1486_v50 = vpack.c.bf16 %v3060_v44, %v3059_v43  ;;  %v2995_v51 = vld [vmem:[%s4170_s30 + $0x1e0] sm:$0xff]  ;;  %v2996_v52 = vld [vmem:[%s4170_s30 + $0x1e8] sm:$0xff] }
  0x17   : > { %3663 = vmatprep.mubr.msk.bf16.mxu0 %vm515_vm2, %v1485_v40  ;;  %3556 = vmatpush3.bf16.msra.mxu1 %v781_v21  ;;  %v1487_v53 = vpack.c.bf16 %v3062_v49, %v3061_v48  ;;  %v2997_v54 = vld [vmem:[%s4170_s30 + $0x1f8] sm:$0xff]  ;;  %v2998_v55 = vld [vmem:[%s4170_s30 + $0x200] sm:$0xff]  ;;  %v4215_v56 = vpack.c.bf16 %v2996_v52, %v2995_v51  ;;  %v3064_v59 = vld [vmem:[%s4170_s30 + $0x548] sm:$0xff]  ;;  %v2311_v21 = vrot.slane %v2309_v13, 2 }
  0x18   : > { %3527 = vmatprep.mubr.msk.bf16.mxu1 %vm515_vm2, %v4194_v45  ;;  %3725 = vmatprep.subr.bf16.mxu0 %v4197_v46  ;;  %v4218_v57 = vpack.c.bf16 %v2998_v55, %v2997_v54  ;;  %v3063_v58 = vld [vmem:[%s4170_s30 + $0x540] sm:$0xff]  ;;  %v3065_v60 = vld [vmem:[%s4170_s30 + $0x558] sm:$0xff]  ;;  %v2999_v63 = vld [vmem:[%s4170_s30 + $0x210] sm:$0xff] }
  0x19   : > { %3589 = vmatprep.subr.bf16.mxu1 %v4200_v47  ;;  %v3066_v61 = vld [vmem:[%s4170_s30 + $0x560] sm:$0xff]  ;;  %v1488_v62 = vpack.c.bf16 %v3064_v59, %v3063_v58  ;;  %v3000_v0 = vld [vmem:[%s4170_s30 + $0x218] sm:$0xff]  ;;  %v3001_v2 = vld [vmem:[%s4170_s30 + $0x228] sm:$0xff]  ;;  %v2315_v29 = vor.u32 %v2314_v22, %v2311_v21 }
  0x1a   : > { %v1489_v1 = vpack.c.bf16 %v3066_v61, %v3065_v60  ;;  %v3002_v4 = vld [vmem:[%s4170_s30 + $0x230] sm:$0xff]  ;;  %v4236_v6 = vpack.c.bf16 %v3000_v0, %v2999_v63  ;;  %v3068_v10 = vld [vmem:[%s4170_s30 + $0x578] sm:$0xff]  ;;  %v3003_v16 = vld [vmem:[%s4170_s30 + $0x240] sm:$0xff] }
  0x1b   : > { %v4239_v7 = vpack.c.bf16 %v3002_v4, %v3001_v2  ;;  %v3067_v8 = vld [vmem:[%s4170_s30 + $0x570] sm:$0xff]  ;;  %v3086_v12 = vld [vmem:[%s4170_s30 + $0x339] sm:$0xff]  ;;  %v3004_v17 = vld [vmem:[%s4170_s30 + $0x248] sm:$0xff]  ;;  %v4273_v36 = vand.u32 %v2315_v29, %v4145_v3 }
  0x1c   : > { %v3085_v11 = vld [vmem:[%s4170_s30 + $0x331] sm:$0xff]  ;;  %v1490_v15 = vpack.c.bf16 %v3068_v10, %v3067_v8  ;;  %v3006_v20 = vld [vmem:[%s4170_s30 + $0x260] sm:$0xff]  ;;  %v4254_v23 = vpack.c.bf16 %v3004_v17, %v3003_v16  ;;  %v3087_v25 = vld [vmem:[%s4170_s30 + $0x349] sm:$0xff] }
  0x1d   : > { %3664 = vmatmul.mubr.msk.bf16.gmra.mrb[4].mxu0 %vm515_vm2, %v1486_v50  ;;  %v1748_v18 = vpack.c.bf16 %v3086_v12, %v3085_v11  ;;  %v3005_v19 = vld [vmem:[%s4170_s30 + $0x258] sm:$0xff]  ;;  %v3089_v27 = vld [vmem:[%s4170_s30 + $0x361] sm:$0xff]  ;;  %v3090_v28 = vld [vmem:[%s4170_s30 + $0x369] sm:$0xff] }
  0x1e   : > { %3667 = vmatprep.mubr.msk.bf16.mxu0 %vm515_vm2, %v1487_v53  ;;  %3528 = vmatmul.mubr.msk.bf16.gmra.mrb[4].mxu1 %vm515_vm2, %v4215_v56  ;;  %v4257_v24 = vpack.c.bf16 %v3006_v20, %v3005_v19  ;;  %v3088_v26 = vld [vmem:[%s4170_s30 + $0x351] sm:$0xff]  ;;  %v1750_v33 = vpack.c.bf16 %v3090_v28, %v3089_v27  ;;  %v3009_v34 = vld [vmem:[%s4170_s30 + $0x288] sm:$0xff]  ;;  %v3091_v40 = vld [vmem:[%s4170_s30 + $0x379] sm:$0xff] }
  0x1f   : > { %3531 = vmatprep.mubr.msk.bf16.mxu1 %vm515_vm2, %v4218_v57  ;;  %v1749_v30 = vpack.c.bf16 %v3088_v26, %v3087_v25  ;;  %v3007_v31 = vld [vmem:[%s4170_s30 + $0x270] sm:$0xff]  ;;  %v3008_v32 = vld [vmem:[%s4170_s30 + $0x278] sm:$0xff]  ;;  %v3092_v41 = vld [vmem:[%s4170_s30 + $0x381] sm:$0xff] }
  0x20   : > { %v3010_v35 = vld [vmem:[%s4170_s30 + $0x290] sm:$0xff]  ;;  %v4275_v38 = vpack.c.bf16 %v3008_v32, %v3007_v31  ;;  %v3094_v43 = vld [vmem:[%s4170_s30 + $0x399] sm:$0xff]  ;;  %v1751_v44 = vpack.c.bf16 %v3092_v41, %v3091_v40  ;;  %v3012_v48 = vld [vmem:[%s4170_s30 + $0x2a8] sm:$0xff] }
  0x21   : > { %v4278_v39 = vpack.c.bf16 %v3010_v35, %v3009_v34  ;;  %v3093_v42 = vld [vmem:[%s4170_s30 + $0x391] sm:$0xff]  ;;  %v3014_v51 = vld [vmem:[%s4170_s30 + $0x2c0] sm:$0xff]  ;;  %v3095_v54 = vld [vmem:[%s4170_s30 + $0x3a9] sm:$0xff] }
  0x22   : > { %v1752_v49 = vpack.c.bf16 %v3094_v43, %v3093_v42  ;;  %v3013_v50 = vld [vmem:[%s4170_s30 + $0x2b8] sm:$0xff]  ;;  %v3097_v58 = vld [vmem:[%s4170_s30 + $0x3c1] sm:$0xff]  ;;  %v3098_v59 = vld [vmem:[%s4170_s30 + $0x3c9] sm:$0xff] }
  0x23   : > { %v4298_v53 = vpack.c.bf16 %v3014_v51, %v3013_v50  ;;  %v3096_v55 = vld [vmem:[%s4170_s30 + $0x3b1] sm:$0xff]  ;;  %v1754_v63 = vpack.c.bf16 %v3098_v59, %v3097_v58  ;;  %v3017_v0 = vld [vmem:[%s4170_s30 + $0x2e8] sm:$0xff]  ;;  %v3099_v5 = vld [vmem:[%s4170_s30 + $0x3d9] sm:$0xff] }
  0x24   : > { %v1753_v60 = vpack.c.bf16 %v3096_v55, %v3095_v54  ;;  %v3015_v61 = vld [vmem:[%s4170_s30 + $0x2d0] sm:$0xff]  ;;  %v3100_v8 = vld [vmem:[%s4170_s30 + $0x3e1] sm:$0xff]  ;;  %v3102_v12 = vld [vmem:[%s4170_s30 + $0x3f9] sm:$0xff] }
  0x25   : > { %3668 = vmatmul.mubr.msk.bf16.gmra.mrb[8].mxu0 %vm515_vm2, %v1488_v62  ;;  %v3016_v62 = vld [vmem:[%s4170_s30 + $0x2d8] sm:$0xff]  ;;  %v4101_v10 = vld [vmem:[%s4797_s1 + $0x4] ss:$0 sps:$4 sm:$0x33]   ;;  %v1755_v13 = vpack.c.bf16 %v3100_v8, %v3099_v5  ;;  %v3103_v22 = vld [vmem:[%s4170_s30 + $0x409] sm:$0xff] }
  0x26   : > { %3671 = vmatprep.mubr.msk.bf16.mxu0 %vm515_vm2, %v1489_v1  ;;  %3532 = vmatmul.mubr.msk.bf16.gmra.mrb[8].mxu1 %vm515_vm2, %v4236_v6  ;;  %v3018_v1 = vld [vmem:[%s4170_s30 + $0x2f0] sm:$0xff]  ;;  %v4313_v2 = vpack.c.bf16 %v3016_v62, %v3015_v61  ;;  %v3019_v14 = vld [vmem:[%s4170_s30 + $0x300] sm:$0xff]  ;;  %v1235_v19 = vshll.u32 %v4101_v10, 16  ;;  %v1233_v26 = vshrl.u32 %v4101_v10, 16  ;;  %v179_v31 = vld [vmem:[%s4170_s30 + $0x18] sm:$0xff] }
  0x27   : > { %3535 = vmatprep.mubr.msk.bf16.mxu1 %vm515_vm2, %v4239_v7  ;;  %v4316_v4 = vpack.c.bf16 %v3018_v1, %v3017_v0  ;;  %v3101_v11 = vld [vmem:[%s4170_s30 + $0x3f1] sm:$0xff]  ;;  %v177_v17 = vld [vmem:[%s4170_s30] sm:$0xff]  ;;  %v3106_v29 = vld [vmem:[%s4170_s30 + $0x429] sm:$0xff] }
  0x28   : > { %v1756_v16 = vpack.c.bf16 %v3102_v12, %v3101_v11  ;;  %v3104_v25 = vld [vmem:[%s4170_s30 + $0x411] sm:$0xff]  ;;  %v1237_v27 = vrot.slane %v1235_v19, 1  ;;  %v3105_v28 = vld [vmem:[%s4170_s30 + $0x421] sm:$0xff]  ;;  %v3107_v43 = vld [vmem:[%s4170_s30 + $0x439] sm:$0xff] }
  0x29   : > { %v180_v32 = vld [vmem:[%s4170_s30 + $0x20] sm:$0xff]  ;;  %v181_v34 = vld [vmem:[%s4170_s30 + $0x30] sm:$0xff]  ;;  %v182_v35 = vld [vmem:[%s4170_s30 + $0x38] sm:$0xff] }
  0x2a   : > { %v1238_v40 = vor.u32 %v1237_v27, %v1233_v26  ;;  %v471_v41 = vpack.c.bf16 %v180_v32, %v179_v31  ;;  %v472_v42 = vpack.c.bf16 %v182_v35, %v181_v34  ;;  %v183_v51 = vld [vmem:[%s4170_s30 + $0x48] sm:$0xff]  ;;  %v184_v54 = vld [vmem:[%s4170_s30 + $0x50] sm:$0xff]  ;;  %v185_v58 = vld [vmem:[%s4170_s30 + $0x60] sm:$0xff] }
  0x2b   : > { %v186_v59 = vld [vmem:[%s4170_s30 + $0x68] sm:$0xff]  ;;  %v3112_v62 = vld [vmem:[%s4170_s30 + $0x471] sm:$0xff]  ;;  %v188_v8 = vld [vmem:[%s4170_s30 + $0x80] sm:$0xff] }
  0x2c   : > { %v474_v61 = vpack.c.bf16 %v186_v59, %v185_v58  ;;  %v3114_v0 = vld [vmem:[%s4170_s30 + $0x489] sm:$0xff]  ;;  %v187_v5 = vld [vmem:[%s4170_s30 + $0x78] sm:$0xff]  ;;  %v242_v58 = vld [vmem:[%s4170_s30 + $0x1] sm:$0xff] }
  0x2d   : > { %3672 = vmatmul.mubr.msk.bf16.gmra.mrb[12].mxu0 %vm515_vm2, %v1490_v15  ;;  %v3020_v15 = vld [vmem:[%s4170_s30 + $0x308] sm:$0xff]  ;;  %v189_v11 = vld [vmem:[%s4170_s30 + $0x90] sm:$0xff]  ;;  %v190_v12 = vld [vmem:[%s4170_s30 + $0x98] sm:$0xff] }
  0x2e   : > { %3693 = vmatprep.mubr.msk.bf16.mxu0 %vm515_vm2, %v1748_v18  ;;  %3536 = vmatmul.mubr.msk.bf16.gmra.mrb[12].mxu1 %vm515_vm2, %v4254_v23  ;;  %v178_v18 = vld [vmem:[%s4170_s30 + $0x8] sm:$0xff]  ;;  %v4334_v20 = vpack.c.bf16 %v3020_v15, %v3019_v14  ;;  %v476_v14 = vpack.c.bf16 %v190_v12, %v189_v11  ;;  %v3115_v15 = vld [vmem:[%s4170_s30 + $0x499] sm:$0xff]  ;;  %v192_v19 = vld [vmem:[%s4170_s30 + $0xb0] sm:$0xff] }
  0x2f   : > { %3539 = vmatprep.mubr.msk.bf16.mxu1 %vm515_vm2, %v4257_v24  ;;  %v470_v21 = vpack.c.bf16 %v178_v18, %v177_v17  ;;  %v191_v18 = vld [vmem:[%s4170_s30 + $0xa8] sm:$0xff]  ;;  %v198_v31 = vld [vmem:[%s4170_s30 + $0xf8] sm:$0xff]  ;;  %v200_v35 = vld [vmem:[%s4170_s30 + $0x110] sm:$0xff] }
  0x30   : > { %v2576_v27 = vld [vmem:[%s4797_s1 + $0xc] sm:$0x3]  ;;  %v250_v11 = vld [vmem:[%s4170_s30 + $0x61] sm:$0xff] }
  0x31   : > { %v4400_v32 = vand.u32 %v2576_v27, %v4145_v3  ;;  %v243_v59 = vld [vmem:[%s4170_s30 + $0x9] sm:$0xff]  ;;  %v257_v27 = vld [vmem:[%s4170_s30 + $0xb1] sm:$0xff] }
  0x32   : > { %v251_v12 = vld [vmem:[%s4170_s30 + $0x69] sm:$0xff] }
  0x35   : > { %3694 = vmatmul.mubr.msk.bf16.vlgmr.msra.gmra.mrb[0].mxu0 %vm515_vm2, %v1749_v30  ;;  %v1757_v30 = vpack.c.bf16 %v3104_v25, %v3103_v22  ;;  %v194_v22 = vld [vmem:[%s4170_s30 + $0xc8] sm:$0xff]  ;;  %v477_v25 = vpack.c.bf16 %v192_v19, %v191_v18 }
  0x36   : > { %3726 = vmatpush3.bf16.msra.mxu0 %v4197_v46  ;;  %3697 = vmatprep.mubr.msk.bf16.mxu0 %vm515_vm2, %v1750_v33  ;;  %v3011_v46 = vld [vmem:[%s4170_s30 + $0x2a0] sm:$0xff]  ;;  %v1758_v33 = vpack.c.bf16 %v3106_v29, %v3105_v28  ;;  %v195_v28 = vld [vmem:[%s4170_s30 + $0xd8] sm:$0xff] }
  0x37   : > { %3759 = vmatprep.subr.bf16.mxu0 %v4273_v36  ;;  %3540 = vmatmul.mubr.msk.bf16.gmra.mrb[16].mxu1 %vm515_vm2, %v4275_v38  ;;  %v4295_v52 = vpack.c.bf16 %v3012_v48, %v3011_v46  ;;  %v4354_v46 = vand.u32 %v1238_v40, %v4145_v3  ;;  %v3109_v48 = vld [vmem:[%s4170_s30 + $0x451] sm:$0xff]  ;;  %v196_v29 = vld [vmem:[%s4170_s30 + $0xe0] sm:$0xff]  ;;  %v199_v3 = vld [vmem:[%s4170_s30 + $0x108] sm:$0xff] }
  0x38   : > { %3543 = vmatprep.mubr.msk.bf16.mxu1 %vm515_vm2, %v4278_v39  ;;  %v201_v40 = vld [vmem:[%s4170_s30 + $0x120] sm:$0xff] }
  0x3d   : > { %3698 = vmatmul.mubr.msk.bf16.gmra.mrb[4].mxu0 %vm515_vm2, %v1751_v44  ;;  %v3108_v44 = vld [vmem:[%s4170_s30 + $0x441] sm:$0xff] }
  0x3e   : > { %3701 = vmatprep.mubr.msk.bf16.mxu0 %vm515_vm2, %v1752_v49  ;;  %v3110_v49 = vld [vmem:[%s4170_s30 + $0x459] sm:$0xff]  ;;  %v1759_v50 = vpack.c.bf16 %v3108_v44, %v3107_v43 }
  0x3f   : > { %3544 = vmatmul.mubr.msk.bf16.gmra.mrb[20].mxu1 %vm515_vm2, %v4295_v52  ;;  %v1760_v55 = vpack.c.bf16 %v3110_v49, %v3109_v48  ;;  %v203_v43 = vld [vmem:[%s4170_s30 + $0x138] sm:$0xff]  ;;  %v204_v44 = vld [vmem:[%s4170_s30 + $0x140] sm:$0xff]  ;;  %v205_v48 = vld [vmem:[%s4170_s30 + $0x150] sm:$0xff] }
  0x40   : > { %3547 = vmatprep.mubr.msk.bf16.mxu1 %vm515_vm2, %v4298_v53  ;;  %v206_v49 = vld [vmem:[%s4170_s30 + $0x158] sm:$0xff] }
  0x45   : > { %3702 = vmatmul.mubr.msk.bf16.gmra.mrb[8].mxu0 %vm515_vm2, %v1753_v60  ;;  %v473_v60 = vpack.c.bf16 %v184_v54, %v183_v51  ;;  %v484_v51 = vpack.c.bf16 %v206_v49, %v205_v48  ;;  %v207_v54 = vld [vmem:[%s4170_s30 + $0x168] sm:$0xff]  ;;  %v270_v48 = vld [vmem:[%s4170_s30 + $0x151] sm:$0xff]  ;;  %v271_v49 = vld [vmem:[%s4170_s30 + $0x159] sm:$0xff] }
  0x46   : > { %3705 = vmatprep.mubr.msk.bf16.mxu0 %vm515_vm2, %v1754_v63  ;;  %v3113_v63 = vld [vmem:[%s4170_s30 + $0x481] sm:$0xff] }
  0x47   : > { %3548 = vmatmul.mubr.msk.bf16.gmra.mrb[24].mxu1 %vm515_vm2, %v4313_v2  ;;  %v1762_v10 = vpack.c.bf16 %v3114_v0, %v3113_v63  ;;  %v246_v63 = vld [vmem:[%s4170_s30 + $0x31] sm:$0xff]  ;;  %v247_v0 = vld [vmem:[%s4170_s30 + $0x39] sm:$0xff] }
  0x48   : > { %3551 = vmatprep.mubr.msk.bf16.mxu1 %vm515_vm2, %v4316_v4 }
  0x4d   : > { %3706 = vmatmul.mubr.msk.bf16.gmra.mrb[12].mxu0 %vm515_vm2, %v1755_v13  ;;  %v475_v13 = vpack.c.bf16 %v188_v8, %v187_v5  ;;  %v4439_v5 = vpack.c.bf16 %v247_v0, %v246_v63  ;;  %v248_v8 = vld [vmem:[%s4170_s30 + $0x49] sm:$0xff]  ;;  %v3030_v0 = vld [vmem:[%s4170_s30 + $0x398] sm:$0xff] }
  0x4e   : > { %3709 = vmatprep.mubr.msk.bf16.mxu0 %vm515_vm2, %v1756_v16  ;;  %v3116_v16 = vld [vmem:[%s4170_s30 + $0x4a1] sm:$0xff]  ;;  %v3029_v63 = vld [vmem:[%s4170_s30 + $0x390] sm:$0xff] }
  0x4f   : > { %3552 = vmatmul.mubr.msk.bf16.gmra.mrb[28].mxu1 %vm515_vm2, %v4334_v20  ;;  %v1763_v17 = vpack.c.bf16 %v3116_v16, %v3115_v15  ;;  %v253_v15 = vld [vmem:[%s4170_s30 + $0x81] sm:$0xff]  ;;  %v254_v16 = vld [vmem:[%s4170_s30 + $0x91] sm:$0xff] }
  0x50   : > { %3557 = vmatprep.mubr.msk.bf16.mxu1 %vm515_vm2, %v470_v21  ;;  %v193_v21 = vld [vmem:[%s4170_s30 + $0xc0] sm:$0xff] }
  0x51   : > { %v478_v26 = vpack.c.bf16 %v194_v22, %v193_v21  ;;  %v3147_v21 = vld [vmem:[%s4170_s30 + $0x180] sm:$0xff]  ;;  %v3148_v22 = vld [vmem:[%s4170_s30 + $0x188] sm:$0xff] }
  0x55   : > { %3710 = vmatmul.mubr.msk.bf16.gmra.mrb[16].mxu0 %vm515_vm2, %v1757_v30  ;;  %v197_v30 = vld [vmem:[%s4170_s30 + $0xf0] sm:$0xff] }
  0x56   : > { %3713 = vmatprep.mubr.msk.bf16.mxu0 %vm515_vm2, %v1758_v33  ;;  %v479_v33 = vpack.c.bf16 %v196_v29, %v195_v28  ;;  %v480_v34 = vpack.c.bf16 %v198_v31, %v197_v30  ;;  %v258_v28 = vld [vmem:[%s4170_s30 + $0xc1] sm:$0xff]  ;;  %v259_v29 = vld [vmem:[%s4170_s30 + $0xc9] sm:$0xff] }
  0x57   : > { %3558 = vmatmul.mubr.msk.bf16.vlgmr.msra.gmra.mrb[0].mxu1 %vm515_vm2, %v471_v41  ;;  %v4485_v31 = vpack.c.bf16 %v259_v29, %v258_v28  ;;  %v3042_v28 = vld [vmem:[%s4170_s30 + $0x428] sm:$0xff] }
  0x58   : > { %3590 = vmatpush3.bf16.msra.mxu1 %v4200_v47  ;;  %3561 = vmatprep.mubr.msk.bf16.mxu1 %vm515_vm2, %v472_v42  ;;  %v3111_v47 = vld [vmem:[%s4170_s30 + $0x469] sm:$0xff] }
  0x59   : > { %3623 = vmatprep.subr.bf16.mxu1 %v4354_v46  ;;  %v1761_v1 = vpack.c.bf16 %v3112_v62, %v3111_v47  ;;  %v244_v47 = vld [vmem:[%s4170_s30 + $0x19] sm:$0xff]  ;;  %v245_v62 = vld [vmem:[%s4170_s30 + $0x21] sm:$0xff] }
  0x5d   : > { %3714 = vmatmul.mubr.msk.bf16.gmra.mrb[20].mxu0 %vm515_vm2, %v1759_v50  ;;  %v483_v50 = vpack.c.bf16 %v204_v44, %v203_v43  ;;  %v269_v44 = vld [vmem:[%s4170_s30 + $0x141] sm:$0xff] }
  0x5e   : > { %3717 = vmatprep.mubr.msk.bf16.mxu0 %vm515_vm2, %v1760_v55  ;;  %v208_v55 = vld [vmem:[%s4170_s30 + $0x170] sm:$0xff] }
  0x5f   : > { %3562 = vmatmul.mubr.msk.bf16.gmra.mrb[4].mxu1 %vm515_vm2, %v473_v60 }
  0x60   : > { %3565 = vmatprep.mubr.msk.bf16.mxu1 %vm515_vm2, %v474_v61 }
  0x65   : > { %3718 = vmatmul.mubr.msk.bf16.gmra.mrb[24].mxu0 %vm515_vm2, %v1761_v1  ;;  %v4436_v1 = vpack.c.bf16 %v245_v62, %v244_v47  ;;  %v3028_v62 = vld [vmem:[%s4170_s30 + $0x380] sm:$0xff] }
  0x66   : > { %3721 = vmatprep.mubr.msk.bf16.mxu0 %vm515_vm2, %v1762_v10  ;;  %v249_v10 = vld [vmem:[%s4170_s30 + $0x51] sm:$0xff] }
  0x67   : > { %3566 = vmatmul.mubr.msk.bf16.gmra.mrb[8].mxu1 %vm515_vm2, %v475_v13 }
  0x68   : > { %3569 = vmatprep.mubr.msk.bf16.mxu1 %vm515_vm2, %v476_v14 }
  0x6d   : > { %3722 = vmatmul.mubr.msk.bf16.gmra.mrb[28].mxu0 %vm515_vm2, %v1763_v17  ;;  %v255_v17 = vld [vmem:[%s4170_s30 + $0x99] sm:$0xff] }
  0x6e   : > { %3727 = vmatprep.mubr.msk.bf16.mxu0 %vm515_vm2, %v471_v41  ;;  %v202_v41 = vld [vmem:[%s4170_s30 + $0x128] sm:$0xff]  ;;  %v4469_v19 = vpack.c.bf16 %v255_v17, %v254_v16  ;;  %v3035_v16 = vld [vmem:[%s4170_s30 + $0x3d8] sm:$0xff]  ;;  %v3036_v17 = vld [vmem:[%s4170_s30 + $0x3e0] sm:$0xff] }
  0x6f   : > { %3570 = vmatmul.mubr.msk.bf16.gmra.mrb[12].mxu1 %vm515_vm2, %v477_v25 }
  0x70   : > { %3573 = vmatprep.mubr.msk.bf16.mxu1 %vm515_vm2, %v478_v26 }
  0x75   : > { %3728 = vmatmul.mubr.msk.bf16.vlgmr.msra.gmra.mrb[0].mxu0 %vm515_vm2, %v472_v42  ;;  %v481_v42 = vpack.c.bf16 %v200_v35, %v199_v3  ;;  %v262_v3 = vld [vmem:[%s4170_s30 + $0xf1] sm:$0xff]  ;;  %v263_v35 = vld [vmem:[%s4170_s30 + $0xf9] sm:$0xff] }
  0x76   : > { %3760 = vmatpush3.bf16.msra.mxu0 %v4273_v36  ;;  %3731 = vmatprep.mubr.msk.bf16.mxu0 %vm515_vm2, %v473_v60  ;;  %v482_v36 = vpack.c.bf16 %v202_v41, %v201_v40  ;;  %v485_v60 = vpack.c.bf16 %v208_v55, %v207_v54  ;;  %v4501_v41 = vpack.c.bf16 %v263_v35, %v262_v3  ;;  %v3021_v54 = vld [vmem:[%s4170_s30 + $0x330] sm:$0xff]  ;;  %v3022_v55 = vld [vmem:[%s4170_s30 + $0x338] sm:$0xff] }
  0x77   : > { %3793 = vmatprep.subr.bf16.mxu0 %v4400_v32  ;;  %3574 = vmatmul.mubr.msk.bf16.gmra.mrb[16].mxu1 %vm515_vm2, %v479_v33  ;;  %v3045_v3 = vld [vmem:[%s4170_s30 + $0x450] sm:$0xff]  ;;  %v3046_v35 = vld [vmem:[%s4170_s30 + $0x458] sm:$0xff] }
  0x78   : > { %3577 = vmatprep.mubr.msk.bf16.mxu1 %vm515_vm2, %v480_v34 }
  0x7d   : > { %3732 = vmatmul.mubr.msk.bf16.gmra.mrb[4].mxu0 %vm515_vm2, %v474_v61  ;;  %v944_v61 = vpack.c.bf16 %v243_v59, %v242_v58  ;;  %v3024_v59 = vld [vmem:[%s4170_s30 + $0x350] sm:$0xff] }
  0x7e   : > { %3735 = vmatprep.mubr.msk.bf16.mxu0 %vm515_vm2, %v475_v13  ;;  %v4452_v13 = vpack.c.bf16 %v249_v10, %v248_v8  ;;  %v1216_v8 = vpack.c.bf16 %v3030_v0, %v3029_v63  ;;  %v3033_v10 = vld [vmem:[%s4170_s30 + $0x3c0] sm:$0xff] }
  0x7f   : > { %3578 = vmatmul.mubr.msk.bf16.gmra.mrb[20].mxu1 %vm515_vm2, %v481_v42 }
  0x80   : > { %3581 = vmatprep.mubr.msk.bf16.mxu1 %vm515_vm2, %v482_v36 }
  0x85   : > { %3736 = vmatmul.mubr.msk.bf16.gmra.mrb[8].mxu0 %vm515_vm2, %v476_v14  ;;  %v4455_v14 = vpack.c.bf16 %v251_v12, %v250_v11  ;;  %v3034_v11 = vld [vmem:[%s4170_s30 + $0x3c8] sm:$0xff] }
  0x86   : > { %3739 = vmatprep.mubr.msk.bf16.mxu0 %vm515_vm2, %v477_v25  ;;  %v2038_v25 = vpack.c.bf16 %v3148_v22, %v3147_v21  ;;  %v3037_v21 = vld [vmem:[%s4170_s30 + $0x3f0] sm:$0xff]  ;;  %v3038_v22 = vld [vmem:[%s4170_s30 + $0x3f8] sm:$0xff] }
  0x87   : > { %3582 = vmatmul.mubr.msk.bf16.gmra.mrb[24].mxu1 %vm515_vm2, %v483_v50 }
  0x88   : > { %3585 = vmatprep.mubr.msk.bf16.mxu1 %vm515_vm2, %v484_v51 }
  0x8d   : > { %3740 = vmatmul.mubr.msk.bf16.gmra.mrb[12].mxu0 %vm515_vm2, %v478_v26  ;;  %v256_v26 = vld [vmem:[%s4170_s30 + $0xa9] sm:$0xff] }
  0x8e   : > { %3743 = vmatprep.mubr.msk.bf16.mxu0 %vm515_vm2, %v479_v33  ;;  %v4482_v30 = vpack.c.bf16 %v257_v27, %v256_v26  ;;  %v260_v33 = vld [vmem:[%s4170_s30 + $0xd9] sm:$0xff]  ;;  %v3040_v26 = vld [vmem:[%s4170_s30 + $0x410] sm:$0xff] }
  0x8f   : > { %3586 = vmatmul.mubr.msk.bf16.gmra.mrb[28].mxu1 %vm515_vm2, %v485_v60  ;;  %v3041_v27 = vld [vmem:[%s4170_s30 + $0x420] sm:$0xff] }
  0x90   : > { %3591 = vmatprep.mubr.msk.bf16.mxu1 %vm515_vm2, %v944_v61  ;;  %v3026_v61 = vld [vmem:[%s4170_s30 + $0x368] sm:$0xff] }
  0x95   : > { %3744 = vmatmul.mubr.msk.bf16.gmra.mrb[16].mxu0 %vm515_vm2, %v480_v34  ;;  %v261_v34 = vld [vmem:[%s4170_s30 + $0xe1] sm:$0xff] }
  0x96   : > { %3747 = vmatprep.mubr.msk.bf16.mxu0 %vm515_vm2, %v481_v42  ;;  %v4497_v40 = vpack.c.bf16 %v261_v34, %v260_v33  ;;  %v265_v42 = vld [vmem:[%s4170_s30 + $0x111] sm:$0xff]  ;;  %v1222_v33 = vpack.c.bf16 %v3042_v28, %v3041_v27  ;;  %v3044_v34 = vld [vmem:[%s4170_s30 + $0x440] sm:$0xff] }
  0x97   : > { %3592 = vmatmul.mubr.msk.bf16.vlgmr.msra.gmra.mrb[0].mxu1 %vm515_vm2, %v4436_v1 }
  0x98   : > { %3624 = vmatpush3.bf16.msra.mxu1 %v4354_v46  ;;  %3595 = vmatprep.mubr.msk.bf16.mxu1 %vm515_vm2, %v4439_v5  ;;  %v252_v46 = vld [vmem:[%s4170_s30 + $0x79] sm:$0xff] }
  0x99   : > { %3827 = vmatprep.subr.bf16.mxu1 %v4154_v9  ;;  %v4466_v18 = vpack.c.bf16 %v253_v15, %v252_v46  ;;  %v3180_v46 = vld [vmem:[%s4170_s30 + $0x320] sm:$0xff] }
  0x9d   : > { %3748 = vmatmul.mubr.msk.bf16.gmra.mrb[20].mxu0 %vm515_vm2, %v482_v36  ;;  %v267_v36 = vld [vmem:[%s4170_s30 + $0x129] sm:$0xff] }
  0x9e   : > { %3751 = vmatprep.mubr.msk.bf16.mxu0 %vm515_vm2, %v483_v50 }
  0x9f   : > { %3596 = vmatmul.mubr.msk.bf16.gmra.mrb[4].mxu1 %vm515_vm2, %v4452_v13 }
  0xa0   : > { %3599 = vmatprep.mubr.msk.bf16.mxu1 %vm515_vm2, %v4455_v14 }
  0xa5   : > { %3752 = vmatmul.mubr.msk.bf16.gmra.mrb[24].mxu0 %vm515_vm2, %v484_v51  ;;  %v273_v51 = vld [vmem:[%s4170_s30 + $0x171] sm:$0xff] }
  0xa6   : > { %3755 = vmatprep.mubr.msk.bf16.mxu0 %vm515_vm2, %v485_v60  ;;  %v3025_v60 = vld [vmem:[%s4170_s30 + $0x360] sm:$0xff] }
  0xa7   : > { %3600 = vmatmul.mubr.msk.bf16.gmra.mrb[8].mxu1 %vm515_vm2, %v4466_v18 }
  0xa8   : > { %3603 = vmatprep.mubr.msk.bf16.mxu1 %vm515_vm2, %v4469_v19 }
  0xad   : > { %3756 = vmatmul.mubr.msk.bf16.gmra.mrb[28].mxu0 %vm515_vm2, %v2038_v25  ;;  %v3039_v25 = vld [vmem:[%s4170_s30 + $0x408] sm:$0xff] }
  0xae   : > { %3761 = vmatprep.mubr.msk.bf16.mxu0 %vm515_vm2, %v4184_v37  ;;  %v264_v37 = vld [vmem:[%s4170_s30 + $0x109] sm:$0xff]  ;;  %v1221_v29 = vpack.c.bf16 %v3040_v26, %v3039_v25  ;;  %v4686_v26 = vld [vmem:[%s4798_s2] ss:$0 sm:$0xff] }
  0xaf   : > { %3604 = vmatmul.mubr.msk.bf16.gmra.mrb[12].mxu1 %vm515_vm2, %v4482_v30  ;;  %v4514_v43 = vpack.c.bf16 %v265_v42, %v264_v37  ;;  %v3048_v42 = vld [vmem:[%s4170_s30 + $0x470] sm:$0xff] }
  0xb0   : > { %3607 = vmatprep.mubr.msk.bf16.mxu1 %vm515_vm2, %v4485_v31 }
  0xb5   : > { %3762 = vmatmul.mubr.msk.bf16.vlgmr.msra.gmra.mrb[0].mxu0 %vm515_vm2, %v4194_v45  ;;  %v266_v45 = vld [vmem:[%s4170_s30 + $0x121] sm:$0xff] }
  0xb6   : > { %3794 = vmatpush3.bf16.msra.mxu0 %v4400_v32  ;;  %3765 = vmatprep.mubr.msk.bf16.mxu0 %vm515_vm2, %v4215_v56  ;;  %v4518_v32 = vpack.c.bf16 %v267_v36, %v266_v45  ;;  %v268_v56 = vld [vmem:[%s4170_s30 + $0x139] sm:$0xff]  ;;  %v3050_v36 = vld [vmem:[%s4170_s30 + $0x488] sm:$0xff] }
  0xb7   : > { %3608 = vmatmul.mubr.msk.bf16.gmra.mrb[16].mxu1 %vm515_vm2, %v4497_v40  ;;  %v4530_v50 = vpack.c.bf16 %v269_v44, %v268_v56  ;;  %v3049_v45 = vld [vmem:[%s4170_s30 + $0x480] sm:$0xff] }
  0xb8   : > { %3611 = vmatprep.mubr.msk.bf16.mxu1 %vm515_vm2, %v4501_v41  ;;  %v3052_v44 = vld [vmem:[%s4170_s30 + $0x4a0] sm:$0xff] }
  0xbd   : > { %3766 = vmatmul.mubr.msk.bf16.gmra.mrb[4].mxu0 %vm515_vm2, %v4218_v57  ;;  %v4534_v57 = vpack.c.bf16 %v271_v49, %v270_v48  ;;  %v3069_v48 = vld [vmem:[%s4170_s30 + $0x588] sm:$0xff]  ;;  %v3070_v49 = vld [vmem:[%s4170_s30 + $0x590] sm:$0xff] }
  0xbe   : > { %3769 = vmatprep.mubr.msk.bf16.mxu0 %vm515_vm2, %v4236_v6  ;;  %v272_v6 = vld [vmem:[%s4170_s30 + $0x169] sm:$0xff] }
  0xbf   : > { %3612 = vmatmul.mubr.msk.bf16.gmra.mrb[20].mxu1 %vm515_vm2, %v4514_v43  ;;  %v4546_v58 = vpack.c.bf16 %v273_v51, %v272_v6  ;;  %v3072_v51 = vld [vmem:[%s4170_s30 + $0x5a8] sm:$0xff] }
  0xc0   : > { %3615 = vmatprep.mubr.msk.bf16.mxu1 %vm515_vm2, %v4518_v32 }
  0xc5   : > { %3770 = vmatmul.mubr.msk.bf16.gmra.mrb[8].mxu0 %vm515_vm2, %v4239_v7  ;;  %v1212_v7 = vpack.c.bf16 %v3022_v55, %v3021_v54  ;;  %v3073_v54 = vld [vmem:[%s4170_s30 + $0x5b8] sm:$0xff]  ;;  %v3074_v55 = vld [vmem:[%s4170_s30 + $0x5c0] sm:$0xff] }
  0xc6   : > { %3773 = vmatprep.mubr.msk.bf16.mxu0 %vm515_vm2, %v4254_v23  ;;  %v3023_v23 = vld [vmem:[%s4170_s30 + $0x348] sm:$0xff] }
  0xc7   : > { %3616 = vmatmul.mubr.msk.bf16.gmra.mrb[24].mxu1 %vm515_vm2, %v4530_v50  ;;  %v1213_v47 = vpack.c.bf16 %v3024_v59, %v3023_v23  ;;  %v3076_v23 = vld [vmem:[%s4170_s30 + $0x5d8] sm:$0xff]  ;;  %v3077_v59 = vld [vmem:[%s4170_s30 + $0x5e8] sm:$0xff] }
  0xc8   : > { %3619 = vmatprep.mubr.msk.bf16.mxu1 %vm515_vm2, %v4534_v57 }
  0xcd   : > { %3774 = vmatmul.mubr.msk.bf16.gmra.mrb[12].mxu0 %vm515_vm2, %v4257_v24  ;;  %v1214_v24 = vpack.c.bf16 %v3026_v61, %v3025_v60  ;;  %v3078_v60 = vld [vmem:[%s4170_s30 + $0x5f0] sm:$0xff] }
  0xce   : > { %3777 = vmatprep.mubr.msk.bf16.mxu0 %vm515_vm2, %v4275_v38  ;;  %v3027_v38 = vld [vmem:[%s4170_s30 + $0x378] sm:$0xff] }
  0xcf   : > { %3620 = vmatmul.mubr.msk.bf16.gmra.mrb[28].mxu1 %vm515_vm2, %v4546_v58 }
  0xd0   : > { %3625 = vmatprep.mubr.msk.bf16.mxu1 %vm515_vm2, %v1212_v7 }
  0xd5   : > { %3778 = vmatmul.mubr.msk.bf16.gmra.mrb[16].mxu0 %vm515_vm2, %v4278_v39  ;;  %v1215_v39 = vpack.c.bf16 %v3028_v62, %v3027_v38  ;;  %v3082_v38 = vld [vmem:[%s4170_s30 + $0x620] sm:$0xff] }
  0xd6   : > { %3781 = vmatprep.mubr.msk.bf16.mxu0 %vm515_vm2, %v4295_v52  ;;  %v3032_v52 = vld [vmem:[%s4170_s30 + $0x3b0] sm:$0xff] }
  0xd7   : > { %3626 = vmatmul.mubr.msk.bf16.vlgmr.msra.gmra.mrb[0].mxu1 %vm515_vm2, %v1213_v47  ;;  %v3080_v47 = vld [vmem:[%s4170_s30 + $0x608] sm:$0xff] }
  0xd8   : > { %3828 = vmatpush3.bf16.msra.mxu1 %v4154_v9  ;;  %3629 = vmatprep.mubr.msk.bf16.mxu1 %vm515_vm2, %v1214_v24  ;;  %v3031_v9 = vld [vmem:[%s4170_s30 + $0x3a8] sm:$0xff]  ;;  %v3081_v24 = vld [vmem:[%s4170_s30 + $0x618] sm:$0xff] }
  0xd9   : > { %v1217_v12 = vpack.c.bf16 %v3032_v52, %v3031_v9  ;;  %v1497_v63 = vpack.c.bf16 %v3082_v38, %v3081_v24 }
  0xdd   : > { %3782 = vmatmul.mubr.msk.bf16.gmra.mrb[20].mxu0 %vm515_vm2, %v4298_v53  ;;  %v1218_v53 = vpack.c.bf16 %v3034_v11, %v3033_v10 }
  0xde   : > { %3785 = vmatprep.mubr.msk.bf16.mxu0 %vm515_vm2, %v4313_v2  ;;  %v3179_v2 = vld [vmem:[%s4170_s30 + $0x318] sm:$0xff] }
  0xdf   : > { %3630 = vmatmul.mubr.msk.bf16.gmra.mrb[4].mxu1 %vm515_vm2, %v1215_v39  ;;  %v2303_v15 = vpack.c.bf16 %v3180_v46, %v3179_v2  ;;  %v3083_v39 = vld [vmem:[%s4170_s30 + $0x630] sm:$0xff] }
  0xe0   : > { %3633 = vmatprep.mubr.msk.bf16.mxu1 %vm515_vm2, %v1216_v8  ;;  %v3084_v8 = vld [vmem:[%s4170_s30 + $0x638] sm:$0xff] }
  0xe1   : > { %v1498_v9 = vpack.c.bf16 %v3084_v8, %v3083_v39 }
  0xe5   : > { %3786 = vmatmul.mubr.msk.bf16.gmra.mrb[24].mxu0 %vm515_vm2, %v4316_v4  ;;  %v1219_v4 = vpack.c.bf16 %v3036_v17, %v3035_v16 }
  0xe6   : > { %3789 = vmatprep.mubr.msk.bf16.mxu0 %vm515_vm2, %v4334_v20  ;;  %v1220_v20 = vpack.c.bf16 %v3038_v22, %v3037_v21 }
  0xe7   : > { %3634 = vmatmul.mubr.msk.bf16.gmra.mrb[8].mxu1 %vm515_vm2, %v1217_v12 }
  0xe8   : > { %3637 = vmatprep.mubr.msk.bf16.mxu1 %vm515_vm2, %v1218_v53 }
  0xed   : > { %3790 = vmatmul.mubr.msk.bf16.gmra.mrb[28].mxu0 %vm515_vm2, %v2303_v15 }
  0xee   : > { %3795 = vmatprep.mubr.msk.bf16.mxu0 %vm515_vm2, %v4436_v1  ;;  %v3043_v1 = vld [vmem:[%s4170_s30 + $0x438] sm:$0xff] }
  0xef   : > { %3638 = vmatmul.mubr.msk.bf16.gmra.mrb[12].mxu1 %vm515_vm2, %v1219_v4  ;;  %v1223_v37 = vpack.c.bf16 %v3044_v34, %v3043_v1 }
  0xf0   : > { %3641 = vmatprep.mubr.msk.bf16.mxu1 %vm515_vm2, %v1220_v20 }
  0xf5   : > { %3796 = vmatmul.mubr.msk.bf16.vlgmr.msra.gmra.mrb[0].mxu0 %vm515_vm2, %v4439_v5  ;;  %v1224_v5 = vpack.c.bf16 %v3046_v35, %v3045_v3 }
  0xf6   : > { %3799 = vmatprep.mubr.msk.bf16.mxu0 %vm515_vm2, %v4452_v13  ;;  %v3047_v13 = vld [vmem:[%s4170_s30 + $0x468] sm:$0xff] }
  0xf7   : > { %3642 = vmatmul.mubr.msk.bf16.gmra.mrb[16].mxu1 %vm515_vm2, %v1221_v29  ;;  %v1225_v56 = vpack.c.bf16 %v3048_v42, %v3047_v13 }
  0xf8   : > { %3645 = vmatprep.mubr.msk.bf16.mxu1 %vm515_vm2, %v1222_v33 }
  0xfd   : > { %3800 = vmatmul.mubr.msk.bf16.gmra.mrb[4].mxu0 %vm515_vm2, %v4455_v14  ;;  %v1226_v14 = vpack.c.bf16 %v3050_v36, %v3049_v45 }
  0xfe   : > { %3803 = vmatprep.mubr.msk.bf16.mxu0 %vm515_vm2, %v4466_v18  ;;  %v3051_v18 = vld [vmem:[%s4170_s30 + $0x498] sm:$0xff] }
  0xff   : > { %3646 = vmatmul.mubr.msk.bf16.gmra.mrb[20].mxu1 %vm515_vm2, %v1223_v37  ;;  %v1227_v6 = vpack.c.bf16 %v3052_v44, %v3051_v18 }
 0x100   : > { %3649 = vmatprep.mubr.msk.bf16.mxu1 %vm515_vm2, %v1224_v5 }
 0x105   : > { %3804 = vmatmul.mubr.msk.bf16.gmra.mrb[8].mxu0 %vm515_vm2, %v4469_v19  ;;  %v1491_v19 = vpack.c.bf16 %v3070_v49, %v3069_v48 }
 0x106   : > { %3807 = vmatprep.mubr.msk.bf16.mxu0 %vm515_vm2, %v4482_v30  ;;  %v3071_v30 = vld [vmem:[%s4170_s30 + $0x5a0] sm:$0xff] }
 0x107   : > { %3650 = vmatmul.mubr.msk.bf16.gmra.mrb[24].mxu1 %vm515_vm2, %v1225_v56  ;;  %v1492_v7 = vpack.c.bf16 %v3072_v51, %v3071_v30 }
 0x108   : > { %3653 = vmatprep.mubr.msk.bf16.mxu1 %vm515_vm2, %v1226_v14 }
 0x10d   : > { %3808 = vmatmul.mubr.msk.bf16.gmra.mrb[12].mxu0 %vm515_vm2, %v4485_v31  ;;  %v1493_v31 = vpack.c.bf16 %v3074_v55, %v3073_v54 }
 0x10e   : > { %3811 = vmatprep.mubr.msk.bf16.mxu0 %vm515_vm2, %v4497_v40  ;;  %v3075_v40 = vld [vmem:[%s4170_s30 + $0x5d0] sm:$0xff] }
 0x10f   : > { %3654 = vmatmul.mubr.msk.bf16.gmra.mrb[28].mxu1 %vm515_vm2, %v1227_v6  ;;  %v1494_v61 = vpack.c.bf16 %v3076_v23, %v3075_v40 }
 0x110   : > { %3675 = vmatprep.mubr.msk.bf16.mxu1 %vm515_vm2, %v1491_v19 }
 0x115   : > { %3812 = vmatmul.mubr.msk.bf16.gmra.mrb[16].mxu0 %vm515_vm2, %v4501_v41  ;;  %v1495_v41 = vpack.c.bf16 %v3078_v60, %v3077_v59 }
 0x116   : > { %3815 = vmatprep.mubr.msk.bf16.mxu0 %vm515_vm2, %v4514_v43  ;;  %v3079_v43 = vld [vmem:[%s4170_s30 + $0x600] sm:$0xff] }
 0x117   : > { %3676 = vmatmul.mubr.msk.bf16.vlgmr.msra.gmra.mrb[16].mxu1 %vm515_vm2, %v1492_v7  ;;  %v1496_v62 = vpack.c.bf16 %v3080_v47, %v3079_v43 }
 0x118   : > { %3679 = vmatprep.mubr.msk.bf16.mxu1 %vm515_vm2, %v1493_v31 }
 0x11d   : > { %3816 = vmatmul.mubr.msk.bf16.gmra.mrb[20].mxu0 %vm515_vm2, %v4518_v32  ;;  %v3211_v32 = vld [vmem:[%s4170_s30 + $0x181] sm:$0xff] }
 0x11e   : > { %3819 = vmatprep.mubr.msk.bf16.mxu0 %vm515_vm2, %v4530_v50  ;;  %v3212_v50 = vld [vmem:[%s4170_s30 + $0x189] sm:$0xff] }
 0x11f   : > { %3680 = vmatmul.mubr.msk.bf16.gmra.mrb[20].mxu1 %vm515_vm2, %v1494_v61  ;;  %v2575_v0 = vpack.c.bf16 %v3212_v50, %v3211_v32 }
 0x120   : > { %3683 = vmatprep.mubr.msk.bf16.mxu1 %vm515_vm2, %v1495_v41 }
 0x125   : > { %3820 = vmatmul.mubr.msk.bf16.gmra.mrb[24].mxu0 %vm515_vm2, %v4534_v57 }
 0x126   : > { %3823 = vmatprep.mubr.msk.bf16.mxu0 %vm515_vm2, %v4546_v58 }
 0x127   : > { %3684 = vmatmul.mubr.msk.bf16.gmra.mrb[24].mxu1 %vm515_vm2, %v1496_v62 }
 0x128   : > { %3687 = vmatprep.mubr.msk.bf16.mxu1 %vm515_vm2, %v1497_v63 }
 0x12d   : > { %3824 = vmatmul.mubr.msk.bf16.gmra.mrb[28].mxu0 %vm515_vm2, %v2575_v0 }
 0x12f   : > { %3688 = vmatmul.mubr.msk.bf16.gmra.mrb[28].mxu1 %vm515_vm2, %v1498_v9 }
 0x1aa   : > { %v3627_v57 = vpop.f32.mrb[0].mxu1 }
 0x1ab   : > { %v1324_v52 = vpop.f32.mrb[1].mxu1 }
 0x1ac   : > { %v3628_v10 = vpop.f32.mrb[2].mxu1 }
 0x1ad   : > { %v1327_v58 = vpop.f32.mrb[3].mxu1 }
 0x1b2   : > { %v3631_v11 = vpop.f32.mrb[4].mxu1 }
 0x1b3   : > { %v1340_v12 = vpop.f32.mrb[5].mxu1 }
 0x1b4   : > { %v3632_v53 = vpop.f32.mrb[6].mxu1 }
 0x1b5   : > { %v1343_v2 = vpop.f32.mrb[7].mxu1 }
 0x1ba   : > { %v3635_v46 = vpop.f32.mrb[8].mxu1 }
 0x1bb   : > { %v1356_v15 = vpop.f32.mrb[9].mxu1 }
 0x1bc   : > { %v3636_v16 = vpop.f32.mrb[10].mxu1 }
 0x1bd   : > { %v1359_v17 = vpop.f32.mrb[11].mxu1 }
 0x1c2   : > { %v4674_v21 = vpop.f32.mrb[12].mxu1 }
 0x1c3   : > { %v4676_v22 = vpop.f32.mrb[13].mxu1 }
 0x1c4   : > { %v4678_v4 = vpop.f32.mrb[14].mxu1 }
 0x1c5   : > { %v4681_v20 = vpop.f32.mrb[15].mxu1 }
 0x1c8   : > { %v3797_v25 = vpop.f32.mrb[0].mxu0 }
 0x1c9   : > { %v3829_v27 = vadd.f32 %v3797_v25, %v3627_v57  ;;  %v2662_v28 = vpop.f32.mrb[1].mxu0 }
 0x1ca   : > { %v3830_v29 = vadd.f32 %v2662_v28, %v1324_v52  ;;  %v3798_v33 = vpop.f32.mrb[2].mxu0 }
 0x1cb   : > { %v2830_v1 = vadd.f32 %v3829_v27, %v4686_v26  ;;  %v3831_v34 = vadd.f32 %v3798_v33, %v3628_v10  ;;  %v2665_v3 = vpop.f32.mrb[3].mxu0 }
 0x1cc   : > { %v2828_v35 = vadd.f32 %v3830_v29, %v4686_v26  ;;  %v3832_v37 = vadd.f32 %v2665_v3, %v1327_v58 }
 0x1cd   : > { %v2862_v5 = vmax.f32 %v2830_v1, 0.0  ;;  %v2831_v13 = vadd.f32 %v3831_v34, %v4686_v26 }
 0x1ce   : > { %v2860_v42 = vmax.f32 %v2828_v35, 0.0  ;;  %v2829_v45 = vadd.f32 %v3832_v37, %v4686_v26 }
 0x1cf   : > { %2895 = vst.msk [vmem:[%s4692_s17 + $0x10] sm:$0xff] %vm2892_vm3, %v2862_v5  ;;  %v2863_v36 = vmax.f32 %v2831_v13, 0.0 }
 0x1d0   : > { %2893 = vst.msk [vmem:[%s4692_s17] sm:$0xff] %vm2892_vm3, %v2860_v42  ;;  %v2861_v56 = vmax.f32 %v2829_v45, 0.0  ;;  %v3801_v14 = vpop.f32.mrb[4].mxu0 }
 0x1d1   : > { %2896 = vst.msk [vmem:[%s4692_s17 + $0x18] sm:$0xff] %vm2892_vm3, %v2863_v36  ;;  %v3833_v18 = vadd.f32 %v3801_v14, %v3631_v11  ;;  %v2678_v44 = vpop.f32.mrb[5].mxu0 }
 0x1d2   : > { %2894 = vst.msk [vmem:[%s4692_s17 + $0x8] sm:$0xff] %vm2892_vm3, %v2861_v56  ;;  %v3834_v48 = vadd.f32 %v2678_v44, %v1340_v12  ;;  %v3802_v49 = vpop.f32.mrb[6].mxu0 }
 0x1d3   : > { %v2834_v6 = vadd.f32 %v3833_v18, %v4686_v26  ;;  %v3835_v19 = vadd.f32 %v3802_v49, %v3632_v53  ;;  %v2681_v30 = vpop.f32.mrb[7].mxu0 }
 0x1d4   : > { %v2832_v51 = vadd.f32 %v3834_v48, %v4686_v26  ;;  %v3836_v54 = vadd.f32 %v2681_v30, %v1343_v2 }
 0x1d5   : > { %v2866_v55 = vmax.f32 %v2834_v6, 0.0  ;;  %v2835_v7 = vadd.f32 %v3835_v19, %v4686_v26 }
 0x1d6   : > { %v2864_v31 = vmax.f32 %v2832_v51, 0.0  ;;  %v2833_v40 = vadd.f32 %v3836_v54, %v4686_v26 }
 0x1d7   : > { %2899 = vst.msk [vmem:[%s4692_s17 + $0x30] sm:$0xff] %vm2892_vm3, %v2866_v55  ;;  %v2867_v23 = vmax.f32 %v2835_v7, 0.0 }
 0x1d8   : > { %2897 = vst.msk [vmem:[%s4692_s17 + $0x20] sm:$0xff] %vm2892_vm3, %v2864_v31  ;;  %v2865_v59 = vmax.f32 %v2833_v40, 0.0  ;;  %v3805_v60 = vpop.f32.mrb[8].mxu0 }
 0x1d9   : > { %2900 = vst.msk [vmem:[%s4692_s17 + $0x38] sm:$0xff] %vm2892_vm3, %v2867_v23  ;;  %v3837_v61 = vadd.f32 %v3805_v60, %v3635_v46  ;;  %v2694_v41 = vpop.f32.mrb[9].mxu0 }
 0x1da   : > { %2898 = vst.msk [vmem:[%s4692_s17 + $0x28] sm:$0xff] %vm2892_vm3, %v2865_v59  ;;  %v3838_v43 = vadd.f32 %v2694_v41, %v1356_v15  ;;  %v3806_v47 = vpop.f32.mrb[10].mxu0 }
 0x1db   : > { %v2838_v24 = vadd.f32 %v3837_v61, %v4686_v26  ;;  %v3839_v38 = vadd.f32 %v3806_v47, %v3636_v16  ;;  %v2697_v62 = vpop.f32.mrb[11].mxu0 }
 0x1dc   : > { %v2836_v63 = vadd.f32 %v3838_v43, %v4686_v26  ;;  %v3840_v32 = vadd.f32 %v2697_v62, %v1359_v17 }
 0x1dd   : > { %v2870_v50 = vmax.f32 %v2838_v24, 0.0  ;;  %v2839_v0 = vadd.f32 %v3839_v38, %v4686_v26 }
 0x1de   : > { %v2868_v39 = vmax.f32 %v2836_v63, 0.0  ;;  %v2837_v8 = vadd.f32 %v3840_v32, %v4686_v26 }
 0x1df   : > { %2903 = vst.msk [vmem:[%s4692_s17 + $0x50] sm:$0xff] %vm2892_vm3, %v2870_v50  ;;  %v2871_v9 = vmax.f32 %v2839_v0, 0.0 }
 0x1e0   : > { %2901 = vst.msk [vmem:[%s4692_s17 + $0x40] sm:$0xff] %vm2892_vm3, %v2868_v39  ;;  %v2869_v57 = vmax.f32 %v2837_v8, 0.0  ;;  %v3809_v52 = vpop.f32.mrb[12].mxu0 }
 0x1e1   : > { %2904 = vst.msk [vmem:[%s4692_s17 + $0x58] sm:$0xff] %vm2892_vm3, %v2871_v9  ;;  %v3841_v10 = vadd.f32 %v3809_v52, %v4674_v21  ;;  %v2710_v58 = vpop.f32.mrb[13].mxu0 }
 0x1e2   : > { %2902 = vst.msk [vmem:[%s4692_s17 + $0x48] sm:$0xff] %vm2892_vm3, %v2869_v57  ;;  %v3842_v11 = vadd.f32 %v2710_v58, %v4676_v22  ;;  %v3810_v12 = vpop.f32.mrb[14].mxu0 }
 0x1e3   : > { %v2842_v53 = vadd.f32 %v3841_v10, %v4686_v26  ;;  %v3843_v2 = vadd.f32 %v3810_v12, %v4678_v4  ;;  %v2713_v46 = vpop.f32.mrb[15].mxu0 }
 0x1e4   : > { %v2840_v15 = vadd.f32 %v3842_v11, %v4686_v26  ;;  %v3844_v16 = vadd.f32 %v2713_v46, %v4681_v20 }
 0x1e5   : > { %v2874_v17 = vmax.f32 %v2842_v53, 0.0  ;;  %v2843_v21 = vadd.f32 %v3843_v2, %v4686_v26 }
 0x1e6   : > { %v2872_v25 = vmax.f32 %v2840_v15, 0.0  ;;  %v2841_v27 = vadd.f32 %v3844_v16, %v4686_v26 }
 0x1e7   : > { %2907 = vst.msk [vmem:[%s4692_s17 + $0x70] sm:$0xff] %vm2892_vm3, %v2874_v17  ;;  %v2875_v22 = vmax.f32 %v2843_v21, 0.0 }
 0x1e8   : > { %2905 = vst.msk [vmem:[%s4692_s17 + $0x60] sm:$0xff] %vm2892_vm3, %v2872_v25  ;;  %v2873_v28 = vmax.f32 %v2841_v27, 0.0  ;;  %v3813_v29 = vpop.f32.mrb[16].mxu0 }
 0x1e9   : > { %2908 = vst.msk [vmem:[%s4692_s17 + $0x78] sm:$0xff] %vm2892_vm3, %v2875_v22  ;;  %v2726_v4 = vpop.f32.mrb[17].mxu0 }
 0x1ea   : > { %2906 = vst.msk [vmem:[%s4692_s17 + $0x68] sm:$0xff] %vm2892_vm3, %v2873_v28  ;;  %v3814_v33 = vpop.f32.mrb[18].mxu0  ;;  %v3677_v20 = vpop.f32.mrb[16].mxu1 }
 0x1eb   : > { %v2729_v1 = vpop.f32.mrb[19].mxu0  ;;  %v3845_v34 = vadd.f32 %v3813_v29, %v3677_v20  ;;  %v1653_v3 = vpop.f32.mrb[17].mxu1 }
 0x1ec   : > { %v3846_v35 = vadd.f32 %v2726_v4, %v1653_v3  ;;  %v3678_v37 = vpop.f32.mrb[18].mxu1 }
 0x1ed   : > { %v2846_v5 = vadd.f32 %v3845_v34, %v4686_v26  ;;  %v3847_v13 = vadd.f32 %v3814_v33, %v3678_v37  ;;  %v1656_v42 = vpop.f32.mrb[19].mxu1 }
 0x1ee   : > { %v2844_v45 = vadd.f32 %v3846_v35, %v4686_v26  ;;  %v3848_v36 = vadd.f32 %v2729_v1, %v1656_v42 }
 0x1ef   : > { %v2878_v56 = vmax.f32 %v2846_v5, 0.0  ;;  %v2847_v14 = vadd.f32 %v3847_v13, %v4686_v26 }
 0x1f0   : > { %v3817_v18 = vpop.f32.mrb[20].mxu0  ;;  %v2876_v44 = vmax.f32 %v2844_v45, 0.0  ;;  %v2845_v48 = vadd.f32 %v3848_v36, %v4686_v26 }
 0x1f1   : > { %v2742_v49 = vpop.f32.mrb[21].mxu0  ;;  %2911 = vst.msk [vmem:[%s4692_s17 + $0x90] sm:$0xff] %vm2892_vm3, %v2878_v56  ;;  %v2879_v6 = vmax.f32 %v2847_v14, 0.0 }
 0x1f2   : > { %v3818_v19 = vpop.f32.mrb[22].mxu0  ;;  %2909 = vst.msk [vmem:[%s4692_s17 + $0x80] sm:$0xff] %vm2892_vm3, %v2876_v44  ;;  %v2877_v30 = vmax.f32 %v2845_v48, 0.0  ;;  %v3681_v51 = vpop.f32.mrb[20].mxu1 }
 0x1f3   : > { %v2745_v54 = vpop.f32.mrb[23].mxu0  ;;  %2912 = vst.msk [vmem:[%s4692_s17 + $0x98] sm:$0xff] %vm2892_vm3, %v2879_v6  ;;  %v3849_v55 = vadd.f32 %v3817_v18, %v3681_v51  ;;  %v1669_v7 = vpop.f32.mrb[21].mxu1 }
 0x1f4   : > { %2910 = vst.msk [vmem:[%s4692_s17 + $0x88] sm:$0xff] %vm2892_vm3, %v2877_v30  ;;  %v3850_v31 = vadd.f32 %v2742_v49, %v1669_v7  ;;  %v3682_v40 = vpop.f32.mrb[22].mxu1 }
 0x1f5   : > { %v2850_v23 = vadd.f32 %v3849_v55, %v4686_v26  ;;  %v3851_v59 = vadd.f32 %v3818_v19, %v3682_v40  ;;  %v1672_v60 = vpop.f32.mrb[23].mxu1 }
 0x1f6   : > { %v2848_v61 = vadd.f32 %v3850_v31, %v4686_v26  ;;  %v3852_v41 = vadd.f32 %v2745_v54, %v1672_v60 }
 0x1f7   : > { %v2882_v43 = vmax.f32 %v2850_v23, 0.0  ;;  %v2851_v47 = vadd.f32 %v3851_v59, %v4686_v26 }
 0x1f8   : > { %v3821_v24 = vpop.f32.mrb[24].mxu0  ;;  %v2880_v38 = vmax.f32 %v2848_v61, 0.0  ;;  %v2849_v62 = vadd.f32 %v3852_v41, %v4686_v26 }
 0x1f9   : > { %v2758_v63 = vpop.f32.mrb[25].mxu0  ;;  %2915 = vst.msk [vmem:[%s4692_s17 + $0xb0] sm:$0xff] %vm2892_vm3, %v2882_v43  ;;  %v2883_v32 = vmax.f32 %v2851_v47, 0.0 }
 0x1fa   : > { %v3822_v50 = vpop.f32.mrb[26].mxu0  ;;  %2913 = vst.msk [vmem:[%s4692_s17 + $0xa0] sm:$0xff] %vm2892_vm3, %v2880_v38  ;;  %v2881_v0 = vmax.f32 %v2849_v62, 0.0  ;;  %v3685_v39 = vpop.f32.mrb[24].mxu1 }
 0x1fb   : > { %v2761_v8 = vpop.f32.mrb[27].mxu0  ;;  %2916 = vst.msk [vmem:[%s4692_s17 + $0xb8] sm:$0xff] %vm2892_vm3, %v2883_v32  ;;  %v3853_v9 = vadd.f32 %v3821_v24, %v3685_v39  ;;  %v1685_v57 = vpop.f32.mrb[25].mxu1 }
 0x1fc   : > { %2914 = vst.msk [vmem:[%s4692_s17 + $0xa8] sm:$0xff] %vm2892_vm3, %v2881_v0  ;;  %v3854_v52 = vadd.f32 %v2758_v63, %v1685_v57  ;;  %v3686_v10 = vpop.f32.mrb[26].mxu1 }
 0x1fd   : > { %v2854_v58 = vadd.f32 %v3853_v9, %v4686_v26  ;;  %v3855_v11 = vadd.f32 %v3822_v50, %v3686_v10  ;;  %v1688_v12 = vpop.f32.mrb[27].mxu1 }
 0x1fe   : > { %v2852_v53 = vadd.f32 %v3854_v52, %v4686_v26  ;;  %v3856_v2 = vadd.f32 %v2761_v8, %v1688_v12 }
 0x1ff   : > { %v2886_v46 = vmax.f32 %v2854_v58, 0.0  ;;  %v2855_v15 = vadd.f32 %v3855_v11, %v4686_v26 }
 0x200   : > { %v3825_v16 = vpop.f32.mrb[28].mxu0  ;;  %v2884_v17 = vmax.f32 %v2852_v53, 0.0  ;;  %v2853_v21 = vadd.f32 %v3856_v2, %v4686_v26 }
 0x201   : > { %v2774_v25 = vpop.f32.mrb[29].mxu0  ;;  %2919 = vst.msk [vmem:[%s4692_s17 + $0xd0] sm:$0xff] %vm2892_vm3, %v2886_v46  ;;  %v2887_v27 = vmax.f32 %v2855_v15, 0.0 }
 0x202   : > { %v3826_v22 = vpop.f32.mrb[30].mxu0  ;;  %2917 = vst.msk [vmem:[%s4692_s17 + $0xc0] sm:$0xff] %vm2892_vm3, %v2884_v17  ;;  %v2885_v28 = vmax.f32 %v2853_v21, 0.0  ;;  %v3689_v29 = vpop.f32.mrb[28].mxu1 }
 0x203   : > { %v2777_v4 = vpop.f32.mrb[31].mxu0  ;;  %2920 = vst.msk [vmem:[%s4692_s17 + $0xd8] sm:$0xff] %vm2892_vm3, %v2887_v27  ;;  %v3857_v33 = vadd.f32 %v3825_v16, %v3689_v29  ;;  %v1701_v20 = vpop.f32.mrb[29].mxu1 }
 0x204   : > { %2918 = vst.msk [vmem:[%s4692_s17 + $0xc8] sm:$0xff] %vm2892_vm3, %v2885_v28  ;;  %v3858_v1 = vadd.f32 %v2774_v25, %v1701_v20  ;;  %v3690_v34 = vpop.f32.mrb[30].mxu1 }
 0x205   : > { %v2858_v3 = vadd.f32 %v3857_v33, %v4686_v26  ;;  %v3859_v35 = vadd.f32 %v3826_v22, %v3690_v34  ;;  %v1704_v37 = vpop.f32.mrb[31].mxu1 }
 0x206   : > { %v2856_v5 = vadd.f32 %v3858_v1, %v4686_v26  ;;  %v3860_v13 = vadd.f32 %v2777_v4, %v1704_v37 }
 0x207   : > { %v2890_v42 = vmax.f32 %v2858_v3, 0.0  ;;  %v2859_v45 = vadd.f32 %v3859_v35, %v4686_v26 }
 0x208   : > { %v2888_v36 = vmax.f32 %v2856_v5, 0.0  ;;  %v2857_v56 = vadd.f32 %v3860_v13, %v4686_v26 }
 0x209   : > { %2923 = vst.msk [vmem:[%s4692_s17 + $0xf0] sm:$0xff] %vm2892_vm3, %v2890_v42  ;;  %v2891_v14 = vmax.f32 %v2859_v45, 0.0 }
 0x20a   : > { %2921 = vst.msk [vmem:[%s4692_s17 + $0xe0] sm:$0xff] %vm2892_vm3, %v2888_v36  ;;  %v2889_v18 = vmax.f32 %v2857_v56, 0.0 }
 0x20b   : > { %2924 = vst.msk [vmem:[%s4692_s17 + $0xf8] sm:$0xff] %vm2892_vm3, %v2891_v14 }
 0x20c   : > { %2922 = vst.msk [vmem:[%s4692_s17 + $0xe8] sm:$0xff] %vm2892_vm3, %v2889_v18 }
 0x20d PF: > { %s13_s12 = sadd.s32 1, %s4108_s12  }
 0x20e   : > { %p10_p5 = scmp.ge.s32.totalorder %s13_s12, 4  }
 0x210   :  { %12 = sbr.rel (!%p10_p5) target bundleno = 1 (0x1), region = 67 }

// kernel: _lambda_.7
= control target key start
LH: loop header
LB: loop body
LE: loop exit
PB: predicated region body
PF: predicated region fallthrough
CT: control target
= control target key end

     0   :  { %s831_s12 = smov 0   ;;  %s981_s0 = inlined_call_operand.vmem [shape: f32[8,5,5,32], index: 0, kind: input, shape index: {}]   ;;  %s982_s1 = inlined_call_operand.vmem [shape: bf16[288,64], index: 1, kind: input, shape index: {}]   ;;  %s983_s2 = inlined_call_operand.vmem [shape: f32[1,64], index: 2, kind: input, shape index: {}]   ;;  %s984_s3 = inlined_call_operand.vmem [shape: f32[2,16,64], index: 3, kind: output, shape index: {}]  }
   0x1 LB: > { %s837_s13 = sadd.s32 4294967295, %s804_s12   ;;  %p671_p0 = scmp.ge.s32.totalorder %s804_s12, 1  ;;  %s804_s12 = sphi %s831_s12, %s13_s12  }
   0x2   : > { %p139_p1 = scmp.lt.s32.totalorder %s804_s12, 3 }
   0x4   : > { %p140_p2 = pnand %p671_p0, %p139_p1 }
   0x5   : > { %s672_s14 = sshll.u32 (!%p140_p2), %s837_s13, 2  ;;  %s806_s19 = smov (!%p140_p2), 32   ;;  %v778_v8 = vld [vmem:[%s982_s1 + $0x40] sm:$0xff] (!%p140_p2)   ;;  %v780_v10 = vld [vmem:[%s982_s1 + $0x48] sm:$0xff] (!%p140_p2)   ;;  %v782_v16 = vld [vmem:[%s982_s1 + $0x50] sm:$0xff] (!%p140_p2)   ;;  %v808_v29 = vmov (!%p140_p2), 0.0  }
   0x6   : > { %143 = sbr.rel (%p140_p2) target bundleno = 406 (0x196), region = 32  ;;  %p165_p3 = scmp.lt.s32.totalorder (!%p140_p2), %s672_s14, 7  ;;  %v779_v9 = vld [vmem:[%s982_s1] sm:$0xff] (!%p140_p2)   ;;  %731 = vmatprep.subr.bf16.mxu0 (!%p140_p2), %v778_v8  ;;  %v781_v13 = vld [vmem:[%s982_s1 + $0x8] sm:$0xff] (!%p140_p2)   ;;  %v783_v17 = vld [vmem:[%s982_s1 + $0x10] sm:$0xff] (!%p140_p2)   ;;  %756 = vmatprep.subr.bf16.mxu1 (!%p140_p2), %v808_v29  ;;  %vm314_vm0 = vcmask (!%p140_p2), 261120  }
   0x7   : > { %732 = vmatpush3.bf16.msra.mxu0 (!%p140_p2), %v779_v9  ;;  %s807_s30 = smov (!%p140_p2), 64   ;;  %v784_v20 = vld [vmem:[%s982_s1 + $0x58] sm:$0xff] (!%p140_p2)   ;;  %v786_v22 = vld [vmem:[%s982_s1 + $0x60] sm:$0xff] (!%p140_p2)   ;;  %v788_v26 = vld [vmem:[%s982_s1 + $0x68] sm:$0xff] (!%p140_p2)   ;;  %s809_s25 = smov (!%p140_p2), 96   ;;  %vm810_vm1 = vmmov (!%p140_p2), 0  }
   0x8   : > { %733 = vmatprep.subr.bf16.mxu0 (!%p140_p2), %v780_v10  ;;  %v785_v21 = vld [vmem:[%s982_s1 + $0x18] sm:$0xff] (!%p140_p2)   ;;  %v787_v25 = vld [vmem:[%s982_s1 + $0x20] sm:$0xff] (!%p140_p2)   ;;  %v789_v31 = vld [vmem:[%s982_s1 + $0x28] sm:$0xff] (!%p140_p2)   ;;  %760 = vmatprep.mubr.msk.bf16.mxu1 (!%p140_p2), %vm810_vm1, %v808_v29  ;;  %vm319_vm2 = vcmask (!%p140_p2), 523264   ;;  %vm324_vm3 = vcmask (!%p140_p2), 785408   ;;  %p171_p4 = scmp.lt.s32.totalorder (!%p140_p2), %s837_s13, 1 }
   0x9   : > { %v792_v30 = vld [vmem:[%s982_s1 + $0x80] sm:$0xff] (!%p140_p2)   ;;  %v790_v32 = vld [vmem:[%s982_s1 + $0x70] sm:$0xff] (!%p140_p2)   ;;  %v795_v33 = vld [vmem:[%s982_s1 + $0x88] sm:$0xff] (!%p140_p2)  }
   0xa   : > { %757 = vmatpush3.bf16.msra.mxu1 (!%p140_p2), %v792_v30  ;;  %v791_v36 = vld [vmem:[%s982_s1 + $0x30] sm:$0xff] (!%p140_p2)   ;;  %v793_v39 = vld [vmem:[%s982_s1 + $0x78] sm:$0xff] (!%p140_p2)  }
   0xb   : > { %734 = vmatpush3.bf16.msra.mxu0 (!%p140_p2), %v781_v13  ;;  %758 = vmatprep.subr.bf16.mxu1 (!%p140_p2), %v808_v29  ;;  %v794_v43 = vld [vmem:[%s982_s1 + $0x38] sm:$0xff] (!%p140_p2)  }
   0xc   : > { %735 = vmatprep.subr.bf16.mxu0 (!%p140_p2), %v782_v16 }
   0xd   : > { %s986_s14 = smov (!%p165_p3, %s672_s14), 7  ;;  %s988_s13 = smov (!%p171_p4, %s837_s13), 1 }
   0xe   : > { %s764_s15 = smul.u32 40, %s986_s14  ;;  %759 = vmatpush3.bf16.msra.mxu1 %v795_v33  ;;  %s730_s8 = sshll.u32 %s988_s13, 4 }
   0xf   : > { %736 = vmatpush3.bf16.msra.mxu0 %v783_v17  ;;  %s175_s11 = scalar_lea.vmem %s984_s3, %s730_s8 }
  0x10   : > { %s845_s18 = scalar_lea.vmem %s981_s0, %s764_s15  ;;  %737 = vmatprep.subr.bf16.mxu0 %v784_v20 }
  0x11   : > { %v690_v0 = vld [vmem:[%s845_s18 + $0x61] sm:$0xf]  ;;  %v688_v1 = vld [vmem:[%s845_s18 + $0x51] sm:$0xf]  ;;  %v691_v2 = vld [vmem:[%s845_s18 + $0x69] sm:$0xf] }
  0x12   : > { %274 = vrot.lane.b32.xlu1 %v690_v0, %s806_s19  ;;  %270 = vrot.lane.b32.xlu0 %v688_v1, %s806_s19  ;;  %v689_v3 = vld [vmem:[%s845_s18 + $0x59] sm:$0xf]  ;;  %v677_v4 = vld [vmem:[%s845_s18 + $0x30] sm:$0xf] }
  0x13   : > { %v676_v5 = vld [vmem:[%s845_s18 + $0x28] sm:$0xf]  ;;  %v679_v6 = vld [vmem:[%s845_s18 + $0x40] sm:$0xf]  ;;  %v678_v7 = vld [vmem:[%s845_s18 + $0x38] sm:$0xf]  ;;  %738 = vmatpush3.bf16.msra.mxu0 %v785_v21 }
  0x14   : > { %v693_v11 = vld [vmem:[%s845_s18 + $0x10] sm:$0xf]  ;;  %v692_v12 = vld [vmem:[%s845_s18 + $0x8] sm:$0xf]  ;;  %v695_v14 = vld [vmem:[%s845_s18 + $0x20] sm:$0xf]  ;;  %739 = vmatprep.subr.bf16.mxu0 %v786_v22 }
  0x15   : > { %v694_v15 = vld [vmem:[%s845_s18 + $0x18] sm:$0xf]  ;;  %v187_v18 = vld [vmem:[%s845_s18 + $0x9] sm:$0xf]  ;;  %v186_v19 = vld [vmem:[%s845_s18 + $0x1] sm:$0xf] }
  0x16   : > { %276 = vrot.lane.b32.xlu1 %v691_v2, %s806_s19  ;;  %272 = vrot.lane.b32.xlu0 %v689_v3, %s806_s19  ;;  %v189_v23 = vld [vmem:[%s845_s18 + $0x19] sm:$0xf]  ;;  %v188_v24 = vld [vmem:[%s845_s18 + $0x11] sm:$0xf] }
  0x17   : > { %v697_v27 = vld [vmem:[%s845_s18 + $0x38] sm:$0xf]  ;;  %v696_v28 = vld [vmem:[%s845_s18 + $0x30] sm:$0xf]  ;;  %740 = vmatpush3.bf16.msra.mxu0 %v787_v25  ;;  %v699_v34 = vld [vmem:[%s845_s18 + $0x48] sm:$0xf] }
  0x18   : > { %741 = vmatprep.subr.bf16.mxu0 %v788_v26  ;;  %v698_v35 = vld [vmem:[%s845_s18 + $0x40] sm:$0xf]  ;;  %v796_v37 = vld [vmem:[%s845_s18 + $0x9] ss:$8 sps:$4 sm:$0xff]   ;;  %v681_v41 = vld [vmem:[%s845_s18 + $0x58] sm:$0xf] }
  0x19   : > { %v797_v38 = vld [vmem:[%s845_s18 + $0x19] ss:$8 sps:$4 sm:$0xff]   ;;  %v680_v42 = vld [vmem:[%s845_s18 + $0x50] sm:$0xf]  ;;  %v683_v44 = vld [vmem:[%s845_s18 + $0x68] sm:$0xf] }
  0x1a   : > { %224 = vrot.lane.b32.xlu1 %v677_v4, %s806_s19  ;;  %222 = vrot.lane.b32.xlu0 %v676_v5, %s806_s19  ;;  %v371_v40 = vpack.c.bf16 %v797_v38, %v796_v37  ;;  %v682_v45 = vld [vmem:[%s845_s18 + $0x60] sm:$0xf]  ;;  %v684_v62 = vld [vmem:[%s845_s18 + $0x78] sm:$0xf] }
  0x1b   : > { %742 = vmatpush3.bf16.msra.mxu0 %v789_v31  ;;  %v685_v63 = vld [vmem:[%s845_s18 + $0x80] sm:$0xf]  ;;  %v686_v0 = vld [vmem:[%s845_s18 + $0x88] sm:$0xf]  ;;  %v687_v1 = vld [vmem:[%s845_s18 + $0x90] sm:$0xf] }
  0x1c   : > { %743 = vmatprep.subr.bf16.mxu0 %v790_v32  ;;  %761 = vmatmul.mubr.msk.bf16.vlgmr.msra.gmra.mrb[0].mxu1 %vm314_vm0, %v371_v40  ;;  %v180_v22 = vld [vmem:[%s845_s18 + $0x18] sm:$0xf] }
  0x1e   : > { %228 = vrot.lane.b32.xlu1 %v679_v6, %s806_s19  ;;  %226 = vrot.lane.b32.xlu0 %v678_v7, %s806_s19 }
  0x1f   : > { %744 = vmatpush3.bf16.msra.mxu0 %v791_v36 }
  0x20   : > { %745 = vmatprep.subr.bf16.mxu0 %v793_v39 }
  0x22   : > { %288 = vrot.lane.b32.xlu1 %v693_v11, %s807_s30  ;;  %286 = vrot.lane.b32.xlu0 %v692_v12, %s807_s30 }
  0x23   : > { %746 = vmatpush3.bf16.msra.mxu0 %v794_v43 }
  0x26   : > { %292 = vrot.lane.b32.xlu1 %v695_v14, %s807_s30  ;;  %290 = vrot.lane.b32.xlu0 %v694_v15, %s807_s30 }
  0x2a   : > { %240 = vrot.lane.b32.xlu1 %v187_v18, %s807_s30  ;;  %238 = vrot.lane.b32.xlu0 %v186_v19, %s807_s30  ;;  %v178_v18 = vld [vmem:[%s845_s18 + $0x8] sm:$0xf]  ;;  %v177_v19 = vld [vmem:[%s845_s18] sm:$0xf] }
  0x2e   : > { %244 = vrot.lane.b32.xlu1 %v189_v23, %s807_s30  ;;  %242 = vrot.lane.b32.xlu0 %v188_v24, %s807_s30  ;;  %v179_v23 = vld [vmem:[%s845_s18 + $0x10] sm:$0xf] }
  0x32   : > { %304 = vrot.lane.b32.xlu1 %v697_v27, %s809_s25  ;;  %302 = vrot.lane.b32.xlu0 %v696_v28, %s809_s25 }
  0x36   : > { %308 = vrot.lane.b32.xlu1 %v699_v34, %s809_s25  ;;  %306 = vrot.lane.b32.xlu0 %v698_v35, %s809_s25 }
  0x3a   : > { %256 = vrot.lane.b32.xlu1 %v681_v41, %s809_s25  ;;  %254 = vrot.lane.b32.xlu0 %v680_v42, %s809_s25 }
  0x3e   : > { %260 = vrot.lane.b32.xlu1 %v683_v44, %s809_s25  ;;  %258 = vrot.lane.b32.xlu0 %v682_v45, %s809_s25 }
  0x84   : > { %v275_v46 = vpop.permute.xlu1 %274  ;;  %v271_v47 = vpop.permute.xlu0 %270 }
  0x85   : > { %v329_v4 = vsel %vm314_vm0, %v684_v62, %v271_v47  ;;  %v331_v8 = vsel %vm314_vm0, %v686_v0, %v275_v46 }
  0x88   : > { %v277_v48 = vpop.permute.xlu1 %276  ;;  %v273_v49 = vpop.permute.xlu0 %272 }
  0x89   : > { %v330_v5 = vsel %vm314_vm0, %v685_v63, %v273_v49  ;;  %v332_v9 = vsel %vm314_vm0, %v687_v1, %v277_v48 }
  0x8c   : > { %v225_v50 = vpop.permute.xlu1 %224  ;;  %v223_v51 = vpop.permute.xlu0 %222 }
  0x8d   : > { %v316_v27 = vsel %vm314_vm0, %v178_v18, %v225_v50  ;;  %v315_v28 = vsel %vm314_vm0, %v177_v19, %v223_v51  ;;  %v708_v50 = vld [vmem:[%s983_s2] ss:$0 sm:$0xff] }
  0x90   : > { %v229_v52 = vpop.permute.xlu1 %228  ;;  %v227_v53 = vpop.permute.xlu0 %226 }
  0x91   : > { %v318_v31 = vsel %vm314_vm0, %v180_v22, %v229_v52  ;;  %v317_v32 = vsel %vm314_vm0, %v179_v23, %v227_v53 }
  0x94   : > { %v289_v54 = vpop.permute.xlu1 %288  ;;  %v287_v55 = vpop.permute.xlu0 %286 }
  0x95   : > { %v334_v6 = vsel %vm319_vm2, %v330_v5, %v289_v54  ;;  %v333_v7 = vsel %vm319_vm2, %v329_v4, %v287_v55 }
  0x98   : > { %v293_v56 = vpop.permute.xlu1 %292  ;;  %v291_v57 = vpop.permute.xlu0 %290 }
  0x99   : > { %v336_v12 = vsel %vm319_vm2, %v332_v9, %v293_v56  ;;  %v335_v13 = vsel %vm319_vm2, %v331_v8, %v291_v57 }
  0x9c   : > { %v241_v58 = vpop.permute.xlu1 %240  ;;  %v239_v59 = vpop.permute.xlu0 %238 }
  0x9d   : > { %v321_v29 = vsel %vm319_vm2, %v316_v27, %v241_v58  ;;  %v320_v30 = vsel %vm319_vm2, %v315_v28, %v239_v59 }
  0xa0   : > { %v245_v60 = vpop.permute.xlu1 %244  ;;  %v243_v61 = vpop.permute.xlu0 %242 }
  0xa1   : > { %v323_v35 = vsel %vm319_vm2, %v318_v31, %v245_v60  ;;  %v322_v36 = vsel %vm319_vm2, %v317_v32, %v243_v61 }
  0xa4   : > { %v305_v2 = vpop.permute.xlu1 %304  ;;  %v303_v3 = vpop.permute.xlu0 %302 }
  0xa5   : > { %v338_v10 = vsel %vm324_vm3, %v334_v6, %v305_v2  ;;  %v337_v11 = vsel %vm324_vm3, %v333_v7, %v303_v3 }
  0xa6   : > { %v705_v20 = vcombine.low %v337_v11, %v338_v10 }
  0xa8   : > { %v309_v14 = vpop.permute.xlu1 %308  ;;  %v307_v15 = vpop.permute.xlu0 %306 }
  0xa9   : > { %v340_v16 = vsel %vm324_vm3, %v336_v12, %v309_v14  ;;  %v339_v17 = vsel %vm324_vm3, %v335_v13, %v307_v15 }
  0xaa   : > { %v707_v21 = vcombine.low %v339_v17, %v340_v16 }
  0xac   : > { %v257_v24 = vpop.permute.xlu1 %256  ;;  %v255_v25 = vpop.permute.xlu0 %254  ;;  %v370_v26 = vpack.c.bf16 %v707_v21, %v705_v20 }
  0xad   : > { %v326_v33 = vsel %vm324_vm3, %v321_v29, %v257_v24  ;;  %v325_v34 = vsel %vm324_vm3, %v320_v30, %v255_v25 }
  0xae   : > { %558 = vmatprep.mubr.bf16.mxu0 %v370_v26  ;;  %v704_v41 = vcombine.low %v325_v34, %v326_v33 }
  0xb0   : > { %v261_v37 = vpop.permute.xlu1 %260  ;;  %v259_v38 = vpop.permute.xlu0 %258 }
  0xb1   : > { %v328_v39 = vsel %vm324_vm3, %v323_v35, %v261_v37  ;;  %v327_v40 = vsel %vm324_vm3, %v322_v36, %v259_v38 }
  0xb2   : > { %v706_v42 = vcombine.low %v327_v40, %v328_v39 }
  0xb4   : > { %v369_v43 = vpack.c.bf16 %v706_v42, %v704_v41 }
  0xb6   : > { %559 = vmatmul.mubr.bf16.vlgmr.msra.gmra.mrb[0].mxu0 %v369_v43 }
  0xef   : > { %v601_v44 = vpop.f32.mrb[0].mxu1 }
  0xf0   : > { %v762_v45 = vpop.f32.mrb[1].mxu1 }
  0xf1   : > { %v604_v46 = vpop.f32.mrb[2].mxu1 }
  0xf2   : > { %v763_v47 = vpop.f32.mrb[3].mxu1 }
 0x189   : > { %v747_v48 = vpop.f32.mrb[0].mxu0 }
 0x18a   : > { %v748_v49 = vpop.f32.mrb[1].mxu0 }
 0x18b   : > { %v749_v51 = vadd.f32 %v748_v49, %v747_v48  ;;  %v750_v52 = vpop.f32.mrb[2].mxu0 }
 0x18c   : > { %v751_v53 = vpop.f32.mrb[3].mxu0 }
 0x18d   : > { %v561_v54 = vadd.f32 %v749_v51, %v708_v50  ;;  %v752_v55 = vadd.f32 %v751_v53, %v750_v52 }
 0x18f   : > { %v602_v56 = vadd.f32 %v601_v44, %v561_v54  ;;  %v564_v57 = vadd.f32 %v752_v55, %v708_v50 }
 0x191   : > { %v608_v58 = vmax.f32 %v602_v56, 0.0  ;;  %v605_v59 = vadd.f32 %v604_v46, %v564_v57 }
 0x193   : > { %610 = vst.msk [vmem:[%s175_s11] sm:$0xff] %vm319_vm2, %v608_v58  ;;  %v609_v60 = vmax.f32 %v605_v59, 0.0 }
 0x195   : > { %611 = vst.msk [vmem:[%s175_s11 + $0x8] sm:$0xff] %vm319_vm2, %v609_v60 }
 0x196 PF: > { %s13_s12 = sadd.s32 1, %s804_s12  }
 0x197   : > { %p10_p5 = scmp.ge.s32.totalorder %s13_s12, 4  }
 0x199   :  { %12 = sbr.rel (!%p10_p5) target bundleno = 1 (0x1), region = 67 }

// kernel: _lambda_.9
= control target key start
LH: loop header
LB: loop body
LE: loop exit
PB: predicated region body
PF: predicated region fallthrough
CT: control target
= control target key end

     0   :  { %s659_s9 = smov 0   ;;  %s661_s10 = smov 0   ;;  %s787_s0 = inlined_call_operand.vmem [shape: f32[2,8,1024], index: 0, kind: input, shape index: {}]   ;;  %s788_s1 = inlined_call_operand.vmem [shape: f32[2,8,1024], index: 1, kind: output, shape index: {0}]   ;;  %s789_s2 = inlined_call_operand.vmem [shape: s32[2,1,1024], index: 2, kind: output, shape index: {1}]  }
   0x1   :  { %s663_s11 = smov 0  }
   0x2 LB: > { %s25_s12 = sadd.s32 1, %s636_s10  ;;  %p550_p0 = scmp.ge.s32.totalorder %s640_s11, 1  ;;  %s640_s11 = sphi %s663_s11, %s13_s11   ;;  %s636_s10 = sphi %s661_s10, %s791_s10   ;;  %s632_s9 = sphi %s659_s9, %s790_s9  }
   0x3   : > { %p27_p1 = scmp.ge.s32.totalorder %s25_s12, 2  ;;  %p138_p2 = scmp.lt.s32.totalorder %s640_s11, 3 }
   0x5   : > { %s793_s12 = smov (%p27_p1, %s25_s12), 0  ;;  %p139_p3 = pnand %p550_p0, %p138_p2 }
   0x6   : > { %p177_p4 = scmp.lt.s32.totalorder (!%p139_p3), %s632_s9, 1  ;;  %v642_v5 = vmov (!%p139_p3), 0   ;;  %v372_v15 = vlaneseq (!%p139_p3)  ;;  %v643_v26 = vmov (!%p139_p3), 1966171168  }
   0x7   : > { %142 = sbr.rel (%p139_p3) target bundleno = 70 (0x46), region = 24  ;;  %v713_v27 = vunpack.c.l.s4 (!%p139_p3), %v643_v26 }
   0x8   : > { %v723_v39 = vshrl.u32 (!%p139_p3), %v372_v15, 7 }
   0x9   : > { %v371_v43 = vunpack.c.0.s8 (!%p139_p3), %v713_v27 }
   0xe   : > { %s795_s9 = smov (!%p177_p4, %s632_s9), 1 }
   0xf   : > { %s558_s13 = sshll.u32 %s795_s9, 6  ;;  %s555_s20 = sshll.u32 %s795_s9, 3 }
  0x10   : > { %s685_s16 = scalar_lea.vmem %s787_s0, %s558_s13  ;;  %s754_s19 = scalar_lea.vmem %s788_s1, %s558_s13 }
  0x11   : > { %v688_v0 = vld [vmem:[%s685_s16] sm:$0xff]  ;;  %v691_v1 = vld [vmem:[%s685_s16 + $0x8] sm:$0xff]  ;;  %v694_v2 = vld [vmem:[%s685_s16 + $0x10] sm:$0xff]  ;;  %s203_s23 = scalar_lea.vmem %s789_s2, %s555_s20 }
  0x12   : > { %v213_v3 = vand.u32 2147483647, %v688_v0  ;;  %vm301_vm0 = vcmp.gt.f32.partialorder %v688_v0, 0.0  ;;  %v214_v4 = vand.u32 2147483647, %v691_v1  ;;  %vm302_vm1 = vcmp.gt.f32.partialorder %v691_v1, 0.0 }
  0x13   : > { %v309_v6 = vsel %vm301_vm0, 1, %v642_v5  ;;  %v215_v7 = vand.u32 2147483647, %v694_v2  ;;  %v310_v11 = vsel %vm302_vm1, 1, %v642_v5  ;;  %v704_v12 = vld [vmem:[%s685_s16 + $0x18] sm:$0xff]  ;;  %vm303_vm2 = vcmp.gt.f32.partialorder %v694_v2, 0.0 }
  0x14   : > { %v221_v8 = vsub.f32 0.0, %v213_v3  ;;  %v317_v9 = vrot.slane %v309_v6, 4  ;;  %v222_v10 = vsub.f32 0.0, %v214_v4  ;;  %v323_v13 = vrot.slane %v310_v11, 4  ;;  %v710_v24 = vld [vmem:[%s685_s16 + $0x20] sm:$0xff]  ;;  %v720_v37 = vld [vmem:[%s685_s16 + $0x28] sm:$0xff] }
  0x15   : > { %v223_v14 = vsub.f32 0.0, %v215_v7  ;;  %v311_v19 = vsel %vm303_vm2, 1, %v642_v5  ;;  %v216_v23 = vand.u32 2147483647, %v704_v12  ;;  %vm304_vm3 = vcmp.gt.f32.partialorder %v704_v12, 0.0  ;;  %v726_v42 = vld [vmem:[%s685_s16 + $0x30] sm:$0xff] }
  0x16   : > { %v229_v16 = vmul.f32 1.442695, %v221_v8  ;;  %v318_v17 = vadd.s32 %v317_v9, %v309_v6  ;;  %v231_v18 = vmul.f32 1.442695, %v222_v10  ;;  %v324_v20 = vadd.s32 %v323_v13, %v310_v11  ;;  %v734_v51 = vld [vmem:[%s685_s16 + $0x38] sm:$0xff] }
  0x17   : > { %v233_v21 = vmul.f32 1.442695, %v223_v14  ;;  %v329_v22 = vrot.slane %v311_v19, 4  ;;  %v224_v30 = vsub.f32 0.0, %v216_v23  ;;  %v312_v32 = vsel %vm304_vm3, 1, %v642_v5 }
  0x18   : > { %586 = vpow2.f32 %v229_v16  ;;  %v319_v25 = vrot.slane %v318_v17, 2  ;;  %v325_v28 = vrot.slane %v324_v20, 2  ;;  %v217_v33 = vand.u32 2147483647, %v710_v24 }
  0x19   : > { %588 = vpow2.f32 %v231_v18  ;;  %v330_v29 = vadd.s32 %v329_v22, %v311_v19  ;;  %v235_v35 = vmul.f32 1.442695, %v224_v30  ;;  %v335_v36 = vrot.slane %v312_v32, 4 }
  0x1a   : > { %v715_v31 = vadd.s32 %v319_v25, %v318_v17  ;;  %590 = vpow2.f32 %v233_v21  ;;  %v225_v38 = vsub.f32 0.0, %v217_v33  ;;  %vm305_vm4 = vcmp.gt.f32.partialorder %v710_v24, 0.0 }
  0x1b   : > { %v331_v34 = vrot.slane %v330_v29, 2  ;;  %v326_v40 = vadd.s32 %v325_v28, %v324_v20  ;;  %592 = vpow2.f32 %v235_v35  ;;  %v336_v41 = vadd.s32 %v335_v36, %v312_v32 }
  0x1c   : > { %v321_v44 = vrot.slane %v715_v31, 1  ;;  %v237_v45 = vmul.f32 1.442695, %v225_v38  ;;  %v313_v46 = vsel %vm305_vm4, 1, %v642_v5  ;;  %v218_v47 = vand.u32 2147483647, %v720_v37 }
  0x1d   : > { %v332_v48 = vadd.s32 %v331_v34, %v330_v29  ;;  %v337_v49 = vrot.slane %v336_v41, 2  ;;  %v341_v50 = vrot.slane %v313_v46, 4  ;;  %vm306_vm5 = vcmp.gt.f32.partialorder %v720_v37, 0.0 }
  0x1e   : > { %594 = vpow2.f32 %v237_v45  ;;  %v226_v52 = vsub.f32 0.0, %v218_v47  ;;  %v314_v53 = vsel %vm306_vm5, 1, %v642_v5  ;;  %v219_v54 = vand.u32 2147483647, %v726_v42 }
  0x1f   : > { %v327_v55 = vrot.slane %v326_v40, 1  ;;  %v338_v56 = vadd.s32 %v337_v49, %v336_v41  ;;  %v342_v57 = vadd.s32 %v341_v50, %v313_v46  ;;  %v347_v58 = vrot.slane %v314_v53, 4 }
  0x20   : > { %v239_v60 = vmul.f32 1.442695, %v226_v52  ;;  %v227_v61 = vsub.f32 0.0, %v219_v54  ;;  %vm307_vm6 = vcmp.gt.f32.partialorder %v726_v42, 0.0  ;;  %v220_v62 = vand.u32 2147483647, %v734_v51 }
  0x21   : > { %v333_v4 = vrot.slane %v332_v48, 1  ;;  %v343_v6 = vrot.slane %v342_v57, 2  ;;  %v348_v7 = vadd.s32 %v347_v58, %v314_v53  ;;  %v315_v11 = vsel %vm307_vm6, 1, %v642_v5 }
  0x22   : > { %v587_v59 = vpop.eup %586  ;;  %596 = vpow2.f32 %v239_v60  ;;  %v241_v10 = vmul.f32 1.442695, %v227_v61  ;;  %v339_v16 = vrot.slane %v338_v56, 1  ;;  %v353_v17 = vrot.slane %v315_v11, 4 }
  0x23   : > { %v589_v63 = vpop.eup %588  ;;  %v245_v3 = vadd.f32 1.0, %v587_v59  ;;  %v344_v14 = vadd.s32 %v343_v6, %v342_v57  ;;  %v349_v15 = vrot.slane %v348_v7, 2  ;;  %v228_v18 = vsub.f32 0.0, %v220_v62 }
  0x24   : > { %v591_v8 = vpop.eup %590  ;;  %v246_v9 = vadd.f32 1.0, %v589_v63  ;;  %vm308_vm7 = vcmp.gt.f32.partialorder %v734_v51, 0.0  ;;  %v354_v23 = vadd.s32 %v353_v17, %v315_v11  ;;  %v322_v29 = vadd.s32 %v321_v44, %v715_v31 }
  0x25   : > { %598 = vrcp.f32 %v245_v3  ;;  %v247_v13 = vadd.f32 1.0, %v591_v8  ;;  %v593_v19 = vpop.eup %592  ;;  %v345_v20 = vrot.slane %v344_v14, 1  ;;  %v350_v21 = vadd.s32 %v349_v15, %v348_v7 }
  0x26   : > { %600 = vrcp.f32 %v246_v9  ;;  %v248_v22 = vadd.f32 1.0, %v593_v19  ;;  %v243_v25 = vmul.f32 1.442695, %v228_v18  ;;  %v316_v28 = vsel %vm308_vm7, 1, %v642_v5 }
  0x27   : > { %602 = vrcp.f32 %v247_v13  ;;  %v351_v26 = vrot.slane %v350_v21, 1  ;;  %v328_v30 = vadd.s32 %v327_v55, %v326_v40  ;;  %v355_v33 = vrot.slane %v354_v23, 2 }
  0x28   : > { %604 = vpow2.f32 %v241_v10  ;;  %v595_v32 = vpop.eup %594  ;;  %v359_v34 = vrot.slane %v316_v28, 4  ;;  %v334_v35 = vadd.s32 %v333_v4, %v332_v48  ;;  %v340_v38 = vadd.s32 %v339_v16, %v338_v56 }
  0x29   : > { %606 = vrcp.f32 %v248_v22  ;;  %v249_v36 = vadd.f32 1.0, %v595_v32  ;;  %v356_v41 = vadd.s32 %v355_v33, %v354_v23  ;;  %v346_v46 = vadd.s32 %v345_v20, %v344_v14 }
  0x2a   : > { %608 = vpow2.f32 %v243_v25  ;;  %v360_v45 = vadd.s32 %v359_v34, %v316_v28  ;;  %v352_v47 = vadd.s32 %v351_v26, %v350_v21  ;;  %v365_v49 = vcombine.low %v322_v29, %v328_v30 }
  0x2b   : > { %610 = vrcp.f32 %v249_v36  ;;  %v366_v50 = vcombine.low %v334_v35, %v340_v38  ;;  %v374_v5 = vsub.s32 %v371_v43, %v723_v39  ;;  %v357_v40 = vrot.slane %v356_v41, 1 }
  0x2c   : > { %v597_v31 = vpop.eup %596  ;;  %v361_v44 = vrot.slane %v360_v45, 2  ;;  %vm269_vm8 = vcmp.ge.f32.partialorder %v688_v0, 0.0  ;;  %vm270_vm9 = vcmp.ge.f32.partialorder %v691_v1, 0.0  ;;  %vm271_vm10 = vcmp.ge.f32.partialorder %v694_v2, 0.0 }
  0x2d   : > { %v250_v48 = vadd.f32 1.0, %v597_v31  ;;  %v367_v39 = vcombine.low %v346_v46, %v352_v47  ;;  %v375_v0 = vrot.slane %v365_v49, %v374_v5  ;;  %v382_v56 = vrot.slane %v366_v50, %v374_v5 }
  0x2e   : > { %v362_v27 = vadd.s32 %v361_v44, %v360_v45  ;;  %v358_v61 = vadd.s32 %v357_v40, %v356_v41  ;;  %vm272_vm11 = vcmp.ge.f32.partialorder %v704_v12, 0.0  ;;  %vm273_vm12 = vcmp.ge.f32.partialorder %v710_v24, 0.0 }
  0x2f   : > { %v599_v52 = vpop.eup %598  ;;  %612 = vrcp.f32 %v250_v48  ;;  %v389_v1 = vrot.slane %v367_v39, %v374_v5  ;;  %v397_v11 = vcombine.low %v375_v0, %v382_v56  ;;  %vm274_vm13 = vcmp.ge.f32.partialorder %v720_v37, 0.0 }
  0x30   : > { %v601_v53 = vpop.eup %600  ;;  %v277_v54 = vsub.f32 1.0, %v599_v52  ;;  %v363_v60 = vrot.slane %v362_v27, 1  ;;  %vm275_vm14 = vcmp.ge.f32.partialorder %v726_v42, 0.0  ;;  %vm276_vm15 = vcmp.ge.f32.partialorder %v734_v51, 0.0 }
  0x31   : > { %v603_v43 = vpop.eup %602  ;;  %v278_v55 = vsub.f32 1.0, %v601_v53  ;;  %v405_v17 = vrot.slane %v397_v11, %v374_v5 }
  0x32   : > { %v605_v57 = vpop.eup %604  ;;  %v285_v58 = vsel %vm269_vm8, %v599_v52, %v277_v54  ;;  %v279_v59 = vsub.f32 1.0, %v603_v43  ;;  %v364_v6 = vadd.s32 %v363_v60, %v362_v27 }
  0x33   : > { %293 = vst [vmem:[%s754_s19] sm:$0xff] %v285_v58  ;;  %v286_v62 = vsel %vm270_vm9, %v601_v53, %v278_v55  ;;  %v251_v63 = vadd.f32 1.0, %v605_v57  ;;  %v607_v3 = vpop.eup %606 }
  0x34   : > { %294 = vst [vmem:[%s754_s19 + $0x8] sm:$0xff] %v286_v62  ;;  %v287_v4 = vsel %vm271_vm10, %v603_v43, %v279_v59  ;;  %v609_v7 = vpop.eup %608  ;;  %v280_v8 = vsub.f32 1.0, %v607_v3  ;;  %v368_v10 = vcombine.low %v358_v61, %v364_v6 }
  0x35   : > { %295 = vst [vmem:[%s754_s19 + $0x10] sm:$0xff] %v287_v4  ;;  %614 = vrcp.f32 %v251_v63  ;;  %v252_v9 = vadd.f32 1.0, %v609_v7  ;;  %v611_v13 = vpop.eup %610 }
  0x36   : > { %v288_v14 = vsel %vm272_vm11, %v607_v3, %v280_v8  ;;  %v281_v2 = vsub.f32 1.0, %v611_v13  ;;  %v396_v12 = vrot.slane %v368_v10, %v374_v5 }
  0x37   : > { %296 = vst [vmem:[%s754_s19 + $0x18] sm:$0xff] %v288_v14  ;;  %616 = vrcp.f32 %v252_v9 }
  0x38   : > { %v289_v15 = vsel %vm273_vm12, %v611_v13, %v281_v2  ;;  %v398_v16 = vcombine.low %v389_v1, %v396_v12 }
  0x39   : > { %v613_v18 = vpop.eup %612  ;;  %297 = vst [vmem:[%s754_s19 + $0x20] sm:$0xff] %v289_v15 }
  0x3a   : > { %v282_v19 = vsub.f32 1.0, %v613_v18  ;;  %v412_v20 = vrot.slane %v398_v16, %v374_v5 }
  0x3c   : > { %v290_v24 = vsel %vm274_vm13, %v613_v18, %v282_v19  ;;  %v413_v21 = vcombine.low %v405_v17, %v412_v20 }
  0x3d   : > { %298 = vst [vmem:[%s754_s19 + $0x28] sm:$0xff] %v290_v24 }
  0x3e   : > { %414 = vst [vmem:[%s203_s23] sm:$0xff] %v413_v21 }
  0x3f   : > { %v615_v22 = vpop.eup %614 }
  0x40   : > { %v283_v23 = vsub.f32 1.0, %v615_v22 }
  0x41   : > { %v617_v25 = vpop.eup %616 }
  0x42   : > { %v291_v26 = vsel %vm275_vm14, %v615_v22, %v283_v23  ;;  %v284_v37 = vsub.f32 1.0, %v617_v25 }
  0x43   : > { %299 = vst [vmem:[%s754_s19 + $0x30] sm:$0xff] %v291_v26 }
  0x44   : > { %v292_v28 = vsel %vm276_vm15, %v617_v25, %v284_v37 }
  0x45   : > { %300 = vst [vmem:[%s754_s19 + $0x38] sm:$0xff] %v292_v28 }
  0x46 PF: > { %s13_s11 = sadd.s32 1, %s640_s11   ;;  %s790_s9 = smov %s636_s10 }
  0x47   : > { %p10_p5 = scmp.ge.s32.totalorder %s13_s11, 4   ;;  %s791_s10 = smov %s793_s12 }
  0x49   :  { %12 = sbr.rel (!%p10_p5) target bundleno = 2 (0x2), region = 66 }

// kernel: _lambda_.8
= control target key start
LH: loop header
LB: loop body
LE: loop exit
PB: predicated region body
PF: predicated region fallthrough
CT: control target
= control target key end

     0   :  { %s3912_s25 = smov 0   ;;  %s4694_s0 = inlined_call_operand.vmem [shape: f32[2,10,10,64], index: 0, kind: input, shape index: {}]   ;;  %s4695_s1 = inlined_call_operand.vmem [shape: bf16[64,32], index: 1, kind: input, shape index: {}]   ;;  %s4696_s2 = inlined_call_operand.vmem [shape: f32[1,32], index: 2, kind: input, shape index: {}]   ;;  %s4697_s3 = inlined_call_operand.vmem [shape: bf16[32,32], index: 3, kind: input, shape index: {}]   ;;  %s4698_s4 = inlined_call_operand.vmem [shape: f32[1,32], index: 4, kind: input, shape index: {}]   ;;  %s4699_s5 = inlined_call_operand.vmem [shape: bf16[3,576,32], index: 5, kind: input, shape index: {}]   ;;  %s4700_s6 = inlined_call_operand.vmem [shape: f32[3,1,32], index: 6, kind: input, shape index: {}]   ;;  %s4701_s7 = inlined_call_operand.vmem [shape: bf16[3,32,32], index: 7, kind: input, shape index: {}]   ;;  %s4702_s8 = inlined_call_operand.vmem [shape: f32[3,1,32], index: 8, kind: input, shape index: {}]   ;;  %s4703_s9 = inlined_call_operand.vmem [shape: bf16[128,64], index: 9, kind: input, shape index: {}]   ;;  %s4704_s10 = inlined_call_operand.vmem [shape: f32[2,1,64], index: 10, kind: input, shape index: {}]   ;;  %s4705_s11 = inlined_call_operand.vmem [shape: bf16[64,8], index: 11, kind: input, shape index: {}]   ;;  %s4706_s12 = inlined_call_operand.vmem [shape: f32[1,8], index: 12, kind: input, shape index: {}]   ;;  %s4707_s13 = inlined_call_operand.vmem [shape: f32[2,8,16], index: 13, kind: output, shape index: {}]  }
   0x1 LB: > { %s2938_s26 = sadd.s32 4294967295, %s3835_s25   ;;  %p2942_p0 = scmp.ge.s32.totalorder %s3835_s25, 1  ;;  %s3835_s25 = sphi %s3912_s25, %s23_s25  }
   0x2   : > { %p395_p1 = scmp.lt.s32.totalorder %s3835_s25, 3 }
   0x4   : > { %p396_p2 = pnand %p2942_p0, %p395_p1 }
   0x5   : > { %v3685_v0 = vld [vmem:[%s4695_s1] sm:$0xff] (!%p396_p2)   ;;  %v3837_v1 = vmov (!%p396_p2), 0.0   ;;  %v3686_v2 = vld [vmem:[%s4695_s1 + $0x8] sm:$0xff] (!%p396_p2)   ;;  %vm3838_vm0 = vmmov (!%p396_p2), 0   ;;  %p441_p3 = scmp.lt.s32.totalorder (!%p396_p2), %s2938_s26, 1  ;;  %v3687_v3 = vld [vmem:[%s4695_s1 + $0x10] sm:$0xff] (!%p396_p2)  }
   0x6   : > { %399 = sbr.rel (%p396_p2) target bundleno = 1940 (0x794), region = 72  ;;  %3544 = vmatprep.subr.bf16.mxu0 (!%p396_p2), %v3837_v1  ;;  %3556 = vmatprep.subr.bf16.mxu1 (!%p396_p2), %v3837_v1  ;;  %v3688_v4 = vld [vmem:[%s4695_s1 + $0x18] sm:$0xff] (!%p396_p2)   ;;  %s3839_s22 = smov (!%p396_p2), 64   ;;  %vm507_vm1 = vcmask (!%p396_p2), 523264   ;;  %v3691_v28 = vld [vmem:[%s4697_s3] sm:$0xff] (!%p396_p2)   ;;  %v3692_v29 = vld [vmem:[%s4697_s3 + $0x8] sm:$0xff] (!%p396_p2)  }
   0x7   : > { %3545 = vmatpush3.bf16.msra.mxu0 (!%p396_p2), %v3685_v0  ;;  %3552 = vmatprep.mubr.msk.bf16.mxu0 (!%p396_p2), %vm3838_vm0, %v3837_v1  ;;  %v3693_v30 = vld [vmem:[%s4699_s5 + $0x40] sm:$0xff] (!%p396_p2)   ;;  %v3699_v33 = vld [vmem:[%s4699_s5 + $0xc8] sm:$0xff] (!%p396_p2)   ;;  %v3703_v35 = vld [vmem:[%s4699_s5 + $0xd0] sm:$0xff] (!%p396_p2)   ;;  %vm578_vm2 = vcmask (!%p396_p2), 261120   ;;  %s3840_s24 = smov (!%p396_p2), 32   ;;  %vm2640_vm3 = vcmask (!%p396_p2), 785408  }
   0x8   : > { %3546 = vmatprep.subr.bf16.mxu0 (!%p396_p2), %v3837_v1  ;;  %3560 = vmatprep.mubr.msk.bf16.mxu1 (!%p396_p2), %vm3838_vm0, %v3837_v1  ;;  %v3695_v31 = vld [vmem:[%s4699_s5 + $0xc0] sm:$0xff] (!%p396_p2)   ;;  %v3700_v34 = vld [vmem:[%s4699_s5 + $0x88] sm:$0xff] (!%p396_p2)   ;;  %v3704_v36 = vld [vmem:[%s4699_s5 + $0x90] sm:$0xff] (!%p396_p2)   ;;  %vm2874_vm4 = vcmask (!%p396_p2), 130048  }
   0x9   : > { %3557 = vmatpush3.bf16.msra.mxu1 (!%p396_p2), %v3691_v28  ;;  %v3696_v32 = vld [vmem:[%s4699_s5 + $0x80] sm:$0xff] (!%p396_p2)   ;;  %v3707_v37 = vld [vmem:[%s4699_s5 + $0xd8] sm:$0xff] (!%p396_p2)   ;;  %v3715_v50 = vld [vmem:[%s4699_s5 + $0xe8] sm:$0xff] (!%p396_p2)  }
   0xa   : > { %3558 = vmatprep.subr.bf16.mxu1 (!%p396_p2), %v3837_v1  ;;  %v3708_v38 = vld [vmem:[%s4699_s5 + $0x98] sm:$0xff] (!%p396_p2)   ;;  %v3711_v41 = vld [vmem:[%s4699_s5 + $0xe0] sm:$0xff] (!%p396_p2)   ;;  %v3716_v53 = vld [vmem:[%s4699_s5 + $0xa8] sm:$0xff] (!%p396_p2)  }
   0xb   : > { %3547 = vmatpush3.bf16.msra.mxu0 (!%p396_p2), %v3686_v2  ;;  %v3712_v44 = vld [vmem:[%s4699_s5 + $0xa0] sm:$0xff] (!%p396_p2)   ;;  %v3719_v60 = vld [vmem:[%s4699_s5 + $0xf0] sm:$0xff] (!%p396_p2)  }
   0xc   : > { %3548 = vmatprep.subr.bf16.mxu0 (!%p396_p2), %v3837_v1  ;;  %v3720_v0 = vld [vmem:[%s4699_s5 + $0xb0] sm:$0xff] (!%p396_p2)  }
   0xd   : > { %s4709_s26 = smov (!%p441_p3, %s2938_s26), 1  ;;  %3559 = vmatpush3.bf16.msra.mxu1 %v3692_v29 }
   0xe   : > { %s3656_s16 = smul.u32 160, %s4709_s26  ;;  %3374 = vmatprep.subr.bf16.mxu1 %v3693_v30  ;;  %s448_s18 = scalar_lea.vmem %s4704_s10, %s4709_s26 }
   0xf   : > { %3549 = vmatpush3.bf16.msra.mxu0 %v3687_v3  ;;  %s2944_s23 = sshll.u32 %s4709_s26, 3 }
  0x10   : > { %s3946_s21 = scalar_lea.vmem %s4694_s0, %s3656_s16  ;;  %3550 = vmatprep.subr.bf16.mxu0 %v3837_v1 }
  0x11   : > { %v3949_v5 = vld [vmem:[%s3946_s21 + $0x33] sm:$0xf]  ;;  %v3952_v6 = vld [vmem:[%s3946_s21 + $0x43] sm:$0xf] }
  0x12   : > { %v3955_v7 = vld [vmem:[%s3946_s21 + $0x53] sm:$0xf]  ;;  %v3958_v8 = vld [vmem:[%s3946_s21 + $0x63] sm:$0xf]  ;;  %v463_v9 = vcombine.low %v3949_v5, %v3952_v6 }
  0x13   : > { %v2973_v10 = vld [vmem:[%s3946_s21 + $0x52] sm:$0xf]  ;;  %v464_v12 = vcombine.low %v3955_v7, %v3958_v8  ;;  %v2974_v13 = vld [vmem:[%s3946_s21 + $0x62] sm:$0xf]  ;;  %3551 = vmatpush3.bf16.msra.mxu0 %v3688_v4 }
  0x14   : > { %v2971_v11 = vld [vmem:[%s3946_s21 + $0x32] sm:$0xf]  ;;  %683 = vrot.lane.b32.xlu1 %v2973_v10, %s3839_s22  ;;  %v2972_v15 = vld [vmem:[%s3946_s21 + $0x42] sm:$0xf]  ;;  %3396 = vmatprep.subr.bf16.mxu0 %v3695_v31 }
  0x15   : > { %679 = vrot.lane.b32.xlu0 %v2971_v11, %s3839_s22  ;;  %v467_v14 = vpack.c.bf16 %v464_v12, %v463_v9  ;;  %v2964_v16 = vld [vmem:[%s3946_s21 + $0x33] sm:$0xf]  ;;  %v2963_v17 = vld [vmem:[%s3946_s21 + $0x23] sm:$0xf]  ;;  %v3723_v11 = vld [vmem:[%s4699_s5 + $0xf8] sm:$0xff]  }
  0x16   : > { %v2966_v18 = vld [vmem:[%s3946_s21 + $0x53] sm:$0xf]  ;;  %v2965_v19 = vld [vmem:[%s3946_s21 + $0x43] sm:$0xf] }
  0x17   : > { %3553 = vmatmul.mubr.msk.bf16.vlgmr.msra.gmra.mrb[0].mxu0 %vm507_vm1, %v467_v14  ;;  %v2984_v20 = vld [vmem:[%s3946_s21 + $0x53] sm:$0xf]  ;;  %v2983_v21 = vld [vmem:[%s3946_s21 + $0x43] sm:$0xf]  ;;  %v3724_v14 = vld [vmem:[%s4699_s5 + $0xb8] sm:$0xff]  }
  0x18   : > { %685 = vrot.lane.b32.xlu1 %v2974_v13, %s3839_s22  ;;  %v2986_v22 = vld [vmem:[%s3946_s21 + $0x73] sm:$0xf]  ;;  %v2985_v23 = vld [vmem:[%s3946_s21 + $0x63] sm:$0xf]  ;;  %3397 = vmatpush3.bf16.msra.mxu0 %v3696_v32 }
  0x19   : > { %681 = vrot.lane.b32.xlu0 %v2972_v15, %s3839_s22  ;;  %v2976_v24 = vld [vmem:[%s3946_s21 + $0x44] sm:$0xf]  ;;  %v2975_v25 = vld [vmem:[%s3946_s21 + $0x34] sm:$0xf]  ;;  %3398 = vmatprep.subr.bf16.mxu0 %v3699_v33 }
  0x1a   : > { %v2978_v26 = vld [vmem:[%s3946_s21 + $0x64] sm:$0xf]  ;;  %v2977_v27 = vld [vmem:[%s3946_s21 + $0x54] sm:$0xf] }
  0x1b   : > { %v2969_v40 = vld [vmem:[%s3946_s21 + $0x44] sm:$0xf]  ;;  %v2970_v45 = vld [vmem:[%s3946_s21 + $0x54] sm:$0xf] }
  0x1c   : > { %665 = vrot.lane.b32.xlu1 %v2964_v16, %s3839_s22  ;;  %3399 = vmatpush3.bf16.msra.mxu0 %v3700_v34  ;;  %v2967_v43 = vld [vmem:[%s3946_s21 + $0x24] sm:$0xf]  ;;  %v2968_v47 = vld [vmem:[%s3946_s21 + $0x34] sm:$0xf] }
  0x1d   : > { %663 = vrot.lane.b32.xlu0 %v2963_v17, %s3839_s22  ;;  %3400 = vmatprep.subr.bf16.mxu0 %v3703_v35  ;;  %v2960_v56 = vld [vmem:[%s3946_s21 + $0x32] sm:$0xf]  ;;  %v2959_v58 = vld [vmem:[%s3946_s21 + $0x22] sm:$0xf] }
  0x1e   : > { %v2962_v3 = vld [vmem:[%s3946_s21 + $0x52] sm:$0xf]  ;;  %v2961_v9 = vld [vmem:[%s3946_s21 + $0x42] sm:$0xf] }
  0x1f   : > { %v2980_v17 = vld [vmem:[%s3946_s21 + $0x52] sm:$0xf] }
  0x20   : > { %669 = vrot.lane.b32.xlu1 %v2966_v18, %s3839_s22  ;;  %3401 = vmatpush3.bf16.msra.mxu0 %v3704_v36  ;;  %v2979_v18 = vld [vmem:[%s3946_s21 + $0x42] sm:$0xf] }
  0x21   : > { %667 = vrot.lane.b32.xlu0 %v2965_v19, %s3839_s22  ;;  %3402 = vmatprep.subr.bf16.mxu0 %v3707_v37 }
  0x24   : > { %713 = vrot.lane.b32.xlu1 %v2984_v20, %s3839_s22  ;;  %3403 = vmatpush3.bf16.msra.mxu0 %v3708_v38 }
  0x25   : > { %711 = vrot.lane.b32.xlu0 %v2983_v21, %s3839_s22  ;;  %3404 = vmatprep.subr.bf16.mxu0 %v3711_v41 }
  0x28   : > { %717 = vrot.lane.b32.xlu1 %v2986_v22, %s3839_s22  ;;  %3405 = vmatpush3.bf16.msra.mxu0 %v3712_v44 }
  0x29   : > { %715 = vrot.lane.b32.xlu0 %v2985_v23, %s3839_s22  ;;  %3406 = vmatprep.subr.bf16.mxu0 %v3715_v50  ;;  %v3068_v50 = vld [vmem:[%s3946_s21 + $0x83] sm:$0xf] }
  0x2c   : > { %697 = vrot.lane.b32.xlu1 %v2976_v24, %s3839_s22  ;;  %3407 = vmatpush3.bf16.msra.mxu0 %v3716_v53  ;;  %v2982_v24 = vld [vmem:[%s3946_s21 + $0x72] sm:$0xf] }
  0x2d   : > { %695 = vrot.lane.b32.xlu0 %v2975_v25, %s3839_s22  ;;  %3408 = vmatprep.subr.bf16.mxu0 %v3719_v60  ;;  %v2981_v25 = vld [vmem:[%s3946_s21 + $0x62] sm:$0xf]  ;;  %v3057_v53 = vld [vmem:[%s3946_s21 + $0x35] sm:$0xf] }
  0x30   : > { %701 = vrot.lane.b32.xlu1 %v2978_v26, %s3839_s22  ;;  %3409 = vmatpush3.bf16.msra.mxu0 %v3720_v0 }
  0x31   : > { %699 = vrot.lane.b32.xlu0 %v2977_v27, %s3839_s22  ;;  %3410 = vmatprep.subr.bf16.mxu0 %v3723_v11  ;;  %v3701_v11 = vld [vmem:[%s4699_s5 + $0x50] sm:$0xff]  }
  0x34   : > { %3411 = vmatpush3.bf16.msra.mxu0 %v3724_v14  ;;  %v3709_v14 = vld [vmem:[%s4699_s5 + $0x60] sm:$0xff]  }
  0x86   : > { %v684_v39 = vpop.permute.xlu1 %683 }
  0x87   : > { %v680_v42 = vpop.permute.xlu0 %679  ;;  %v729_v46 = vsel %vm507_vm1, %v2969_v40, %v684_v39 }
  0x88   : > { %v727_v48 = vsel %vm507_vm1, %v2967_v43, %v680_v42  ;;  %v3054_v43 = vld [vmem:[%s3946_s21 + $0x41] sm:$0xf] }
  0x89   : > { %1341 = vrot.lane.b32.xlu1 %v3054_v43, %s3839_s22  ;;  %v3741_v43 = vld [vmem:[%s4699_s5 + $0x140] sm:$0xff]  }
  0x8a   : > { %v686_v49 = vpop.permute.xlu1 %685 }
  0x8b   : > { %v730_v51 = vsel %vm507_vm1, %v2970_v45, %v686_v49  ;;  %v682_v52 = vpop.permute.xlu0 %681  ;;  %v3055_v45 = vld [vmem:[%s3946_s21 + $0x51] sm:$0xf] }
  0x8c   : > { %v2996_v54 = vcombine.low %v729_v46, %v730_v51  ;;  %v728_v55 = vsel %vm507_vm1, %v2968_v47, %v682_v52  ;;  %v3048_v46 = vld [vmem:[%s3946_s21 + $0x43] sm:$0xf]  ;;  %v3047_v47 = vld [vmem:[%s3946_s21 + $0x33] sm:$0xf] }
  0x8d   : > { %v2992_v57 = vcombine.low %v727_v48, %v728_v55  ;;  %v3066_v48 = vld [vmem:[%s3946_s21 + $0x63] sm:$0xf]  ;;  %v3065_v49 = vld [vmem:[%s3946_s21 + $0x53] sm:$0xf] }
  0x8e   : > { %v666_v59 = vpop.permute.xlu1 %665  ;;  %v3067_v51 = vld [vmem:[%s3946_s21 + $0x73] sm:$0xf]  ;;  %v3058_v52 = vld [vmem:[%s3946_s21 + $0x45] sm:$0xf] }
  0x8f   : > { %v724_v61 = vsel %vm507_vm1, %v2960_v56, %v666_v59  ;;  %v664_v62 = vpop.permute.xlu0 %663  ;;  %v4058_v63 = vpack.c.bf16 %v2996_v54, %v2992_v57  ;;  %v3060_v54 = vld [vmem:[%s3946_s21 + $0x65] sm:$0xf]  ;;  %v3059_v55 = vld [vmem:[%s3946_s21 + $0x55] sm:$0xf]  ;;  %v2949_v56 = vld [vmem:[%s4696_s2] ss:$0 sm:$0xff] }
  0x90   : > { %v723_v2 = vsel %vm507_vm1, %v2959_v58, %v664_v62 }
  0x91   : > { %v2991_v4 = vcombine.low %v723_v2, %v724_v61 }
  0x92   : > { %v670_v10 = vpop.permute.xlu1 %669 }
  0x93   : > { %v726_v12 = vsel %vm507_vm1, %v2962_v3, %v670_v10  ;;  %v668_v13 = vpop.permute.xlu0 %667  ;;  %v3694_v3 = vld [vmem:[%s4699_s5] sm:$0xff]   ;;  %v3698_v10 = vld [vmem:[%s4699_s5 + $0x8] sm:$0xff]  }
  0x94   : > { %v725_v15 = vsel %vm507_vm1, %v2961_v9, %v668_v13  ;;  %v3697_v9 = vld [vmem:[%s4699_s5 + $0x48] sm:$0xff]   ;;  %v3705_v13 = vld [vmem:[%s4699_s5 + $0x58] sm:$0xff]  }
  0x95   : > { %v2995_v16 = vcombine.low %v725_v15, %v726_v12  ;;  %v3702_v12 = vld [vmem:[%s4699_s5 + $0x10] sm:$0xff]   ;;  %v3710_v15 = vld [vmem:[%s4699_s5 + $0x20] sm:$0xff]  }
  0x96   : > { %v714_v19 = vpop.permute.xlu1 %713 }
  0x97   : > { %v4076_v20 = vpack.c.bf16 %v2995_v16, %v2991_v4  ;;  %v712_v21 = vpop.permute.xlu0 %711  ;;  %v736_v22 = vsel %vm507_vm1, %v2980_v17, %v714_v19  ;;  %v3713_v16 = vld [vmem:[%s4699_s5 + $0x68] sm:$0xff]   ;;  %v3718_v19 = vld [vmem:[%s4699_s5 + $0x30] sm:$0xff]  }
  0x98   : > { %v735_v23 = vsel %vm507_vm1, %v2979_v18, %v712_v21  ;;  %v3714_v17 = vld [vmem:[%s4699_s5 + $0x28] sm:$0xff]   ;;  %v3717_v18 = vld [vmem:[%s4699_s5 + $0x70] sm:$0xff]   ;;  %v3721_v21 = vld [vmem:[%s4699_s5 + $0x78] sm:$0xff]  }
  0x99   : > { %v2994_v27 = vcombine.low %v735_v23, %v736_v22  ;;  %v3722_v22 = vld [vmem:[%s4699_s5 + $0x38] sm:$0xff]   ;;  %v3725_v23 = vld [vmem:[%s4699_s5 + $0x100] sm:$0xff]  }
  0x9a   : > { %v718_v26 = vpop.permute.xlu1 %717 }
  0x9b   : > { %v738_v28 = vsel %vm507_vm1, %v2982_v24, %v718_v26  ;;  %v716_v29 = vpop.permute.xlu0 %715  ;;  %v3726_v24 = vld [vmem:[%s4699_s5 + $0x108] sm:$0xff]   ;;  %v3729_v26 = vld [vmem:[%s3946_s21 + $0x44] ss:$16 sps:$4 sm:$0xff]  }
  0x9c   : > { %v737_v30 = vsel %vm507_vm1, %v2981_v25, %v716_v29  ;;  %v3727_v25 = vld [vmem:[%s4699_s5 + $0x110] sm:$0xff]   ;;  %v3731_v29 = vld [vmem:[%s4699_s5 + $0x160] sm:$0xff]  }
  0x9d   : > { %v2998_v31 = vcombine.low %v737_v30, %v738_v28  ;;  %v3732_v30 = vld [vmem:[%s4699_s5 + $0x120] sm:$0xff]   ;;  %3426 = vmatprep.subr.bf16.mxu0 %v3731_v29  ;;  %v3201_v29 = vld [vmem:[%s3946_s21 + $0x30] sm:$0xf] }
  0x9e   : > { %v698_v32 = vpop.permute.xlu1 %697 }
  0x9f   : > { %v696_v33 = vpop.permute.xlu0 %695  ;;  %v790_v34 = vpack.c.bf16 %v2998_v31, %v2994_v27  ;;  %v732_v35 = vsel %vm507_vm1, %v3952_v6, %v698_v32  ;;  %v3053_v6 = vld [vmem:[%s3946_s21 + $0x31] sm:$0xf]  ;;  %v3733_v31 = vld [vmem:[%s4699_s5 + $0x168] sm:$0xff]  }
  0xa0   : > { %v731_v36 = vsel %vm507_vm1, %v3949_v5, %v696_v33  ;;  %1339 = vrot.lane.b32.xlu0 %v3053_v6, %s3839_s22  ;;  %v3056_v5 = vld [vmem:[%s3946_s21 + $0x61] sm:$0xf]  ;;  %v3734_v32 = vld [vmem:[%s4699_s5 + $0x128] sm:$0xff]   ;;  %v3735_v33 = vld [vmem:[%s4699_s5 + $0x170] sm:$0xff]  }
  0xa1   : > { %1163 = vmatprep.mubr.bf16.mxu0 %v790_v34  ;;  %v2993_v38 = vcombine.low %v731_v36, %v732_v35  ;;  %1345 = vrot.lane.b32.xlu1 %v3056_v5, %s3839_s22  ;;  %v3730_v27 = vld [vmem:[%s3946_s21 + $0x64] ss:$16 sps:$4 sm:$0xff]   ;;  %v3737_v35 = vld [vmem:[%s4699_s5 + $0x178] sm:$0xff]  }
  0xa2   : > { %v702_v37 = vpop.permute.xlu1 %701  ;;  %v791_v28 = vpack.c.bf16 %v3730_v27, %v3729_v26  ;;  %v3736_v34 = vld [vmem:[%s4699_s5 + $0x130] sm:$0xff]   ;;  %v3738_v36 = vld [vmem:[%s4699_s5 + $0x138] sm:$0xff]  }
  0xa3   : > { %v734_v39 = vsel %vm507_vm1, %v3958_v8, %v702_v37  ;;  %v700_v40 = vpop.permute.xlu0 %699  ;;  %v3045_v8 = vld [vmem:[%s3946_s21 + $0x13] sm:$0xf] }
  0xa4   : > { %v733_v41 = vsel %vm507_vm1, %v3955_v7, %v700_v40  ;;  %1343 = vrot.lane.b32.xlu0 %v3055_v45, %s3839_s22  ;;  %v3046_v7 = vld [vmem:[%s3946_s21 + $0x23] sm:$0xf] }
  0xa5   : > { %v2997_v42 = vcombine.low %v733_v41, %v734_v39  ;;  %1325 = vrot.lane.b32.xlu1 %v3046_v7, %s3839_s22  ;;  %v3739_v39 = vld [vmem:[%s4701_s7] sm:$0xff]   ;;  %v3742_v7 = vld [vmem:[%s4701_s7 + $0x8] sm:$0xff]  }
  0xa6   : > { %v3740_v40 = vld [vmem:[%s4699_s5 + $0x180] sm:$0xff]  }
  0xa7   : > { %v789_v44 = vpack.c.bf16 %v2997_v42, %v2993_v38  ;;  %v3050_v41 = vld [vmem:[%s3946_s21 + $0x25] sm:$0xf]  ;;  %v3049_v42 = vld [vmem:[%s3946_s21 + $0x15] sm:$0xf] }
  0xa8   : > { %1323 = vrot.lane.b32.xlu0 %v3045_v8, %s3839_s22  ;;  %v3743_v8 = vld [vmem:[%s4699_s5 + $0x188] sm:$0xff]  }
  0xa9   : > { %1164 = vmatmul.mubr.bf16.vlgmr.msra.gmra.mrb[4].mxu0 %v789_v44  ;;  %1329 = vrot.lane.b32.xlu1 %v3048_v46, %s3839_s22  ;;  %v3769_v26 = vld [vmem:[%s3946_s21 + $0x55] ss:$16 sps:$4 sm:$0xff]  }
  0xaa   : > { %3427 = vmatpush3.bf16.msra.mxu0 %v3732_v30  ;;  %v3770_v27 = vld [vmem:[%s3946_s21 + $0x75] ss:$16 sps:$4 sm:$0xff]   ;;  %v3204_v30 = vld [vmem:[%s3946_s21 + $0x60] sm:$0xf] }
  0xab   : > { %3428 = vmatprep.subr.bf16.mxu0 %v3733_v31  ;;  %v3203_v31 = vld [vmem:[%s3946_s21 + $0x50] sm:$0xf] }
  0xac   : > { %1327 = vrot.lane.b32.xlu0 %v3047_v47, %s3839_s22 }
  0xad   : > { %1373 = vrot.lane.b32.xlu1 %v3066_v48, %s3839_s22  ;;  %v3744_v48 = vld [vmem:[%s4699_s5 + $0x148] sm:$0xff]  }
  0xae   : > { %3429 = vmatpush3.bf16.msra.mxu0 %v3734_v32  ;;  %v1954_v32 = vld [vmem:[%s3946_s21 + $0x13] sm:$0xf] }
  0xaf   : > { %3430 = vmatprep.subr.bf16.mxu0 %v3735_v33  ;;  %v1953_v33 = vld [vmem:[%s3946_s21 + $0x3] sm:$0xf] }
  0xb0   : > { %1371 = vrot.lane.b32.xlu0 %v3065_v49, %s3839_s22 }
  0xb1   : > { %1377 = vrot.lane.b32.xlu1 %v3068_v50, %s3839_s22 }
  0xb2   : > { %3431 = vmatpush3.bf16.msra.mxu0 %v3736_v34  ;;  %v1956_v34 = vld [vmem:[%s3946_s21 + $0x33] sm:$0xf] }
  0xb3   : > { %3432 = vmatprep.subr.bf16.mxu0 %v3737_v35  ;;  %v1955_v35 = vld [vmem:[%s3946_s21 + $0x23] sm:$0xf] }
  0xb4   : > { %1375 = vrot.lane.b32.xlu0 %v3067_v51, %s3839_s22 }
  0xb5   : > { %1357 = vrot.lane.b32.xlu1 %v3058_v52, %s3839_s22 }
  0xb6   : > { %3433 = vmatpush3.bf16.msra.mxu0 %v3738_v36  ;;  %v3214_v36 = vld [vmem:[%s3946_s21 + $0x73] sm:$0xf] }
  0xb7   : > { %3434 = vmatprep.subr.bf16.mxu0 %v3740_v40  ;;  %v3206_v40 = vld [vmem:[%s3946_s21 + $0x46] sm:$0xf] }
  0xb8   : > { %1355 = vrot.lane.b32.xlu0 %v3057_v53, %s3839_s22  ;;  %v3052_v53 = vld [vmem:[%s3946_s21 + $0x45] sm:$0xf] }
  0xb9   : > { %1361 = vrot.lane.b32.xlu1 %v3060_v54, %s3839_s22  ;;  %v3051_v54 = vld [vmem:[%s3946_s21 + $0x35] sm:$0xf] }
  0xba   : > { %3435 = vmatpush3.bf16.msra.mxu0 %v3741_v43  ;;  %v3207_v43 = vld [vmem:[%s3946_s21 + $0x56] sm:$0xf] }
  0xbb   : > { %3436 = vmatprep.subr.bf16.mxu0 %v3743_v8  ;;  %v2999_v8 = vld [vmem:[%s4700_s6] ss:$0 sm:$0xff] }
  0xbc   : > { %1359 = vrot.lane.b32.xlu0 %v3059_v55, %s3839_s22  ;;  %v3745_v55 = vld [vmem:[%s4699_s5 + $0x1e0] sm:$0xff]  }
  0xbe   : > { %3437 = vmatpush3.bf16.msra.mxu0 %v3744_v48 }
  0xc0   : > { %2002 = vrot.lane.b32.xlu0 %v3201_v29, %s3839_s22 }
  0xc4   : > { %2006 = vrot.lane.b32.xlu0 %v3203_v31, %s3839_s22  ;;  %v3760_v31 = vld [vmem:[%s4699_s5 + $0x208] sm:$0xff]  }
  0xc8   : > { %1986 = vrot.lane.b32.xlu0 %v1953_v33, %s3839_s22  ;;  %v3763_v33 = vld [vmem:[%s4699_s5 + $0x210] sm:$0xff]  }
  0xcc   : > { %1990 = vrot.lane.b32.xlu0 %v1955_v35, %s3839_s22 }
  0xea   : > { %v545_v57 = vpop.f32.mrb[0].mxu0 }
  0xeb   : > { %v546_v58 = vadd.f32 %v2949_v56, %v545_v57  ;;  %v3554_v59 = vpop.f32.mrb[1].mxu0 }
  0xec   : > { %v548_v60 = vpop.f32.mrb[2].mxu0  ;;  %v3042_v59 = vld [vmem:[%s3946_s21 + $0x21] sm:$0xf] }
  0xed   : > { %v549_v61 = vadd.f32 %v2949_v56, %v548_v60  ;;  %v3555_v62 = vpop.f32.mrb[3].mxu0  ;;  %v552_v0 = vmax.f32 %v546_v58, 0.0 }
  0xee   : > { %v3746_v62 = vld [vmem:[%s4699_s5 + $0x190] sm:$0xff]  }
  0xef   : > { %v553_v2 = vmax.f32 %v549_v61, 0.0  ;;  %v3041_v61 = vld [vmem:[%s3946_s21 + $0x11] sm:$0xf]  ;;  %3438 = vmatprep.subr.bf16.mxu0 %v3746_v62 }
  0xf1   : > { %v554_v4 = vpack.c.bf16 %v553_v2, %v552_v0 }
  0xf3   : > { %3561 = vmatmul.mubr.msk.bf16.vlgmr.msra.gmra.mrb[0].mxu1 %vm578_vm2, %v554_v4 }
  0xf4   : > { %3375 = vmatpush3.bf16.msra.mxu1 %v3694_v3  ;;  %1122 = vmatprep.mubr.bf16.mxu1 %v4058_v63  ;;  %v3706_v63 = vld [vmem:[%s4699_s5 + $0x18] sm:$0xff]  }
  0xf5   : > { %3376 = vmatprep.subr.bf16.mxu1 %v3697_v9  ;;  %v3748_v9 = vld [vmem:[%s4699_s5 + $0x150] sm:$0xff]  }
  0xf6   : > { %3439 = vmatpush3.bf16.msra.mxu0 %v3748_v9 }
  0xf8   : > { %3377 = vmatpush3.bf16.msra.mxu1 %v3698_v10  ;;  %v3044_v10 = vld [vmem:[%s3946_s21 + $0x41] sm:$0xf] }
  0xf9   : > { %3378 = vmatprep.subr.bf16.mxu1 %v3701_v11  ;;  %v3043_v11 = vld [vmem:[%s3946_s21 + $0x31] sm:$0xf] }
  0xfb   : > { %v1342_v37 = vpop.permute.xlu1 %1341 }
  0xfc   : > { %3379 = vmatpush3.bf16.msra.mxu1 %v3702_v12  ;;  %v1388_v44 = vsel %vm507_vm1, %v3050_v41, %v1342_v37  ;;  %v3213_v37 = vld [vmem:[%s3946_s21 + $0x63] sm:$0xf]  ;;  %v3205_v41 = vld [vmem:[%s3946_s21 + $0x36] sm:$0xf] }
  0xfd   : > { %3380 = vmatprep.subr.bf16.mxu1 %v3705_v13  ;;  %2034 = vrot.lane.b32.xlu0 %v3213_v37, %s3839_s22  ;;  %v3766_v37 = vld [vmem:[%s4699_s5 + $0x218] sm:$0xff]  }
 0x100   : > { %3381 = vmatpush3.bf16.msra.mxu1 %v3706_v63  ;;  %v3750_v63 = vld [vmem:[%s4699_s5 + $0x198] sm:$0xff]  }
 0x101   : > { %3382 = vmatprep.subr.bf16.mxu1 %v3709_v14  ;;  %3440 = vmatprep.subr.bf16.mxu0 %v3750_v63 }
 0x104   : > { %3383 = vmatpush3.bf16.msra.mxu1 %v3710_v15 }
 0x105   : > { %3384 = vmatprep.subr.bf16.mxu1 %v3713_v16 }
 0x108   : > { %3385 = vmatpush3.bf16.msra.mxu1 %v3714_v17 }
 0x109   : > { %3386 = vmatprep.subr.bf16.mxu1 %v3717_v18  ;;  %v3752_v18 = vld [vmem:[%s4699_s5 + $0x158] sm:$0xff]  }
 0x10a   : > { %3441 = vmatpush3.bf16.msra.mxu0 %v3752_v18  ;;  %v3747_v18 = vld [vmem:[%s4699_s5 + $0x1a0] sm:$0xff]  }
 0x10b   : > { %3584 = vmatprep.subr.bf16.mxu0 %v3837_v1 }
 0x10c   : > { %3387 = vmatpush3.bf16.msra.mxu1 %v3718_v19 }
 0x10d   : > { %3388 = vmatprep.subr.bf16.mxu1 %v3721_v21 }
 0x110   : > { %3389 = vmatpush3.bf16.msra.mxu1 %v3722_v22  ;;  %v3759_v22 = vld [vmem:[%s4699_s5 + $0x220] sm:$0xff]  }
 0x111   : > { %3564 = vmatprep.subr.bf16.mxu1 %v3837_v1 }
 0x112   : > { %v1340_v38 = vpop.permute.xlu0 %1339 }
 0x113   : > { %1123 = vmatmul.mubr.bf16.vlgmr.msra.gmra.mrb[4].mxu1 %v4076_v20  ;;  %v3728_v20 = vld [vmem:[%s4699_s5 + $0x118] sm:$0xff]   ;;  %v1387_v5 = vsel %vm507_vm1, %v3049_v42, %v1340_v38  ;;  %v1346_v45 = vpop.permute.xlu1 %1345  ;;  %v3216_v38 = vld [vmem:[%s3946_s21 + $0x93] sm:$0xf]  ;;  %v3208_v42 = vld [vmem:[%s3946_s21 + $0x66] sm:$0xf] }
 0x114   : > { %3565 = vmatpush3.bf16.msra.mxu1 %v3725_v23  ;;  %3572 = vmatprep.mubr.msk.bf16.mxu1 %vm3838_vm0, %v3837_v1  ;;  %v3074_v52 = vcombine.low %v1387_v5, %v1388_v44  ;;  %v1390_v57 = vsel %vm507_vm1, %v3052_v53, %v1346_v45  ;;  %v3762_v23 = vld [vmem:[%s4699_s5 + $0x228] sm:$0xff]  }
 0x115   : > { %3566 = vmatprep.subr.bf16.mxu1 %v3837_v1 }
 0x116   : > { %v1344_v47 = vpop.permute.xlu0 %1343 }
 0x117   : > { %v1389_v58 = vsel %vm507_vm1, %v3051_v54, %v1344_v47  ;;  %v1326_v60 = vpop.permute.xlu1 %1325 }
 0x118   : > { %3567 = vmatpush3.bf16.msra.mxu1 %v3726_v24  ;;  %v3078_v0 = vcombine.low %v1389_v58, %v1390_v57  ;;  %v1384_v3 = vsel %vm507_vm1, %v3042_v59, %v1326_v60  ;;  %v3765_v24 = vld [vmem:[%s4699_s5 + $0x230] sm:$0xff]   ;;  %v3062_v59 = vld [vmem:[%s3946_s21 + $0x61] sm:$0xf] }
 0x119   : > { %3568 = vmatprep.subr.bf16.mxu1 %v3837_v1  ;;  %v3061_v60 = vld [vmem:[%s3946_s21 + $0x51] sm:$0xf] }
 0x11a   : > { %v1324_v2 = vpop.permute.xlu0 %1323  ;;  %v1448_v12 = vpack.c.bf16 %v3078_v0, %v3074_v52  ;;  %v3063_v0 = vld [vmem:[%s3946_s21 + $0x71] sm:$0xf] }
 0x11b   : > { %v1383_v4 = vsel %vm507_vm1, %v3041_v61, %v1324_v2  ;;  %v1330_v13 = vpop.permute.xlu1 %1329  ;;  %v3064_v61 = vld [vmem:[%s3946_s21 + $0x81] sm:$0xf] }
 0x11c   : > { %3569 = vmatpush3.bf16.msra.mxu1 %v3727_v25  ;;  %v3073_v14 = vcombine.low %v1383_v4, %v1384_v3  ;;  %v1386_v15 = vsel %vm507_vm1, %v3044_v10, %v1330_v13  ;;  %1784 = vmatprep.mubr.bf16.mxu0 %v1448_v12  ;;  %v3768_v25 = vld [vmem:[%s4699_s5 + $0x238] sm:$0xff]  }
 0x11d   : > { %3570 = vmatprep.subr.bf16.mxu1 %v3837_v1 }
 0x11e   : > { %v1328_v16 = vpop.permute.xlu0 %1327 }
 0x11f   : > { %v1385_v17 = vsel %vm507_vm1, %v3043_v11, %v1328_v16 }
 0x120   : > { %3571 = vmatpush3.bf16.msra.mxu1 %v3728_v20  ;;  %v3077_v19 = vcombine.low %v1385_v17, %v1386_v15  ;;  %v1451_v20 = vpack.c.bf16 %v3770_v27, %v3769_v26  ;;  %v3755_v26 = vld [vmem:[%s4699_s5 + $0x1f8] sm:$0xff]  }
 0x121   : > { %3576 = vmatprep.subr.bf16.mxu1 %v3837_v1  ;;  %v3756_v27 = vld [vmem:[%s4699_s5 + $0x1b8] sm:$0xff]  }
 0x122   : > { %v1447_v21 = vpack.c.bf16 %v3077_v19, %v3073_v14  ;;  %v1372_v57 = vpop.permute.xlu0 %1371 }
 0x123   : > { %3573 = vmatmul.mubr.msk.bf16.vlgmr.msra.gmra.mrb[8].mxu1 %vm507_vm1, %v791_v28  ;;  %v3202_v28 = vld [vmem:[%s3946_s21 + $0x40] sm:$0xf]  ;;  %v1395_v4 = vsel %vm507_vm1, %v3061_v60, %v1372_v57 }
 0x124   : > { %3580 = vmatprep.mubr.msk.bf16.mxu1 %vm3838_vm0, %v3837_v1  ;;  %3577 = vmatpush3.bf16.msra.mxu1 %v3739_v39  ;;  %v3215_v39 = vld [vmem:[%s3946_s21 + $0x83] sm:$0xf] }
 0x125   : > { %3578 = vmatprep.subr.bf16.mxu1 %v3837_v1  ;;  %1785 = vmatmul.mubr.bf16.vlgmr.msra.gmra.mrb[8].mxu0 %v1447_v21 }
 0x126   : > { %3592 = vmatprep.mubr.msk.bf16.mxu0 %vm3838_vm0, %v3837_v1  ;;  %3585 = vmatpush3.bf16.msra.mxu0 %v3759_v22  ;;  %v1376_v2 = vpop.permute.xlu0 %1375  ;;  %v3749_v22 = vld [vmem:[%s4699_s5 + $0x1e8] sm:$0xff]  }
 0x127   : > { %3586 = vmatprep.subr.bf16.mxu0 %v3837_v1  ;;  %2004 = vrot.lane.b32.xlu1 %v3202_v28, %s3839_s22  ;;  %v1397_v10 = vsel %vm507_vm1, %v3063_v0, %v1376_v2  ;;  %v3758_v28 = vld [vmem:[%s4699_s5 + $0x1c0] sm:$0xff]   ;;  %v1958_v0 = vld [vmem:[%s3946_s21 + $0x16] sm:$0xf] }
 0x128   : > { %3579 = vmatpush3.bf16.msra.mxu1 %v3742_v7  ;;  %2038 = vrot.lane.b32.xlu0 %v3215_v39, %s3839_s22 }
 0x129   : > { %3448 = vmatprep.subr.bf16.mxu1 %v3745_v55  ;;  %v1374_v55 = vpop.permute.xlu1 %1373 }
 0x12a   : > { %3587 = vmatpush3.bf16.msra.mxu0 %v3762_v23  ;;  %v1396_v3 = vsel %vm507_vm1, %v3062_v59, %v1374_v55  ;;  %v3751_v23 = vld [vmem:[%s4699_s5 + $0x1a8] sm:$0xff]   ;;  %v3771_v59 = vld [vmem:[%s4701_s7 + $0x10] sm:$0xff]  }
 0x12b   : > { %3588 = vmatprep.subr.bf16.mxu0 %v3837_v1  ;;  %2008 = vrot.lane.b32.xlu1 %v3204_v30, %s3839_s22  ;;  %v3076_v63 = vcombine.low %v1395_v4, %v1396_v3  ;;  %v1356_v30 = vpop.permute.xlu0 %1355  ;;  %v1957_v3 = vld [vmem:[%s3946_s21 + $0x6] sm:$0xf] }
 0x12c   : > { %2018 = vrot.lane.b32.xlu0 %v3205_v41, %s3839_s22 }
 0x12d   : > { %v1378_v62 = vpop.permute.xlu1 %1377 }
 0x12e   : > { %3589 = vmatpush3.bf16.msra.mxu0 %v3765_v24  ;;  %v1398_v9 = vsel %vm507_vm1, %v3064_v61, %v1378_v62  ;;  %v3753_v24 = vld [vmem:[%s4699_s5 + $0x1f0] sm:$0xff]   ;;  %v3772_v61 = vld [vmem:[%s4701_s7 + $0x18] sm:$0xff]   ;;  %v3773_v62 = vld [vmem:[%s4699_s5 + $0x280] sm:$0xff]  }
 0x12f   : > { %3590 = vmatprep.subr.bf16.mxu0 %v3837_v1  ;;  %1988 = vrot.lane.b32.xlu1 %v1954_v32, %s3839_s22  ;;  %v3761_v32 = vld [vmem:[%s4699_s5 + $0x1c8] sm:$0xff]   ;;  %v1360_v35 = vpop.permute.xlu0 %1359 }
 0x130   : > { %2022 = vrot.lane.b32.xlu0 %v3207_v43, %s3839_s22 }
 0x131   : > { %v1358_v29 = vpop.permute.xlu1 %1357 }
 0x132   : > { %3591 = vmatpush3.bf16.msra.mxu0 %v3768_v25  ;;  %v3754_v25 = vld [vmem:[%s4699_s5 + $0x1b0] sm:$0xff]  }
 0x133   : > { %1992 = vrot.lane.b32.xlu1 %v1956_v34, %s3839_s22  ;;  %v2003_v4 = vpop.permute.xlu0 %2002 }
 0x135   : > { %3593 = vmatmul.mubr.msk.bf16.vlgmr.msra.gmra.mrb[12].mxu0 %vm507_vm1, %v1451_v20  ;;  %v3757_v20 = vld [vmem:[%s4699_s5 + $0x200] sm:$0xff]   ;;  %v1362_v34 = vpop.permute.xlu1 %1361 }
 0x137   : > { %2036 = vrot.lane.b32.xlu1 %v3214_v36, %s3839_s22  ;;  %v3764_v36 = vld [vmem:[%s4699_s5 + $0x1d0] sm:$0xff]  }
 0x13b   : > { %2040 = vrot.lane.b32.xlu1 %v3216_v38, %s3839_s22  ;;  %v4391_v38 = vld [vmem:[%s3946_s21 + $0x43] sm:$0xf] }
 0x13c   : > { %v1392_v39 = vsel %vm507_vm1, %v4391_v38, %v1358_v29  ;;  %v1952_v29 = vld [vmem:[%s3946_s21 + $0x30] sm:$0xf] }
 0x13f   : > { %2020 = vrot.lane.b32.xlu1 %v3206_v40, %s3839_s22  ;;  %v4396_v40 = vld [vmem:[%s3946_s21 + $0x33] sm:$0xf] }
 0x140   : > { %v1391_v41 = vsel %vm507_vm1, %v4396_v40, %v1356_v30  ;;  %v1951_v30 = vld [vmem:[%s3946_s21 + $0x20] sm:$0xf] }
 0x143   : > { %2024 = vrot.lane.b32.xlu1 %v3208_v42, %s3839_s22  ;;  %v4401_v42 = vld [vmem:[%s3946_s21 + $0x63] sm:$0xf] }
 0x144   : > { %v1394_v43 = vsel %vm507_vm1, %v4401_v42, %v1362_v34 }
 0x17c   : > { %v3412_v6 = vpop.f32.mrb[4].mxu0 }
 0x17d   : > { %v3413_v46 = vpop.f32.mrb[5].mxu0 }
 0x17e   : > { %v4246_v49 = vadd.f32 %v3413_v46, %v3412_v6  ;;  %v3415_v50 = vpop.f32.mrb[6].mxu0 }
 0x17f   : > { %v3416_v51 = vpop.f32.mrb[7].mxu0 }
 0x180   : > { %v4253_v56 = vadd.f32 %v3416_v51, %v3415_v50 }
 0x199   : > { %v2005_v2 = vpop.permute.xlu1 %2004 }
 0x1c6   : > { %v4330_v6 = vpop.f32.mrb[0].mxu1 }
 0x1c7   : > { %v3562_v44 = vpop.f32.mrb[1].mxu1 }
 0x1c8   : > { %v4332_v5 = vpop.f32.mrb[2].mxu1  ;;  %v4406_v44 = vld [vmem:[%s3946_s21 + $0x53] sm:$0xf] }
 0x1c9   : > { %v3563_v45 = vpop.f32.mrb[3].mxu1 }
 0x1ca   : > { %v1393_v45 = vsel %vm507_vm1, %v4406_v44, %v1360_v35 }
 0x1e6   : > { %v3390_v7 = vpop.f32.mrb[4].mxu1 }
 0x1e7   : > { %v3391_v46 = vpop.f32.mrb[5].mxu1 }
 0x1e8   : > { %v3392_v47 = vadd.f32 %v3391_v46, %v3390_v7  ;;  %v3393_v48 = vpop.f32.mrb[6].mxu1  ;;  %v3767_v7 = vld [vmem:[%s4699_s5 + $0x1d8] sm:$0xff]   ;;  %v3079_v46 = vcombine.low %v1393_v45, %v1394_v43 }
 0x1e9   : > { %v3394_v50 = vpop.f32.mrb[7].mxu1 }
 0x1ea   : > { %v1125_v51 = vadd.f32 %v3392_v47, %v2999_v8  ;;  %v3395_v52 = vadd.f32 %v3394_v50, %v3393_v48 }
 0x1ec   : > { %v1128_v53 = vadd.f32 %v3395_v52, %v2999_v8  ;;  %v1166_v54 = vadd.f32 %v4246_v49, %v1125_v51  ;;  %v3075_v8 = vcombine.low %v1391_v41, %v1392_v39  ;;  %v3788_v39 = vld [vmem:[%s4699_s5 + $0x2d8] sm:$0xff]  }
 0x1ee   : > { %v1169_v58 = vadd.f32 %v4253_v56, %v1128_v53  ;;  %v3080_v56 = vcombine.low %v1397_v10, %v1398_v9  ;;  %v1449_v47 = vpack.c.bf16 %v3079_v46, %v3075_v8  ;;  %v2051_v9 = vsel %vm507_vm1, %v1958_v0, %v2005_v2  ;;  %v3792_v8 = vld [vmem:[%s4699_s5 + $0x2e0] sm:$0xff]   ;;  %v3210_v46 = vld [vmem:[%s3946_s21 + $0x70] sm:$0xf] }
 0x1ef   : > { %v2050_v10 = vsel %vm507_vm1, %v1957_v3, %v2003_v4 }
 0x1f0   : > { %v1450_v19 = vpack.c.bf16 %v3080_v56, %v3076_v63  ;;  %v1959_v63 = vld [vmem:[%s3946_s21 + $0x26] sm:$0xf]  ;;  %v2009_v56 = vpop.permute.xlu1 %2008 }
 0x1f6   : > { %v1206_v11 = vpop.f32.mrb[8].mxu1 }
 0x1f7   : > { %v1207_v49 = vadd.f32 %v1206_v11, %v1166_v54  ;;  %v3574_v12 = vpop.f32.mrb[9].mxu1  ;;  %v3222_v11 = vcombine.low %v2050_v10, %v2051_v9  ;;  %v3799_v10 = vld [vmem:[%s4699_s5 + $0x330] sm:$0xff]  }
 0x1f8   : > { %v1209_v13 = vpop.f32.mrb[10].mxu1  ;;  %v3442_v48 = vpop.f32.mrb[8].mxu0  ;;  %v3776_v12 = vld [vmem:[%s4699_s5 + $0x2c0] sm:$0xff]  }
 0x1f9   : > { %v1210_v14 = vadd.f32 %v1209_v13, %v1169_v58  ;;  %v3575_v15 = vpop.f32.mrb[11].mxu1  ;;  %v1213_v16 = vmax.f32 %v1207_v49, 0.0  ;;  %v3443_v50 = vpop.f32.mrb[9].mxu0  ;;  %v3775_v49 = vld [vmem:[%s4699_s5 + $0x300] sm:$0xff]   ;;  %v1960_v13 = vld [vmem:[%s3946_s21 + $0x36] sm:$0xf] }
 0x1fa   : > { %v4416_v51 = vadd.f32 %v3443_v50, %v3442_v48  ;;  %v3445_v52 = vpop.f32.mrb[10].mxu0  ;;  %3500 = vmatprep.subr.bf16.mxu0 %v3775_v49  ;;  %v2053_v15 = vsel %vm507_vm1, %v1960_v13, %v2009_v56  ;;  %v3209_v50 = vld [vmem:[%s3946_s21 + $0x60] sm:$0xf] }
 0x1fb   : > { %v1214_v17 = vmax.f32 %v1210_v14, 0.0  ;;  %v3446_v53 = vpop.f32.mrb[11].mxu0  ;;  %v2007_v14 = vpop.permute.xlu0 %2006  ;;  %3501 = vmatpush3.bf16.msra.mxu0 %v3776_v12  ;;  %v3800_v12 = vld [vmem:[%s4699_s5 + $0x2f0] sm:$0xff]  }
 0x1fc   : > { %v4418_v54 = vadd.f32 %v3446_v53, %v3445_v52  ;;  %v3212_v52 = vld [vmem:[%s3946_s21 + $0x90] sm:$0xf]  ;;  %v3211_v53 = vld [vmem:[%s3946_s21 + $0x80] sm:$0xf] }
 0x1fd   : > { %v1215_v21 = vpack.c.bf16 %v1214_v17, %v1213_v16  ;;  %v2052_v16 = vsel %vm507_vm1, %v1959_v63, %v2007_v14 }
 0x1fe   : > { %v3226_v17 = vcombine.low %v2052_v16, %v2053_v15  ;;  %v3803_v15 = vld [vmem:[%s4699_s5 + $0x338] sm:$0xff]  }
 0x1ff   : > { %3581 = vmatmul.mubr.msk.bf16.vlgmr.msra.gmra.mrb[12].mxu1 %vm578_vm2, %v1215_v21  ;;  %v1950_v21 = vld [vmem:[%s3946_s21 + $0x10] sm:$0xf]  ;;  %v3804_v16 = vld [vmem:[%s4699_s5 + $0x2f8] sm:$0xff]  }
 0x200   : > { %3449 = vmatpush3.bf16.msra.mxu1 %v3747_v18  ;;  %1825 = vmatprep.mubr.bf16.mxu1 %v1450_v19  ;;  %v3779_v18 = vld [vmem:[%s4699_s5 + $0x308] sm:$0xff]  }
 0x201   : > { %3450 = vmatprep.subr.bf16.mxu1 %v3749_v22  ;;  %v3780_v19 = vld [vmem:[%s4699_s5 + $0x2c8] sm:$0xff]   ;;  %v1949_v22 = vld [vmem:[%s3946_s21] sm:$0xf]  ;;  %3502 = vmatprep.subr.bf16.mxu0 %v3779_v18 }
 0x202   : > { %3503 = vmatpush3.bf16.msra.mxu0 %v3780_v19 }
 0x204   : > { %3451 = vmatpush3.bf16.msra.mxu1 %v3751_v23  ;;  %v1989_v23 = vpop.permute.xlu1 %1988 }
 0x205   : > { %3452 = vmatprep.subr.bf16.mxu1 %v3753_v24  ;;  %v1987_v24 = vpop.permute.xlu0 %1986 }
 0x208   : > { %3453 = vmatpush3.bf16.msra.mxu1 %v3754_v25  ;;  %v4420_v55 = vpop.f32.mrb[12].mxu0  ;;  %v2047_v25 = vsel %vm507_vm1, %v1950_v21, %v1989_v23 }
 0x209   : > { %3454 = vmatprep.subr.bf16.mxu1 %v3755_v26  ;;  %v3594_v57 = vpop.f32.mrb[13].mxu0  ;;  %v2046_v26 = vsel %vm507_vm1, %v1949_v22, %v1987_v24 }
 0x20a   : > { %v4422_v58 = vpop.f32.mrb[14].mxu0  ;;  %v3795_v57 = vld [vmem:[%s4699_s5 + $0x328] sm:$0xff]  }
 0x20b   : > { %v3595_v60 = vpop.f32.mrb[15].mxu0 }
 0x20c   : > { %3455 = vmatpush3.bf16.msra.mxu1 %v3756_v27  ;;  %v3221_v27 = vcombine.low %v2046_v26, %v2047_v25 }
 0x20d   : > { %3456 = vmatprep.subr.bf16.mxu1 %v3757_v20  ;;  %v3783_v20 = vld [vmem:[%s4699_s5 + $0x310] sm:$0xff]  }
 0x20e   : > { %3504 = vmatprep.subr.bf16.mxu0 %v3783_v20  ;;  %v3154_v20 = vld [vmem:[%s4700_s6 + $0x1] ss:$0 sm:$0xff] }
 0x210   : > { %3457 = vmatpush3.bf16.msra.mxu1 %v3758_v28  ;;  %v3784_v28 = vld [vmem:[%s4699_s5 + $0x2d0] sm:$0xff]  }
 0x211   : > { %3458 = vmatprep.subr.bf16.mxu1 %v3760_v31  ;;  %v1993_v31 = vpop.permute.xlu1 %1992  ;;  %3505 = vmatpush3.bf16.msra.mxu0 %v3784_v28 }
 0x214   : > { %3459 = vmatpush3.bf16.msra.mxu1 %v3761_v32  ;;  %v1991_v32 = vpop.permute.xlu0 %1990 }
 0x215   : > { %3460 = vmatprep.subr.bf16.mxu1 %v3763_v33  ;;  %v2049_v33 = vsel %vm507_vm1, %v1952_v29, %v1993_v31  ;;  %v2048_v34 = vsel %vm507_vm1, %v1951_v30, %v1991_v32  ;;  %v2037_v43 = vpop.permute.xlu1 %2036  ;;  %v1787_v30 = vadd.f32 %v4416_v51, %v3154_v20  ;;  %v3777_v51 = vld [vmem:[%s4699_s5 + $0x288] sm:$0xff]  }
 0x216   : > { %v3225_v35 = vcombine.low %v2048_v34, %v2049_v33  ;;  %v2059_v60 = vsel %vm507_vm1, %v3210_v46, %v2037_v43  ;;  %v1790_v34 = vadd.f32 %v4418_v54, %v3154_v20  ;;  %v3774_v46 = vld [vmem:[%s4699_s5 + $0x240] sm:$0xff]   ;;  %v3778_v54 = vld [vmem:[%s4699_s5 + $0x248] sm:$0xff]  }
 0x218   : > { %3461 = vmatpush3.bf16.msra.mxu1 %v3764_v36  ;;  %v3787_v36 = vld [vmem:[%s4699_s5 + $0x318] sm:$0xff]   ;;  %v4476_v41 = vpack.c.bf16 %v3225_v35, %v3221_v27  ;;  %v2035_v45 = vpop.permute.xlu0 %2034 }
 0x219   : > { %3462 = vmatprep.subr.bf16.mxu1 %v3766_v37  ;;  %v4471_v37 = vpack.c.bf16 %v3226_v17, %v3222_v11  ;;  %3506 = vmatprep.subr.bf16.mxu0 %v3787_v36 }
 0x21a   : > { %3507 = vmatpush3.bf16.msra.mxu0 %v3788_v39 }
 0x21c   : > { %3463 = vmatpush3.bf16.msra.mxu1 %v3767_v7  ;;  %v3791_v7 = vld [vmem:[%s4699_s5 + $0x320] sm:$0xff]   ;;  %v2039_v48 = vpop.permute.xlu0 %2038 }
 0x21d   : > { %3596 = vmatprep.subr.bf16.mxu1 %v3837_v1  ;;  %3508 = vmatprep.subr.bf16.mxu0 %v3791_v7  ;;  %v2060_v0 = vsel %vm507_vm1, %v3211_v53, %v2039_v48  ;;  %v3785_v48 = vld [vmem:[%s4699_s5 + $0x298] sm:$0xff]   ;;  %v3793_v53 = vld [vmem:[%s4699_s5 + $0x2a8] sm:$0xff]  }
 0x21e   : > { %3509 = vmatpush3.bf16.msra.mxu0 %v3792_v8 }
 0x21f   : > { %1826 = vmatmul.mubr.bf16.vlgmr.msra.gmra.mrb[16].mxu1 %v1449_v47  ;;  %v2041_v47 = vpop.permute.xlu1 %2040  ;;  %3510 = vmatprep.subr.bf16.mxu0 %v3795_v57  ;;  %v3794_v57 = vld [vmem:[%s4699_s5 + $0x268] sm:$0xff]  }
 0x220   : > { %3600 = vmatprep.mubr.msk.bf16.mxu1 %vm3838_vm0, %v3837_v1  ;;  %3597 = vmatpush3.bf16.msra.mxu1 %v3771_v59  ;;  %v3796_v59 = vld [vmem:[%s4699_s5 + $0x2e8] sm:$0xff]   ;;  %v2019_v3 = vpop.permute.xlu0 %2018 }
 0x221   : > { %3598 = vmatprep.subr.bf16.mxu1 %v3837_v1  ;;  %v2054_v9 = vsel %vm507_vm1, %v4396_v40, %v2019_v3  ;;  %v3807_v3 = vld [vmem:[%s4699_s5 + $0x350] sm:$0xff]  }
 0x222   : > { %3511 = vmatpush3.bf16.msra.mxu0 %v3796_v59  ;;  %v3797_v59 = vld [vmem:[%s4699_s5 + $0x2b0] sm:$0xff]  }
 0x223   : > { %v2021_v2 = vpop.permute.xlu1 %2020  ;;  %3512 = vmatprep.subr.bf16.mxu0 %v3799_v10 }
 0x224   : > { %3599 = vmatpush3.bf16.msra.mxu1 %v3772_v61  ;;  %v2058_v61 = vsel %vm507_vm1, %v3209_v50, %v2035_v45  ;;  %v2055_v4 = vsel %vm507_vm1, %v4391_v38, %v2021_v2  ;;  %v2023_v56 = vpop.permute.xlu0 %2022  ;;  %v3789_v50 = vld [vmem:[%s4699_s5 + $0x2a0] sm:$0xff]   ;;  %v3806_v2 = vld [vmem:[%s4699_s5 + $0x348] sm:$0xff]  }
 0x225   : > { %3478 = vmatprep.subr.bf16.mxu1 %v3773_v62  ;;  %v2061_v62 = vsel %vm507_vm1, %v3212_v52, %v2041_v47  ;;  %v3224_v11 = vcombine.low %v2058_v61, %v2059_v60  ;;  %v3223_v13 = vcombine.low %v2054_v9, %v2055_v4  ;;  %v2056_v40 = vsel %vm507_vm1, %v4406_v44, %v2023_v56  ;;  %v3790_v52 = vld [vmem:[%s4699_s5 + $0x260] sm:$0xff]   ;;  %v3798_v60 = vld [vmem:[%s4699_s5 + $0x270] sm:$0xff]   ;;  %v3801_v61 = vld [vmem:[%s4699_s5 + $0x2b8] sm:$0xff]  }
 0x226   : > { %v3228_v49 = vcombine.low %v2060_v0, %v2061_v62  ;;  %3513 = vmatpush3.bf16.msra.mxu0 %v3800_v12  ;;  %v3802_v62 = vld [vmem:[%s4699_s5 + $0x278] sm:$0xff]   ;;  %v3805_v0 = vld [vmem:[%s4699_s5 + $0x340] sm:$0xff]  }
 0x227   : > { %v2025_v63 = vpop.permute.xlu1 %2024  ;;  %3514 = vmatprep.subr.bf16.mxu0 %v3803_v15  ;;  %v3809_v4 = vld [vmem:[%s3946_s21 + $0x66] ss:$16 sps:$4 sm:$0xff]  }
 0x228   : > { %v2057_v38 = vsel %vm507_vm1, %v4401_v42, %v2025_v63  ;;  %v2113_v17 = vpack.c.bf16 %v3228_v49, %v3224_v11  ;;  %v3037_v42 = vld [vmem:[%s4702_s8] ss:$0 sm:$0xff]  ;;  %v3810_v9 = vld [vmem:[%s3946_s21 + $0x86] ss:$16 sps:$4 sm:$0xff]   ;;  %s3841_s21 = smov 96  }
 0x229   : > { %v3227_v14 = vcombine.low %v2056_v40, %v2057_v38  ;;  %v2114_v10 = vpack.c.bf16 %v3810_v9, %v3809_v4  ;;  %v3811_v38 = vld [vmem:[%s4701_s7 + $0x20] sm:$0xff]   ;;  %v3812_v40 = vld [vmem:[%s4701_s7 + $0x28] sm:$0xff]  }
 0x22a   : > { %3515 = vmatpush3.bf16.msra.mxu0 %v3804_v16  ;;  %2488 = vmatprep.mubr.bf16.mxu0 %v2113_v17  ;;  %v2955_v9 = vld [vmem:[%s4698_s4] ss:$0 sm:$0xff] }
 0x22b   : > { %v2112_v18 = vpack.c.bf16 %v3227_v14, %v3223_v13  ;;  %3616 = vmatprep.subr.bf16.mxu0 %v3837_v1  ;;  %v3197_v14 = vld [vmem:[%s4702_s8 + $0x1] ss:$0 sm:$0xff] }
 0x22d   : > { %2489 = vmatmul.mubr.bf16.vlgmr.msra.gmra.mrb[16].mxu0 %v2112_v18 }
 0x22e   : > { %3620 = vmatprep.mubr.msk.bf16.mxu0 %vm3838_vm0, %v3837_v1  ;;  %3617 = vmatpush3.bf16.msra.mxu0 %v3811_v38 }
 0x22f   : > { %3618 = vmatprep.subr.bf16.mxu0 %v3837_v1 }
 0x232   : > { %3619 = vmatpush3.bf16.msra.mxu0 %v3812_v40 }
 0x233   : > { %3624 = vmatprep.subr.bf16.mxu0 %v3837_v1 }
 0x2d2   : > { %v1276_v44 = vpop.f32.mrb[12].mxu1 }
 0x2d3   : > { %v1277_v19 = vadd.f32 %v3037_v42, %v1276_v44  ;;  %v3582_v21 = vpop.f32.mrb[13].mxu1 }
 0x2d4   : > { %v1279_v22 = vpop.f32.mrb[14].mxu1 }
 0x2d5   : > { %v1280_v23 = vadd.f32 %v3037_v42, %v1279_v22  ;;  %v3583_v24 = vpop.f32.mrb[15].mxu1  ;;  %v1283_v25 = vmax.f32 %v1277_v19, 0.0 }
 0x2d6   : > { %v3302_v24 = vld [vmem:[%s4700_s6 + $0x2] ss:$0 sm:$0xff] }
 0x2d7   : > { %v1284_v26 = vmax.f32 %v1280_v23, 0.0 }
 0x2d9   : > { %v3670_v27 = vpack.i.bf16 %v1284_v26, %v1283_v25 }
 0x2db   : > { %3671 = vrot.lane.b32.xlu0 %v3670_v27, %s3840_s24 }
 0x2f2   : > { %v3464_v28 = vpop.f32.mrb[16].mxu1 }
 0x2f3   : > { %v3465_v29 = vpop.f32.mrb[17].mxu1 }
 0x2f4   : > { %v3466_v31 = vadd.f32 %v3465_v29, %v3464_v28  ;;  %v3467_v32 = vpop.f32.mrb[18].mxu1 }
 0x2f5   : > { %v3468_v33 = vpop.f32.mrb[19].mxu1 }
 0x2f6   : > { %v1828_v35 = vadd.f32 %v3466_v31, %v1787_v30  ;;  %v3469_v36 = vadd.f32 %v3468_v33, %v3467_v32 }
 0x2f8   : > { %v1869_v39 = vadd.f32 %v4420_v55, %v1828_v35  ;;  %v1831_v43 = vadd.f32 %v3469_v36, %v1790_v34  ;;  %v3781_v55 = vld [vmem:[%s4699_s5 + $0x290] sm:$0xff]  }
 0x2fa   : > { %v1872_v45 = vadd.f32 %v4422_v58, %v1831_v43  ;;  %v1875_v7 = vmax.f32 %v1869_v39, 0.0  ;;  %v3782_v58 = vld [vmem:[%s4699_s5 + $0x250] sm:$0xff]  }
 0x2fc   : > { %v1876_v8 = vmax.f32 %v1872_v45, 0.0 }
 0x2fe   : > { %v1877_v47 = vpack.c.bf16 %v1876_v8, %v1875_v7 }
 0x300   : > { %3601 = vmatmul.mubr.msk.bf16.vlgmr.msra.gmra.mrb[20].mxu1 %vm578_vm2, %v1877_v47  ;;  %v3516_v11 = vpop.f32.mrb[16].mxu0  ;;  %v3814_v47 = vld [vmem:[%s4703_s9 + $0x8] sm:$0xff]  }
 0x301   : > { %3479 = vmatpush3.bf16.msra.mxu1 %v3774_v46  ;;  %2447 = vmatprep.mubr.bf16.mxu1 %v4471_v37  ;;  %v3786_v37 = vld [vmem:[%s4699_s5 + $0x258] sm:$0xff]   ;;  %v3517_v49 = vpop.f32.mrb[17].mxu0  ;;  %v3813_v46 = vld [vmem:[%s4703_s9] sm:$0xff]  }
 0x302   : > { %3480 = vmatprep.subr.bf16.mxu1 %v3777_v51  ;;  %v3518_v12 = vadd.f32 %v3517_v49, %v3516_v11  ;;  %v3519_v13 = vpop.f32.mrb[18].mxu0  ;;  %v3815_v51 = vld [vmem:[%s4703_s9 + $0x10] sm:$0xff]   ;;  %v620_v11 = vadd.f32 %v2955_v9, %v4332_v5 }
 0x303   : > { %v3520_v63 = vpop.f32.mrb[19].mxu0 }
 0x304   : > { %v3521_v56 = vadd.f32 %v3520_v63, %v3519_v13  ;;  %v624_v40 = vmax.f32 %v620_v11, 0.0 }
 0x305   : > { %3481 = vmatpush3.bf16.msra.mxu1 %v3778_v54  ;;  %v3816_v54 = vld [vmem:[%s4703_s9 + $0x18] sm:$0xff]  }
 0x306   : > { %3482 = vmatprep.subr.bf16.mxu1 %v3781_v55  ;;  %v3817_v55 = vld [vmem:[%s4703_s9 + $0x20] sm:$0xff]  }
 0x309   : > { %3483 = vmatpush3.bf16.msra.mxu1 %v3782_v58  ;;  %v3818_v58 = vld [vmem:[%s4703_s9 + $0x28] sm:$0xff]  }
 0x30a   : > { %3484 = vmatprep.subr.bf16.mxu1 %v3785_v48  ;;  %v3819_v48 = vld [vmem:[%s4703_s9 + $0x30] sm:$0xff]  }
 0x30d   : > { %3485 = vmatpush3.bf16.msra.mxu1 %v3786_v37  ;;  %v3820_v37 = vld [vmem:[%s4703_s9 + $0x38] sm:$0xff]  }
 0x30e   : > { %3486 = vmatprep.subr.bf16.mxu1 %v3789_v50  ;;  %v3345_v50 = vld [vmem:[%s4702_s8 + $0x2] ss:$0 sm:$0xff] }
 0x311   : > { %3487 = vmatpush3.bf16.msra.mxu1 %v3790_v52 }
 0x312   : > { %3488 = vmatprep.subr.bf16.mxu1 %v3793_v53 }
 0x315   : > { %3489 = vmatpush3.bf16.msra.mxu1 %v3794_v57 }
 0x316   : > { %3490 = vmatprep.subr.bf16.mxu1 %v3797_v59  ;;  %v3821_v59 = vld [vmem:[%s4705_s11] sm:$0xff]  }
 0x319   : > { %3491 = vmatpush3.bf16.msra.mxu1 %v3798_v60 }
 0x31a   : > { %3492 = vmatprep.subr.bf16.mxu1 %v3801_v61 }
 0x31d   : > { %3493 = vmatpush3.bf16.msra.mxu1 %v3802_v62 }
 0x31e   : > { %3604 = vmatprep.subr.bf16.mxu1 %v3837_v1 }
 0x320   : > { %2448 = vmatmul.mubr.bf16.vlgmr.msra.gmra.mrb[24].mxu1 %v4476_v41  ;;  %v3808_v41 = vld [vmem:[%s4699_s5 + $0x358] sm:$0xff]  }
 0x321   : > { %3605 = vmatpush3.bf16.msra.mxu1 %v3805_v0  ;;  %3612 = vmatprep.mubr.msk.bf16.mxu1 %vm3838_vm0, %v3837_v1  ;;  %v3822_v0 = vld [vmem:[%s4705_s11 + $0x8] sm:$0xff]  }
 0x322   : > { %3606 = vmatprep.subr.bf16.mxu1 %v3837_v1 }
 0x325   : > { %3607 = vmatpush3.bf16.msra.mxu1 %v3806_v2 }
 0x326   : > { %3608 = vmatprep.subr.bf16.mxu1 %v3837_v1 }
 0x329   : > { %3609 = vmatpush3.bf16.msra.mxu1 %v3807_v3 }
 0x32a   : > { %3610 = vmatprep.subr.bf16.mxu1 %v3837_v1 }
 0x32d   : > { %3611 = vmatpush3.bf16.msra.mxu1 %v3808_v41 }
 0x32e   : > { %3644 = vmatprep.subr.bf16.mxu1 %v3837_v1 }
 0x330   : > { %3613 = vmatmul.mubr.msk.bf16.vlgmr.msra.gmra.mrb[28].mxu1 %vm507_vm1, %v2114_v10  ;;  %v617_v10 = vadd.f32 %v2955_v9, %v4330_v6 }
 0x331   : > { %3652 = vmatprep.mubr.msk.bf16.mxu1 %vm3838_vm0, %v3837_v1  ;;  %3645 = vmatpush3.bf16.msra.mxu1 %v3821_v59 }
 0x332   : > { %3646 = vmatprep.subr.bf16.mxu1 %v3837_v1  ;;  %v623_v38 = vmax.f32 %v617_v10, 0.0 }
 0x335   : > { %3647 = vmatpush3.bf16.msra.mxu1 %v3822_v0 }
 0x336   : > { %3648 = vmatprep.subr.bf16.mxu1 %v3837_v1 }
 0x34d   : > { %v3672_v41 = vpop.permute.xlu0 %3671 }
 0x34e   : > { %v3673_v13 = vunpack.i.l.bf16 %v3672_v41 }
 0x3d3   : > { %v1940_v15 = vpop.f32.mrb[20].mxu1 }
 0x3d4   : > { %v1941_v16 = vadd.f32 %v3197_v14, %v1940_v15  ;;  %v3602_v17 = vpop.f32.mrb[21].mxu1 }
 0x3d5   : > { %v1943_v18 = vpop.f32.mrb[22].mxu1 }
 0x3d6   : > { %v1944_v42 = vadd.f32 %v3197_v14, %v1943_v18  ;;  %v3603_v44 = vpop.f32.mrb[23].mxu1  ;;  %v1947_v19 = vmax.f32 %v1941_v16, 0.0  ;;  %v2636_v16 = vsel %vm578_vm2, %v623_v38, %v3673_v13 }
 0x3d8   : > { %v1948_v21 = vmax.f32 %v1944_v42, 0.0 }
 0x3da   : > { %v3675_v22 = vpack.i.bf16 %v1948_v21, %v1947_v19  ;;  %v3823_v21 = vld [vmem:[%s4705_s11 + $0x10] sm:$0xff]  }
 0x3db   : > { %3649 = vmatpush3.bf16.msra.mxu1 %v3823_v21 }
 0x3dc   : > { %3676 = vrot.lane.b32.xlu1 %v3675_v22, %s3839_s22  ;;  %3650 = vmatprep.subr.bf16.mxu1 %v3837_v1  ;;  %v3824_v22 = vld [vmem:[%s4705_s11 + $0x18] sm:$0xff]  }
 0x3df   : > { %3651 = vmatpush3.bf16.msra.mxu1 %v3824_v22 }
 0x3f3   : > { %v3494_v23 = vpop.f32.mrb[24].mxu1 }
 0x3f4   : > { %v3495_v25 = vpop.f32.mrb[25].mxu1 }
 0x3f5   : > { %v3496_v26 = vadd.f32 %v3495_v25, %v3494_v23  ;;  %v3497_v27 = vpop.f32.mrb[26].mxu1  ;;  %v3349_v23 = vld [vmem:[%s448_s18] ss:$0 sm:$0xff] }
 0x3f6   : > { %v3498_v20 = vpop.f32.mrb[27].mxu1 }
 0x3f7   : > { %v2450_v28 = vadd.f32 %v3496_v26, %v3302_v24  ;;  %v3499_v29 = vadd.f32 %v3498_v20, %v3497_v27 }
 0x3f9   : > { %v2453_v30 = vadd.f32 %v3499_v29, %v3302_v24  ;;  %v2491_v31 = vadd.f32 %v3518_v12, %v2450_v28  ;;  %v3674_v12 = vunpack.i.h.bf16 %v3672_v41 }
 0x3fb   : > { %v2494_v32 = vadd.f32 %v3521_v56, %v2453_v30  ;;  %v2637_v15 = vsel %vm578_vm2, %v624_v40, %v3674_v12 }
 0x403   : > { %v2531_v33 = vpop.f32.mrb[28].mxu1 }
 0x404   : > { %v2532_v34 = vadd.f32 %v2531_v33, %v2491_v31  ;;  %v3614_v35 = vpop.f32.mrb[29].mxu1  ;;  %v3358_v31 = vld [vmem:[%s4706_s12] ss:$0 sm:$0xff] }
 0x405   : > { %v2534_v36 = vpop.f32.mrb[30].mxu1 }
 0x406   : > { %v2535_v39 = vadd.f32 %v2534_v36, %v2494_v32  ;;  %v3615_v43 = vpop.f32.mrb[31].mxu1  ;;  %v2538_v45 = vmax.f32 %v2532_v34, 0.0 }
 0x408   : > { %v2539_v7 = vmax.f32 %v2535_v39, 0.0 }
 0x40a   : > { %v2540_v8 = vpack.c.bf16 %v2539_v7, %v2538_v45 }
 0x40c   : > { %3621 = vmatmul.mubr.msk.bf16.vlgmr.msra.gmra.mrb[20].mxu0 %vm578_vm2, %v2540_v8 }
 0x40d   : > { %3640 = vmatprep.mubr.msk.bf16.mxu0 %vm3838_vm0, %v3837_v1  ;;  %3625 = vmatpush3.bf16.msra.mxu0 %v3813_v46 }
 0x40e   : > { %3626 = vmatprep.subr.bf16.mxu0 %v3837_v1 }
 0x411   : > { %3627 = vmatpush3.bf16.msra.mxu0 %v3814_v47 }
 0x412   : > { %3628 = vmatprep.subr.bf16.mxu0 %v3837_v1 }
 0x415   : > { %3629 = vmatpush3.bf16.msra.mxu0 %v3815_v51 }
 0x416   : > { %3630 = vmatprep.subr.bf16.mxu0 %v3837_v1 }
 0x419   : > { %3631 = vmatpush3.bf16.msra.mxu0 %v3816_v54 }
 0x41a   : > { %3632 = vmatprep.subr.bf16.mxu0 %v3837_v1 }
 0x41d   : > { %3633 = vmatpush3.bf16.msra.mxu0 %v3817_v55 }
 0x41e   : > { %3634 = vmatprep.subr.bf16.mxu0 %v3837_v1 }
 0x421   : > { %3635 = vmatpush3.bf16.msra.mxu0 %v3818_v58 }
 0x422   : > { %3636 = vmatprep.subr.bf16.mxu0 %v3837_v1 }
 0x425   : > { %3637 = vmatpush3.bf16.msra.mxu0 %v3819_v48 }
 0x426   : > { %3638 = vmatprep.subr.bf16.mxu0 %v3837_v1 }
 0x429   : > { %3639 = vmatpush3.bf16.msra.mxu0 %v3820_v37 }
 0x44e   : > { %v3677_v49 = vpop.permute.xlu1 %3676 }
 0x44f   : > { %v3679_v63 = vunpack.i.h.bf16 %v3677_v49  ;;  %v3678_v56 = vunpack.i.l.bf16 %v3677_v49 }
 0x451   : > { %v2639_v6 = vsel %vm507_vm1, %v2637_v15, %v3679_v63  ;;  %v2638_v5 = vsel %vm507_vm1, %v2636_v16, %v3678_v56 }
 0x4df   : > { %v2603_v52 = vpop.f32.mrb[20].mxu0 }
 0x4e0   : > { %v2604_v53 = vadd.f32 %v3345_v50, %v2603_v52  ;;  %v3622_v57 = vpop.f32.mrb[21].mxu0 }
 0x4e1   : > { %v2606_v60 = vpop.f32.mrb[22].mxu0 }
 0x4e2   : > { %v2607_v61 = vadd.f32 %v3345_v50, %v2606_v60  ;;  %v3623_v62 = vpop.f32.mrb[23].mxu0  ;;  %v2610_v2 = vmax.f32 %v2604_v53, 0.0 }
 0x4e4   : > { %v2611_v3 = vmax.f32 %v2607_v61, 0.0 }
 0x4e6   : > { %v3680_v4 = vpack.i.bf16 %v2611_v3, %v2610_v2 }
 0x4e8   : > { %3681 = vrot.lane.b32.xlu0 %v3680_v4, %s3841_s21  ;;  %s452_s21 = scalar_lea.vmem %s4707_s13, %s2944_s23 }
 0x55a   : > { %v3682_v14 = vpop.permute.xlu0 %3681 }
 0x55b   : > { %v3684_v17 = vunpack.i.h.bf16 %v3682_v14  ;;  %v3683_v18 = vunpack.i.l.bf16 %v3682_v14 }
 0x55d   : > { %v2642_v42 = vsel %vm2640_vm3, %v2639_v6, %v3684_v17  ;;  %v2641_v44 = vsel %vm2640_vm3, %v2638_v5, %v3683_v18 }
 0x55e   : > { %v2643_v19 = vpack.c.bf16 %v2642_v42, %v2641_v44 }
 0x560   : > { %3641 = vmatmul.mubr.bf16.vlgmr.msra.gmra.mrb[24].mxu0 %v2643_v19 }
 0x633   : > { %v2749_v24 = vpop.f32.mrb[24].mxu0 }
 0x634   : > { %v2750_v25 = vadd.f32 %v3349_v23, %v2749_v24  ;;  %v3642_v26 = vpop.f32.mrb[25].mxu0 }
 0x635   : > { %v2752_v27 = vpop.f32.mrb[26].mxu0 }
 0x636   : > { %v2753_v20 = vadd.f32 %v3349_v23, %v2752_v27  ;;  %v3643_v28 = vpop.f32.mrb[27].mxu0  ;;  %v2756_v29 = vmax.f32 %v2750_v25, 0.0 }
 0x638   : > { %v2757_v30 = vmax.f32 %v2753_v20, 0.0 }
 0x63a   : > { %v2758_v1 = vpack.c.bf16 %v2757_v30, %v2756_v29 }
 0x63c   : > { %3653 = vmatmul.mubr.msk.bf16.vlgmr.msra.gmra.mrb[32].mxu1 %vm507_vm1, %v2758_v1 }
 0x70f   : > { %v2835_v32 = vpop.f32.mrb[32].mxu1 }
 0x710   : > { %v2836_v33 = vadd.f32 %v3358_v31, %v2835_v32  ;;  %v3654_v34 = vpop.f32.mrb[33].mxu1 }
 0x711   : > { %v2838_v35 = vpop.f32.mrb[34].mxu1 }
 0x712   : > { %2842 = vxpose.xlu1.b32.start [1/2] (short) (narrow) %v2836_v33, 8  ;;  %v3655_v36 = vpop.f32.mrb[35].mxu1  ;;  %v2839_v39 = vadd.f32 %v3358_v31, %v2838_v35 }
 0x716   : > { %2843 = vxpose.xlu1.b32.end [2/2] (short) (narrow) %v2839_v39, 8 }
 0x792   : > { %v2858_v43 = vpop.trf.xlu1 }
 0x793   : > { %2875 = vst.msk [vmem:[%s452_s21] sm:$0xff] %vm2874_vm4, %v2858_v43 }
 0x794 PF: > { %s23_s25 = sadd.s32 1, %s3835_s25  }
 0x795   : > { %p20_p4 = scmp.ge.s32.totalorder %s23_s25, 4  }
 0x797   :  { %22 = sbr.rel (!%p20_p4) target bundleno = 1 (0x1), region = 119 }

</bundles_post_ra>
